<compile_context>
chip_gen: v7x
topology: tpu7x:2x2x1
jax: 0.10.0
libtpu: 0.0.40
codegen_flags: <defaults>
</compile_context>

<pallas_src>
import functools

import jax
import jax.numpy as jnp
from jax.experimental import pallas as pl
from jax.experimental.pallas import tpu as pltpu

# ---- Config (mirrors the PyTorch Config) ------------------------------------
MESSAGE_INPUT_DIM = 2
MESSAGE_HIDDEN_SIZES = (36, 8, 3)
UPDATE_INPUT_DIM = 4
UPDATE_HIDDEN_SIZES = (36, 8, 3)

# ---- Parameter slab layout ---------------------------------------------------
# Each layer is stored as [W | b] with W (out, in) (PyTorch layout) and b as the
# extra column, at an 8-aligned row offset inside a single (128, 128) f32 slab.
#   (row_offset, out_dim, in_dim)
_M1 = (0, 36, 2)
_M2 = (40, 8, 36)
_M3 = (48, 3, 8)
_M4 = (56, 2, 3)
_U1 = (64, 36, 4)
_U2 = (104, 8, 36)
_U3 = (112, 3, 8)
_U4 = (120, 1, 3)

_LAYER_SLOTS = {
    ("mW1", "mb1"): _M1, ("mW2", "mb2"): _M2, ("mW3", "mb3"): _M3, ("mW4", "mb4"): _M4,
    ("uW1", "ub1"): _U1, ("uW2", "ub2"): _U2, ("uW3", "ub3"): _U3, ("uW4", "ub4"): _U4,
}
SLAB_ROWS = 128
SLAB_COLS = 128


def pack_params(params):
    """Pack all 16 tiny parameter arrays into one lane-dense (128, 128) slab."""
    slab = jnp.zeros((SLAB_ROWS, SLAB_COLS), jnp.float32)
    for (wname, bname), (row, out_d, in_d) in _LAYER_SLOTS.items():
        W = params[wname].astype(jnp.float32)          # (out, in)
        b = params[bname].astype(jnp.float32)          # (out,)
        slab = slab.at[row:row + out_d, 0:in_d].set(W)
        slab = slab.at[row:row + out_d, in_d:in_d + 1].set(b[:, None])
    return slab


# ---- Pallas kernel -----------------------------------------------------------
def _load_wb(p_ref, slot):
    """Static slice of the packed slab -> (W (out,in) f32, b (out,1) f32)."""
    row, out_d, in_d = slot
    blk = p_ref[row:row + out_d, 0:in_d + 1]            # (out, in+1) = [W | b]
    return blk[:, :in_d], blk[:, in_d:in_d + 1]


def implicit_gnn_kernel(h_ref, p_ref, out_ref):
    f32 = jnp.float32
    bf16 = jnp.bfloat16
    L = out_ref.shape[1]                                # node-lane tile width

    # Parameter loads hoisted: one VMEM read per layer, reused everywhere.
    mW1, mb1 = _load_wb(p_ref, _M1)
    mW2, mb2 = _load_wb(p_ref, _M2)
    mW3, mb3 = _load_wb(p_ref, _M3)
    mW4, mb4 = _load_wb(p_ref, _M4)
    uW1, ub1 = _load_wb(p_ref, _U1)
    uW2, ub2 = _load_wb(p_ref, _U2)
    uW3, ub3 = _load_wb(p_ref, _U3)
    uW4, ub4 = _load_wb(p_ref, _U4)

    # bf16 weight copies for the MXU layers (cast hoisted, done once per step).
    mW1b, mW2b, mW3b = mW1.astype(bf16), mW2.astype(bf16), mW3.astype(bf16)
    uW1b, uW2b, uW3b = uW1.astype(bf16), uW2.astype(bf16), uW3.astype(bf16)

    h = h_ref[...]                                      # (10, L), f32

    def mxu_layer(Wb, b, x):
        # y = relu(W @ x + b): bf16 operands on the MXU, f32 accumulate.
        y = jnp.dot(Wb, x.astype(bf16), preferred_element_type=f32) + b
        return jnp.maximum(y, 0.0)

    def fma_tail(W, b, x):
        # Tiny linear tail (K=3, out<=2) on the VPU: broadcast FMAs, no ReLU.
        acc = W[:, 0:1] * x[0:1, :]
        for k in range(1, x.shape[0]):
            acc = acc + W[:, k:k + 1] * x[k:k + 1, :]
        return acc + b

    # ---- Message net: statically unrolled per-neighbor loop ------------------
    # Accumulate the post-ReLU M3 activation; M4 is linear so it is applied
    # once afterwards with a 4x bias (exactly equivalent to summing M4 outputs).
    acc3 = jnp.zeros((3, L), f32)
    for n in range(4):
        x = h[2 * n:2 * n + 2, :]                       # (2, L) neighbor slice
        a1 = mxu_layer(mW1b, mb1, x)                    # (36, L)
        a2 = mxu_layer(mW2b, mb2, a1)                   # (8, L)
        a3 = mxu_layer(mW3b, mb3, a2)                   # (3, L)
        acc3 = acc3 + a3

    m_sum = fma_tail(mW4, 4.0 * mb4, acc3)              # (2, L)  == sum_n M4(relu3_n)

    # ---- Update net -----------------------------------------------------------
    # u_in = [m_sum ; h_center ; phi] stacked on sublanes -> MXU for U1.
    u_in = jnp.concatenate([m_sum, h[8:10, :]], axis=0)  # (4, L)
    b1 = mxu_layer(uW1b, ub1, u_in)                      # (36, L)
    b2 = mxu_layer(uW2b, ub2, b1)                        # (8, L)
    b3 = mxu_layer(uW3b, ub3, b2)                        # (3, L)
    out_ref[...] = fma_tail(uW4, ub4, b3)                # (1, L), lane-dense store


# ---- Wrapper -----------------------------------------------------------------
@functools.partial(jax.jit, static_argnames=("block_n",))
def implicit_gnn_pallas(h_fm, params, block_n=2048):
    """Forward pass.  `h_fm` is feature-major (10, N): nodes on the lane axis.

    Feature-major input removes the wrapper-side transpose HBM pass; produce
    node features in this layout upstream.
    """
    F, N = h_fm.shape
    assert F == 10, "expected 10 features per node (8 neighbor + center + phi)"
    assert block_n % 128 == 0, "block_n must be a multiple of 128 (lane width)"
    # TODO(synk): partial last block would need masking; demo requires exact tiling.
    assert N % block_n == 0, "N must be a multiple of block_n"

    slab = pack_params(params)                          # (128, 128) resident slab

    out = pl.pallas_call(
        implicit_gnn_kernel,
        out_shape=jax.ShapeDtypeStruct((1, N), jnp.float32),
        grid_spec=pltpu.PrefetchScalarGridSpec(
            num_scalar_prefetch=0,
            grid=(N // block_n,),
            in_specs=[
                pl.BlockSpec((10, block_n), lambda i: (0, i)),
                # Constant block index -> Pallas skips re-DMA of the slab
                # across grid steps; only 64 KiB of VMEM either way.
                pl.BlockSpec((SLAB_ROWS, SLAB_COLS), lambda i: (0, 0)),
            ],
            out_specs=pl.BlockSpec((1, block_n), lambda i: (0, i)),
        ),
        compiler_params=pltpu.CompilerParams(
            dimension_semantics=("parallel",),
        ),
    )(h_fm, slab)
    return out.reshape(N, 1)


# ---- Deterministic parameter init (PyTorch nn.Linear layout: W (out,in)) ------
def init_params(key):
    def linear(key, fan_in, fan_out):
        kw, kb = jax.random.split(key)
        bound = 1.0 / jnp.sqrt(fan_in)
        W = jax.random.uniform(kw, (fan_out, fan_in), jnp.float32, -bound, bound)
        b = jax.random.uniform(kb, (fan_out,), jnp.float32, -bound, bound)
        return W, b

    m1, m2, m3 = MESSAGE_HIDDEN_SIZES
    u1, u2, u3 = UPDATE_HIDDEN_SIZES
    keys = jax.random.split(key, 8)
    p = {}
    p["mW1"], p["mb1"] = linear(keys[0], MESSAGE_INPUT_DIM, m1)
    p["mW2"], p["mb2"] = linear(keys[1], m1, m2)
    p["mW3"], p["mb3"] = linear(keys[2], m2, m3)
    p["mW4"], p["mb4"] = linear(keys[3], m3, MESSAGE_INPUT_DIM)
    p["uW1"], p["ub1"] = linear(keys[4], UPDATE_INPUT_DIM, u1)
    p["uW2"], p["ub2"] = linear(keys[5], u1, u2)
    p["uW3"], p["ub3"] = linear(keys[6], u2, u3)
    p["uW4"], p["ub4"] = linear(keys[7], u3, 1)
    return p


# ---- Pure-JAX f32 reference (mirrors the PyTorch forward) ----------------------
def implicit_gnn_ref(h, p):
    relu = jax.nn.relu

    def lin(x, W, b):
        return x @ W.T + b

    def message(x):
        x = relu(lin(x, p["mW1"], p["mb1"]))
        x = relu(lin(x, p["mW2"], p["mb2"]))
        x = relu(lin(x, p["mW3"], p["mb3"]))
        return lin(x, p["mW4"], p["mb4"])

    def update(x):
        x = relu(lin(x, p["uW1"], p["ub1"]))
        x = relu(lin(x, p["uW2"], p["ub2"]))
        x = relu(lin(x, p["uW3"], p["ub3"]))
        return lin(x, p["uW4"], p["ub4"])

    h_other = h[:, :8].reshape(-1, 4, MESSAGE_INPUT_DIM)
    m = message(h_other)
    m_sum = m.sum(axis=1)
    u_in = jnp.concatenate([m_sum, h[:, 8:9], h[:, 9:10]], axis=1)
    return update(u_in)


if __name__ == "__main__":
    key = jax.random.PRNGKey(0)
    k_h, k_p = jax.random.split(key)

    N = 8192                      # nodes; grid = 4 steps of block_n=2048 (even -> both v7x TCs)
    # Node features produced feature-major (10, N): no h.T HBM pass in front of
    # the kernel.
    h_fm = jax.random.normal(k_h, (10, N), jnp.float32)
    params = init_params(k_p)

    out = implicit_gnn_pallas(h_fm, params, block_n=2048)
    out = jax.block_until_ready(out)

    ref = implicit_gnn_ref(h_fm.T, params)
    assert out.shape == (N, 1)
    # bf16 MXU operands (f32 accumulate) -> compare against the f32 reference
    # with a bf16-appropriate tolerance.
    assert jnp.allclose(out, ref, atol=5e-2, rtol=5e-2), "mismatch vs JAX reference"

    print("KERNEL_OK")
</pallas_src>

<mosaic_0001>
module attributes {stable_mosaic.version = 11 : i64} {
  func.func @implicit_gnn_kernel(%arg0: i32, %arg1: memref<10x2048xf32, #tpu.memory_space<vmem>>, %arg2: memref<128x128xf32, #tpu.memory_space<vmem>>, %arg3: memref<1x2048xf32, #tpu.memory_space<vmem>>) attributes {dimension_semantics = [#tpu.dimension_semantics<parallel>], iteration_bounds = array<i64: 4>, scalar_prefetch = 0 : i64, scratch_operands = 0 : i64, tpu.core_type = #tpu.core_type<tc>, window_params = [{transform_indices = @transform_0, window_bounds = array<i64: 10, 2048>}, {pipeline_mode = #tpu.pipeline_mode<synchronous>, transform_indices = @transform_1, window_bounds = array<i64: 128, 128>}, {transform_indices = @transform_2, window_bounds = array<i64: 1, 2048>}]} {
    %c0 = arith.constant 0 : index
    %c0_0 = arith.constant 0 : index
    %0 = vector.load %arg2[%c0, %c0_0] : memref<128x128xf32, #tpu.memory_space<vmem>>, vector<36x3xf32>
    %1 = vector.extract_strided_slice %0 {offsets = [0, 0], sizes = [36, 2], strides = [1, 1]} : vector<36x3xf32> to vector<36x2xf32>
    %2 = vector.extract_strided_slice %0 {offsets = [0, 2], sizes = [36, 1], strides = [1, 1]} : vector<36x3xf32> to vector<36x1xf32>
    %c40 = arith.constant 40 : index
    %c0_1 = arith.constant 0 : index
    %3 = vector.load %arg2[%c40, %c0_1] : memref<128x128xf32, #tpu.memory_space<vmem>>, vector<8x37xf32>
    %4 = vector.extract_strided_slice %3 {offsets = [0, 0], sizes = [8, 36], strides = [1, 1]} : vector<8x37xf32> to vector<8x36xf32>
    %5 = vector.extract_strided_slice %3 {offsets = [0, 36], sizes = [8, 1], strides = [1, 1]} : vector<8x37xf32> to vector<8x1xf32>
    %c48 = arith.constant 48 : index
    %c0_2 = arith.constant 0 : index
    %6 = vector.load %arg2[%c48, %c0_2] : memref<128x128xf32, #tpu.memory_space<vmem>>, vector<3x9xf32>
    %7 = vector.extract_strided_slice %6 {offsets = [0, 0], sizes = [3, 8], strides = [1, 1]} : vector<3x9xf32> to vector<3x8xf32>
    %8 = vector.extract_strided_slice %6 {offsets = [0, 8], sizes = [3, 1], strides = [1, 1]} : vector<3x9xf32> to vector<3x1xf32>
    %c56 = arith.constant 56 : index
    %c0_3 = arith.constant 0 : index
    %9 = vector.load %arg2[%c56, %c0_3] : memref<128x128xf32, #tpu.memory_space<vmem>>, vector<2x4xf32>
    %10 = vector.extract_strided_slice %9 {offsets = [0, 0], sizes = [2, 3], strides = [1, 1]} : vector<2x4xf32> to vector<2x3xf32>
    %11 = vector.extract_strided_slice %9 {offsets = [0, 3], sizes = [2, 1], strides = [1, 1]} : vector<2x4xf32> to vector<2x1xf32>
    %c64 = arith.constant 64 : index
    %c0_4 = arith.constant 0 : index
    %12 = vector.load %arg2[%c64, %c0_4] : memref<128x128xf32, #tpu.memory_space<vmem>>, vector<36x5xf32>
    %13 = vector.extract_strided_slice %12 {offsets = [0, 0], sizes = [36, 4], strides = [1, 1]} : vector<36x5xf32> to vector<36x4xf32>
    %14 = vector.extract_strided_slice %12 {offsets = [0, 4], sizes = [36, 1], strides = [1, 1]} : vector<36x5xf32> to vector<36x1xf32>
    %c104 = arith.constant 104 : index
    %c0_5 = arith.constant 0 : index
    %15 = vector.load %arg2[%c104, %c0_5] : memref<128x128xf32, #tpu.memory_space<vmem>>, vector<8x37xf32>
    %16 = vector.extract_strided_slice %15 {offsets = [0, 0], sizes = [8, 36], strides = [1, 1]} : vector<8x37xf32> to vector<8x36xf32>
    %17 = vector.extract_strided_slice %15 {offsets = [0, 36], sizes = [8, 1], strides = [1, 1]} : vector<8x37xf32> to vector<8x1xf32>
    %c112 = arith.constant 112 : index
    %c0_6 = arith.constant 0 : index
    %18 = vector.load %arg2[%c112, %c0_6] : memref<128x128xf32, #tpu.memory_space<vmem>>, vector<3x9xf32>
    %19 = vector.extract_strided_slice %18 {offsets = [0, 0], sizes = [3, 8], strides = [1, 1]} : vector<3x9xf32> to vector<3x8xf32>
    %20 = vector.extract_strided_slice %18 {offsets = [0, 8], sizes = [3, 1], strides = [1, 1]} : vector<3x9xf32> to vector<3x1xf32>
    %c120 = arith.constant 120 : index
    %c0_7 = arith.constant 0 : index
    %21 = vector.load %arg2[%c120, %c0_7] : memref<128x128xf32, #tpu.memory_space<vmem>>, vector<1x4xf32>
    %22 = vector.extract_strided_slice %21 {offsets = [0, 0], sizes = [1, 3], strides = [1, 1]} : vector<1x4xf32> to vector<1x3xf32>
    %23 = vector.extract_strided_slice %21 {offsets = [0, 3], sizes = [1, 1], strides = [1, 1]} : vector<1x4xf32> to vector<1x1xf32>
    %24 = arith.truncf %1 : vector<36x2xf32> to vector<36x2xbf16>
    %25 = arith.truncf %4 : vector<8x36xf32> to vector<8x36xbf16>
    %26 = arith.truncf %7 : vector<3x8xf32> to vector<3x8xbf16>
    %27 = arith.truncf %13 : vector<36x4xf32> to vector<36x4xbf16>
    %28 = arith.truncf %16 : vector<8x36xf32> to vector<8x36xbf16>
    %29 = arith.truncf %19 : vector<3x8xf32> to vector<3x8xbf16>
    %c0_8 = arith.constant 0 : index
    %c0_9 = arith.constant 0 : index
    %30 = vector.load %arg1[%c0_8, %c0_9] : memref<10x2048xf32, #tpu.memory_space<vmem>>, vector<10x2048xf32>
    %cst = arith.constant 0.000000e+00 : f32
    %31 = vector.broadcast %cst : f32 to vector<3x2048xf32>
    %32 = vector.extract_strided_slice %30 {offsets = [0, 0], sizes = [2, 2048], strides = [1, 1]} : vector<10x2048xf32> to vector<2x2048xf32>
    %33 = arith.truncf %32 : vector<2x2048xf32> to vector<2x2048xbf16>
    %cst_10 = arith.constant dense<0.000000e+00> : vector<36x2048xf32>
    %34 = tpu.matmul %24, %33, %cst_10 {dimension_numbers = #tpu.dot_dimension_numbers<[1], [0], [0], [1], [0, 0, 1, 1], [], []>} : vector<36x2xbf16>, vector<2x2048xbf16>, vector<36x2048xf32> -> vector<36x2048xf32>
    %35 = vector.broadcast %2 : vector<36x1xf32> to vector<36x2048xf32>
    %36 = arith.addf %34, %35 : vector<36x2048xf32>
    %cst_11 = arith.constant 0.000000e+00 : f32
    %37 = vector.broadcast %cst_11 : f32 to vector<36x2048xf32>
    %38 = arith.maximumf %36, %37 : vector<36x2048xf32>
    %39 = arith.truncf %38 : vector<36x2048xf32> to vector<36x2048xbf16>
    %cst_12 = arith.constant dense<0.000000e+00> : vector<8x2048xf32>
    %40 = tpu.matmul %25, %39, %cst_12 {dimension_numbers = #tpu.dot_dimension_numbers<[1], [0], [0], [1], [0, 0, 1, 1], [], []>} : vector<8x36xbf16>, vector<36x2048xbf16>, vector<8x2048xf32> -> vector<8x2048xf32>
    %41 = vector.broadcast %5 : vector<8x1xf32> to vector<8x2048xf32>
    %42 = arith.addf %40, %41 : vector<8x2048xf32>
    %cst_13 = arith.constant 0.000000e+00 : f32
    %43 = vector.broadcast %cst_13 : f32 to vector<8x2048xf32>
    %44 = arith.maximumf %42, %43 : vector<8x2048xf32>
    %45 = arith.truncf %44 : vector<8x2048xf32> to vector<8x2048xbf16>
    %cst_14 = arith.constant dense<0.000000e+00> : vector<3x2048xf32>
    %46 = tpu.matmul %26, %45, %cst_14 {dimension_numbers = #tpu.dot_dimension_numbers<[1], [0], [0], [1], [0, 0, 1, 1], [], []>} : vector<3x8xbf16>, vector<8x2048xbf16>, vector<3x2048xf32> -> vector<3x2048xf32>
    %47 = vector.broadcast %8 : vector<3x1xf32> to vector<3x2048xf32>
    %48 = arith.addf %46, %47 : vector<3x2048xf32>
    %cst_15 = arith.constant 0.000000e+00 : f32
    %49 = vector.broadcast %cst_15 : f32 to vector<3x2048xf32>
    %50 = arith.maximumf %48, %49 : vector<3x2048xf32>
    %51 = arith.addf %31, %50 : vector<3x2048xf32>
    %52 = vector.extract_strided_slice %30 {offsets = [2, 0], sizes = [2, 2048], strides = [1, 1]} : vector<10x2048xf32> to vector<2x2048xf32>
    %53 = arith.truncf %52 : vector<2x2048xf32> to vector<2x2048xbf16>
    %cst_16 = arith.constant dense<0.000000e+00> : vector<36x2048xf32>
    %54 = tpu.matmul %24, %53, %cst_16 {dimension_numbers = #tpu.dot_dimension_numbers<[1], [0], [0], [1], [0, 0, 1, 1], [], []>} : vector<36x2xbf16>, vector<2x2048xbf16>, vector<36x2048xf32> -> vector<36x2048xf32>
    %55 = vector.broadcast %2 : vector<36x1xf32> to vector<36x2048xf32>
    %56 = arith.addf %54, %55 : vector<36x2048xf32>
    %cst_17 = arith.constant 0.000000e+00 : f32
    %57 = vector.broadcast %cst_17 : f32 to vector<36x2048xf32>
    %58 = arith.maximumf %56, %57 : vector<36x2048xf32>
    %59 = arith.truncf %58 : vector<36x2048xf32> to vector<36x2048xbf16>
    %cst_18 = arith.constant dense<0.000000e+00> : vector<8x2048xf32>
    %60 = tpu.matmul %25, %59, %cst_18 {dimension_numbers = #tpu.dot_dimension_numbers<[1], [0], [0], [1], [0, 0, 1, 1], [], []>} : vector<8x36xbf16>, vector<36x2048xbf16>, vector<8x2048xf32> -> vector<8x2048xf32>
    %61 = vector.broadcast %5 : vector<8x1xf32> to vector<8x2048xf32>
    %62 = arith.addf %60, %61 : vector<8x2048xf32>
    %cst_19 = arith.constant 0.000000e+00 : f32
    %63 = vector.broadcast %cst_19 : f32 to vector<8x2048xf32>
    %64 = arith.maximumf %62, %63 : vector<8x2048xf32>
    %65 = arith.truncf %64 : vector<8x2048xf32> to vector<8x2048xbf16>
    %cst_20 = arith.constant dense<0.000000e+00> : vector<3x2048xf32>
    %66 = tpu.matmul %26, %65, %cst_20 {dimension_numbers = #tpu.dot_dimension_numbers<[1], [0], [0], [1], [0, 0, 1, 1], [], []>} : vector<3x8xbf16>, vector<8x2048xbf16>, vector<3x2048xf32> -> vector<3x2048xf32>
    %67 = vector.broadcast %8 : vector<3x1xf32> to vector<3x2048xf32>
    %68 = arith.addf %66, %67 : vector<3x2048xf32>
    %cst_21 = arith.constant 0.000000e+00 : f32
    %69 = vector.broadcast %cst_21 : f32 to vector<3x2048xf32>
    %70 = arith.maximumf %68, %69 : vector<3x2048xf32>
    %71 = arith.addf %51, %70 : vector<3x2048xf32>
    %72 = vector.extract_strided_slice %30 {offsets = [4, 0], sizes = [2, 2048], strides = [1, 1]} : vector<10x2048xf32> to vector<2x2048xf32>
    %73 = arith.truncf %72 : vector<2x2048xf32> to vector<2x2048xbf16>
    %cst_22 = arith.constant dense<0.000000e+00> : vector<36x2048xf32>
    %74 = tpu.matmul %24, %73, %cst_22 {dimension_numbers = #tpu.dot_dimension_numbers<[1], [0], [0], [1], [0, 0, 1, 1], [], []>} : vector<36x2xbf16>, vector<2x2048xbf16>, vector<36x2048xf32> -> vector<36x2048xf32>
    %75 = vector.broadcast %2 : vector<36x1xf32> to vector<36x2048xf32>
    %76 = arith.addf %74, %75 : vector<36x2048xf32>
    %cst_23 = arith.constant 0.000000e+00 : f32
    %77 = vector.broadcast %cst_23 : f32 to vector<36x2048xf32>
    %78 = arith.maximumf %76, %77 : vector<36x2048xf32>
    %79 = arith.truncf %78 : vector<36x2048xf32> to vector<36x2048xbf16>
    %cst_24 = arith.constant dense<0.000000e+00> : vector<8x2048xf32>
    %80 = tpu.matmul %25, %79, %cst_24 {dimension_numbers = #tpu.dot_dimension_numbers<[1], [0], [0], [1], [0, 0, 1, 1], [], []>} : vector<8x36xbf16>, vector<36x2048xbf16>, vector<8x2048xf32> -> vector<8x2048xf32>
    %81 = vector.broadcast %5 : vector<8x1xf32> to vector<8x2048xf32>
    %82 = arith.addf %80, %81 : vector<8x2048xf32>
    %cst_25 = arith.constant 0.000000e+00 : f32
    %83 = vector.broadcast %cst_25 : f32 to vector<8x2048xf32>
    %84 = arith.maximumf %82, %83 : vector<8x2048xf32>
    %85 = arith.truncf %84 : vector<8x2048xf32> to vector<8x2048xbf16>
    %cst_26 = arith.constant dense<0.000000e+00> : vector<3x2048xf32>
    %86 = tpu.matmul %26, %85, %cst_26 {dimension_numbers = #tpu.dot_dimension_numbers<[1], [0], [0], [1], [0, 0, 1, 1], [], []>} : vector<3x8xbf16>, vector<8x2048xbf16>, vector<3x2048xf32> -> vector<3x2048xf32>
    %87 = vector.broadcast %8 : vector<3x1xf32> to vector<3x2048xf32>
    %88 = arith.addf %86, %87 : vector<3x2048xf32>
    %cst_27 = arith.constant 0.000000e+00 : f32
    %89 = vector.broadcast %cst_27 : f32 to vector<3x2048xf32>
    %90 = arith.maximumf %88, %89 : vector<3x2048xf32>
    %91 = arith.addf %71, %90 : vector<3x2048xf32>
    %92 = vector.extract_strided_slice %30 {offsets = [6, 0], sizes = [2, 2048], strides = [1, 1]} : vector<10x2048xf32> to vector<2x2048xf32>
    %93 = arith.truncf %92 : vector<2x2048xf32> to vector<2x2048xbf16>
    %cst_28 = arith.constant dense<0.000000e+00> : vector<36x2048xf32>
    %94 = tpu.matmul %24, %93, %cst_28 {dimension_numbers = #tpu.dot_dimension_numbers<[1], [0], [0], [1], [0, 0, 1, 1], [], []>} : vector<36x2xbf16>, vector<2x2048xbf16>, vector<36x2048xf32> -> vector<36x2048xf32>
    %95 = vector.broadcast %2 : vector<36x1xf32> to vector<36x2048xf32>
    %96 = arith.addf %94, %95 : vector<36x2048xf32>
    %cst_29 = arith.constant 0.000000e+00 : f32
    %97 = vector.broadcast %cst_29 : f32 to vector<36x2048xf32>
    %98 = arith.maximumf %96, %97 : vector<36x2048xf32>
    %99 = arith.truncf %98 : vector<36x2048xf32> to vector<36x2048xbf16>
    %cst_30 = arith.constant dense<0.000000e+00> : vector<8x2048xf32>
    %100 = tpu.matmul %25, %99, %cst_30 {dimension_numbers = #tpu.dot_dimension_numbers<[1], [0], [0], [1], [0, 0, 1, 1], [], []>} : vector<8x36xbf16>, vector<36x2048xbf16>, vector<8x2048xf32> -> vector<8x2048xf32>
    %101 = vector.broadcast %5 : vector<8x1xf32> to vector<8x2048xf32>
    %102 = arith.addf %100, %101 : vector<8x2048xf32>
    %cst_31 = arith.constant 0.000000e+00 : f32
    %103 = vector.broadcast %cst_31 : f32 to vector<8x2048xf32>
    %104 = arith.maximumf %102, %103 : vector<8x2048xf32>
    %105 = arith.truncf %104 : vector<8x2048xf32> to vector<8x2048xbf16>
    %cst_32 = arith.constant dense<0.000000e+00> : vector<3x2048xf32>
    %106 = tpu.matmul %26, %105, %cst_32 {dimension_numbers = #tpu.dot_dimension_numbers<[1], [0], [0], [1], [0, 0, 1, 1], [], []>} : vector<3x8xbf16>, vector<8x2048xbf16>, vector<3x2048xf32> -> vector<3x2048xf32>
    %107 = vector.broadcast %8 : vector<3x1xf32> to vector<3x2048xf32>
    %108 = arith.addf %106, %107 : vector<3x2048xf32>
    %cst_33 = arith.constant 0.000000e+00 : f32
    %109 = vector.broadcast %cst_33 : f32 to vector<3x2048xf32>
    %110 = arith.maximumf %108, %109 : vector<3x2048xf32>
    %111 = arith.addf %91, %110 : vector<3x2048xf32>
    %cst_34 = arith.constant 4.000000e+00 : f32
    %112 = vector.broadcast %cst_34 : f32 to vector<2x1xf32>
    %113 = arith.mulf %112, %11 : vector<2x1xf32>
    %114 = vector.extract_strided_slice %10 {offsets = [0, 0], sizes = [2, 1], strides = [1, 1]} : vector<2x3xf32> to vector<2x1xf32>
    %115 = vector.extract_strided_slice %111 {offsets = [0, 0], sizes = [1, 2048], strides = [1, 1]} : vector<3x2048xf32> to vector<1x2048xf32>
    %116 = vector.broadcast %114 : vector<2x1xf32> to vector<2x2048xf32>
    %117 = vector.broadcast %115 : vector<1x2048xf32> to vector<2x2048xf32>
    %118 = arith.mulf %116, %117 : vector<2x2048xf32>
    %119 = vector.extract_strided_slice %10 {offsets = [0, 1], sizes = [2, 1], strides = [1, 1]} : vector<2x3xf32> to vector<2x1xf32>
    %120 = vector.extract_strided_slice %111 {offsets = [1, 0], sizes = [1, 2048], strides = [1, 1]} : vector<3x2048xf32> to vector<1x2048xf32>
    %121 = vector.broadcast %119 : vector<2x1xf32> to vector<2x2048xf32>
    %122 = vector.broadcast %120 : vector<1x2048xf32> to vector<2x2048xf32>
    %123 = arith.mulf %121, %122 : vector<2x2048xf32>
    %124 = arith.addf %118, %123 : vector<2x2048xf32>
    %125 = vector.extract_strided_slice %10 {offsets = [0, 2], sizes = [2, 1], strides = [1, 1]} : vector<2x3xf32> to vector<2x1xf32>
    %126 = vector.extract_strided_slice %111 {offsets = [2, 0], sizes = [1, 2048], strides = [1, 1]} : vector<3x2048xf32> to vector<1x2048xf32>
    %127 = vector.broadcast %125 : vector<2x1xf32> to vector<2x2048xf32>
    %128 = vector.broadcast %126 : vector<1x2048xf32> to vector<2x2048xf32>
    %129 = arith.mulf %127, %128 : vector<2x2048xf32>
    %130 = arith.addf %124, %129 : vector<2x2048xf32>
    %131 = vector.broadcast %113 : vector<2x1xf32> to vector<2x2048xf32>
    %132 = arith.addf %130, %131 : vector<2x2048xf32>
    %133 = vector.extract_strided_slice %30 {offsets = [8, 0], sizes = [2, 2048], strides = [1, 1]} : vector<10x2048xf32> to vector<2x2048xf32>
    %134 = tpu.concatenate %132, %133 in 0 : vector<2x2048xf32>, vector<2x2048xf32> -> vector<4x2048xf32>
    %135 = arith.truncf %134 : vector<4x2048xf32> to vector<4x2048xbf16>
    %cst_35 = arith.constant dense<0.000000e+00> : vector<36x2048xf32>
    %136 = tpu.matmul %27, %135, %cst_35 {dimension_numbers = #tpu.dot_dimension_numbers<[1], [0], [0], [1], [0, 0, 1, 1], [], []>} : vector<36x4xbf16>, vector<4x2048xbf16>, vector<36x2048xf32> -> vector<36x2048xf32>
    %137 = vector.broadcast %14 : vector<36x1xf32> to vector<36x2048xf32>
    %138 = arith.addf %136, %137 : vector<36x2048xf32>
    %cst_36 = arith.constant 0.000000e+00 : f32
    %139 = vector.broadcast %cst_36 : f32 to vector<36x2048xf32>
    %140 = arith.maximumf %138, %139 : vector<36x2048xf32>
    %141 = arith.truncf %140 : vector<36x2048xf32> to vector<36x2048xbf16>
    %cst_37 = arith.constant dense<0.000000e+00> : vector<8x2048xf32>
    %142 = tpu.matmul %28, %141, %cst_37 {dimension_numbers = #tpu.dot_dimension_numbers<[1], [0], [0], [1], [0, 0, 1, 1], [], []>} : vector<8x36xbf16>, vector<36x2048xbf16>, vector<8x2048xf32> -> vector<8x2048xf32>
    %143 = vector.broadcast %17 : vector<8x1xf32> to vector<8x2048xf32>
    %144 = arith.addf %142, %143 : vector<8x2048xf32>
    %cst_38 = arith.constant 0.000000e+00 : f32
    %145 = vector.broadcast %cst_38 : f32 to vector<8x2048xf32>
    %146 = arith.maximumf %144, %145 : vector<8x2048xf32>
    %147 = arith.truncf %146 : vector<8x2048xf32> to vector<8x2048xbf16>
    %cst_39 = arith.constant dense<0.000000e+00> : vector<3x2048xf32>
    %148 = tpu.matmul %29, %147, %cst_39 {dimension_numbers = #tpu.dot_dimension_numbers<[1], [0], [0], [1], [0, 0, 1, 1], [], []>} : vector<3x8xbf16>, vector<8x2048xbf16>, vector<3x2048xf32> -> vector<3x2048xf32>
    %149 = vector.broadcast %20 : vector<3x1xf32> to vector<3x2048xf32>
    %150 = arith.addf %148, %149 : vector<3x2048xf32>
    %cst_40 = arith.constant 0.000000e+00 : f32
    %151 = vector.broadcast %cst_40 : f32 to vector<3x2048xf32>
    %152 = arith.maximumf %150, %151 : vector<3x2048xf32>
    %153 = vector.extract_strided_slice %22 {offsets = [0, 0], sizes = [1, 1], strides = [1, 1]} : vector<1x3xf32> to vector<1x1xf32>
    %154 = vector.extract_strided_slice %152 {offsets = [0, 0], sizes = [1, 2048], strides = [1, 1]} : vector<3x2048xf32> to vector<1x2048xf32>
    %155 = vector.broadcast %153 : vector<1x1xf32> to vector<1x2048xf32>
    %156 = arith.mulf %155, %154 : vector<1x2048xf32>
    %157 = vector.extract_strided_slice %22 {offsets = [0, 1], sizes = [1, 1], strides = [1, 1]} : vector<1x3xf32> to vector<1x1xf32>
    %158 = vector.extract_strided_slice %152 {offsets = [1, 0], sizes = [1, 2048], strides = [1, 1]} : vector<3x2048xf32> to vector<1x2048xf32>
    %159 = vector.broadcast %157 : vector<1x1xf32> to vector<1x2048xf32>
    %160 = arith.mulf %159, %158 : vector<1x2048xf32>
    %161 = arith.addf %156, %160 : vector<1x2048xf32>
    %162 = vector.extract_strided_slice %22 {offsets = [0, 2], sizes = [1, 1], strides = [1, 1]} : vector<1x3xf32> to vector<1x1xf32>
    %163 = vector.extract_strided_slice %152 {offsets = [2, 0], sizes = [1, 2048], strides = [1, 1]} : vector<3x2048xf32> to vector<1x2048xf32>
    %164 = vector.broadcast %162 : vector<1x1xf32> to vector<1x2048xf32>
    %165 = arith.mulf %164, %163 : vector<1x2048xf32>
    %166 = arith.addf %161, %165 : vector<1x2048xf32>
    %167 = vector.broadcast %23 : vector<1x1xf32> to vector<1x2048xf32>
    %168 = arith.addf %166, %167 : vector<1x2048xf32>
    %c0_41 = arith.constant 0 : index
    %c0_42 = arith.constant 0 : index
    %169 = vector.load %arg3[%c0_41, %c0_42] : memref<1x2048xf32, #tpu.memory_space<vmem>>, vector<1x2048xf32>
    tpu.vector_store %arg3[%c0_41, %c0_42], %168 {strides = array<i32>} : memref<1x2048xf32, #tpu.memory_space<vmem>>, vector<1x2048xf32>,
    return
  }
  func.func @transform_0(%arg0: i32) -> (i32, i32) {
    %c0_i32 = arith.constant 0 : i32
    %c0_i32_0 = arith.constant 0 : i32
    return %c0_i32, %arg0 : i32, i32
  }
  func.func @transform_1(%arg0: i32) -> (i32, i32) {
    %c0_i32 = arith.constant 0 : i32
    %c0_i32_0 = arith.constant 0 : i32
    %c0_i32_1 = arith.constant 0 : i32
    return %c0_i32, %c0_i32_0 : i32, i32
  }
  func.func @transform_2(%arg0: i32) -> (i32, i32) {
    %c0_i32 = arith.constant 0 : i32
    %c0_i32_0 = arith.constant 0 : i32
    return %c0_i32, %arg0 : i32, i32
  }
}

</mosaic_0001>

<bundles_post_ra>
// kernel: implicit_gnn_pallas.1
= control target key start
LH: loop header
LB: loop body
LE: loop exit
PB: predicated region body
PF: predicated region fallthrough
CT: control target
= control target key end

     0   :  { %7 = vsyncpa [#allocation3], 0  ;;  %s11329_s0 = inlined_call_operand.hbm [shape: f32[10,8192], index: 0, kind: input, shape index: {}]   ;;  %s11330_s1 = inlined_call_operand.vmem [shape: f32[128,128], index: 1, kind: input, shape index: {}]   ;;  %s11331_s2 = inlined_call_operand.hbm [shape: f32[1,8192], index: 2, kind: output, shape index: {}]  }
   0x1   :  { %9 = vsyncpa [#allocation3 + $0x1], 0 }
   0x2   :  { %10 = vsyncpa [#allocation4], 0 }
   0x3   :  { %12 = vsyncpa [#allocation4 + $0x1], 0  ;;  %s9113_s9 = smov 0   ;;  %s9115_s10 = smov 0  }
   0x4   :  { %s9117_s11 = smov 0   ;;  %s9119_s12 = smov 0  }
   0x5 LB: > { %s9134_s13 = sadd.s32 4294967295, %s9083_s12   ;;  %s8577_s14 = sadd.s32 4294967294, %s9083_s12   ;;  %s9083_s12 = sphi %s9119_s12, %s11379_s12   ;;  %s9079_s11 = sphi %s9117_s11, %s11378_s11   ;;  %s9075_s10 = sphi %s9115_s10, %s11377_s10   ;;  %s9071_s9 = sphi %s9113_s9, %s11376_s9  }
   0x6   : > { %s9138_s15 = sadd.s32 1, %s9083_s12   ;;  %s25_s16 = sadd.s32 1, %s9079_s11 }
   0x7   : > { %s22_s17 = ssub.s32 %s9083_s12, %s9138_s15  ;;  %p32_p0 = scmp.ne.s32.totalorder %s9079_s11, %s9075_s10 }
   0x8   : > { %p23_p1 = scmp.eq.s32.totalorder %s22_s17, 0  ;;  %p33_p2 = scmp.eq.s32.totalorder %s9083_s12, 0 }
   0x9   : > { %p38_p3 = scmp.ne.s32.totalorder %s9075_s10, %s9071_s9  ;;  %p39_p4 = scmp.eq.s32.totalorder %s9134_s13, 0 }
   0xa   : > { %s9150_s18 = scalar_select %p23_p1, %s9079_s11, %s25_s16  }
   0xb   : > { %p9152_p5 = por %p33_p2, %p32_p0  ;;  %p9156_p6 = por %p39_p4, %p38_p3 }
   0xc   : > { %p83_p7 = scmp.eq.s32.totalorder %s9134_s13, 3  ;;  %p89_p8 = scmp.eq.s32.totalorder %s8577_s14, 3 }
   0xd   : > { %p8925_p9 = scmp.lt.s32.totalorder %s9083_s12, 4  ;;  %s112_s23 = sand.u32 1, %s9079_s11  }
   0xe   : > { %p9162_p10 = por %p83_p7, %p32_p0  ;;  %p9166_p11 = por %p89_p8, %p38_p3 }
   0xf   : > { %s8911_s24 = sshll.u32 %s9083_s12, 11  ;;  %s8580_s25 = sshll.u32 %s112_s23, 8 }
  0x10   : > { %s11340_s21 = scalar_select %p9162_p10, 1, 0 }
  0x11   : > { %s11341_s22 = scalar_select %p9166_p11, 1, 0 }
  0x12   : > { %s9175_s28 = scalar_lea.hbm %s11329_s0, %s8911_s24  ;;  %s116_s29 = scalar_lea.vmem [#allocation2], %s8580_s25 }
  0x13   : > { %s123_s30 = sshll.u32 %s116_s29, 4  ;;  %p9179_p12 = pnand %p8925_p9, %p9152_p5  ;;  %s9183_s30 = int_to_ptr.vmem [resolvable:$true] %s123_s30 }
  0x14   : > { %s9186_s4 = scalar_lea.sflag [#allocation3], %s112_s23  ;;  %s8987_s5 = scalar_lea.hbm %s9175_s28, 4096 }
  0x15   : > { %p8988_p0 = scmp.ne.s32.totalorder %s9175_s28, %s8987_s5  ;;  %p8989_p1 = pneg %p9179_p12 }
  0x16   : > { %s8992_s8 = scalar_lea.hbm %s11329_s0, 16384  ;;  %p8993_p4 = scmp.lt.u32.totalorder %s9175_s28, %s11329_s0 }
  0x17   : > { %p8990_p2 = pnand %p8989_p1, %p8988_p0  ;;  %p8994_p5 = scmp.lt.u32.totalorder %s8992_s8, %s8987_s5 }
  0x18   : > { %p8996_p8 = scmp.lt.u32.totalorder %s8987_s5, %s9175_s28 }
  0x19   : > { %p8991_p3 = pneg %p8990_p2  ;;  %p8995_p7 = por %p8994_p5, %p8993_p4 }
  0x1b   : > { %p8997_p9 = por %p8996_p8, %p8995_p7 }
  0x1d   : > { %p8998_p13 = pnand %p8997_p9, %p8991_p3 }
  0x1f   : > { %9001 = shalt.err (!%p8998_p13)
}
  0x20   : > { %s9002_s17 = scalar_lea.vmem %s9183_s30, 4096  ;;  %s9085_s19 = smov [#allocation2]  }
  0x21   : > { %p9003_p0 = scmp.ne.s32.totalorder %s9183_s30, %s9002_s17  ;;  %s9007_s23 = sshll.u32 %s9085_s19, 4  ;;  %s9008_s23 = int_to_ptr.vmem [resolvable:$false] %s9007_s23 }
  0x22   : > { %s9009_s24 = scalar_lea.vmem %s9008_s23, 8192  ;;  %p9010_p10 = scmp.lt.s32.totalorder %s9183_s30, %s9008_s23 }
  0x23   : > { %p9005_p2 = pnand %p9003_p0, %p8989_p1  ;;  %p9011_p4 = scmp.lt.s32.totalorder %s9009_s24, %s9002_s17 }
  0x25   : > { %p9006_p11 = pneg %p9005_p2  ;;  %p9012_p5 = por %p9011_p4, %p9010_p10 }
  0x27   : > { %p9013_p7 = pnand %p9012_p5, %p9006_p11 }
  0x29   : > { %9016 = shalt.err (!%p9013_p7)
}
  0x2a   : > { %s9086_s25 = smov 8192   ;;  %s9087_s26 = smov 2048  }
  0x2b   : > { %s9088_s27 = smov 128   ;;  %p131_p13 = scmp.lt.s32.totalorder %s9083_s12, 5 }
  0x2c   : > { %8920 = dma.hbm_to_vmem [thread:$0]  (!%p9179_p12), %s9175_s28, 4096, %s9183_s30, %s9186_s4, %s9086_s25, %s9087_s26, %s9088_s27  }
  0x2d   : > { %p11343_p1 = scmp.ge.s32.totalorder %s9083_s12, 1 }
  0x2f   : > { %p132_p3 = pnand %p11343_p1, %p131_p13 }
  0x31   : > { %135 = sbr.rel (%p132_p3) target bundleno = 3180 (0xc6c), region = 28 }
  0x38   : > { %s9218_s29 = sand.u32 1, %s9075_s10  }
  0x39   : > { %s8584_s5 = sshll.u32 %s9218_s29, 8  ;;  %s138_s6 = scalar_lea.sflag [#allocation3], %s9218_s29 }
  0x3a   : > { %s9222_s7 = scalar_lea.vmem [#allocation2], %s8584_s5 }
  0x3b   : > { %9062 = dma.done.wait (%p9156_p6), %s138_s6, 4096  }
  0x3c   : > { %9064 = vsyncadd (%p9156_p6), %s138_s6, 4294963200  ;;  %v11336_v0 = vmov 0   ;;  %v11333_v1 = vmov 2   ;;  %v192_v2 = vld [vmem:[%s9222_s7 + $0x8] sm:$0xff]  ;;  %vm274_vm0 = vcmask 1040384   ;;  %v194_v3 = vld [vmem:[%s9222_s7 + $0x18] sm:$0xff] }
  0x3d   : > { %355 = vmatprep.mubr.bf16.mxu0 %v11336_v0  ;;  %416 = vmatprep.mubr.bf16.mxu1 %v11336_v0  ;;  %v191_v4 = vld [vmem:[%s9222_s7] sm:$0xff]  ;;  %v9235_v5 = vpack.c.bf16 %v192_v2, %v192_v2  ;;  %v9237_v6 = vpack.c.bf16 %v194_v3, %v194_v3  ;;  %v193_v8 = vld [vmem:[%s9222_s7 + $0x10] sm:$0xff]  ;;  %v166_v10 = vld [vmem:[%s11330_s1 + $0x8] sm:$0xff]  ;;  %vm264_vm1 = vcmask 15360   ;;  %v11334_v51 = vmov 36   ;;  %s8585_s27 = sshll.u32 %s9218_s29, 4 }
  0x3e   : > { %8970 = vset.pattern.permute.xlu0 %v11333_v1  ;;  %8971 = vset.pattern.permute.xlu1 %v11333_v1  ;;  %v9239_v7 = vpack.c.bf16 %v191_v4, %v191_v4  ;;  %v165_v9 = vld [vmem:[%s11330_s1] sm:$0xff]  ;;  %v9248_v11 = vpack.c.bf16 %v193_v8, %v193_v8  ;;  %v167_v12 = vld [vmem:[%s11330_s1 + $0x10] sm:$0xff]  ;;  %v196_v15 = vld [vmem:[%s9222_s7 + $0x28] sm:$0xff]  ;;  %vm948_vm2 = vcmask 1041408   ;;  %vm944_vm3 = vcmask 293888   ;;  %s11236_s5 = scalar_lea.vmem [#allocation5], %s8585_s27 }
  0x3f   : > { %241 = vperm.xlu0 %8970, %v165_v9   ;;  %8586 = vmatprep.subr.msk.bf16.mxu0 %vm274_vm0, %v9235_v5  ;;  %v9259_v14 = vpack.c.bf16 %v166_v10, %v165_v9  ;;  %v198_v16 = vld [vmem:[%s9222_s7 + $0x38] sm:$0xff]  ;;  %v195_v17 = vld [vmem:[%s9222_s7 + $0x20] sm:$0xff]  ;;  %v9266_v19 = vpack.c.bf16 %v196_v15, %v196_v15  ;;  %v197_v22 = vld [vmem:[%s9222_s7 + $0x30] sm:$0xff]  ;;  %vm1366_vm4 = vcmask 1043456   ;;  %vm1362_vm5 = vcmask 64512   ;;  %s8912_s6 = sshll.u32 %s9134_s13, 8 }
  0x40   : > { %8590 = vmatprep.subr.msk.bf16.mxu1 %vm274_vm0, %v9237_v6  ;;  %v276_v13 = vsel %vm274_vm0, %v9239_v7, 0  ;;  %v282_v18 = vsel %vm274_vm0, %v9248_v11, 0  ;;  %v9268_v20 = vpack.c.bf16 %v198_v16, %v198_v16  ;;  %v9270_v21 = vpack.c.bf16 %v195_v17, %v195_v17  ;;  %v200_v23 = vld [vmem:[%s9222_s7 + $0x48] sm:$0xff]  ;;  %v202_v24 = vld [vmem:[%s9222_s7 + $0x58] sm:$0xff]  ;;  %251 = vperm.xlu1 %8971, %v167_v12   ;;  %v169_v32 = vld [vmem:[%s11330_s1 + $0x20] sm:$0xf]  ;;  %s11285_s3 = scalar_lea.hbm %s11331_s2, %s8912_s6 }
  0x41   : > { %324 = vmatpush1.bf16.msra.mxu0 %v276_v13  ;;  %385 = vmatpush1.bf16.msra.mxu1 %v282_v18  ;;  %v9275_v25 = vpack.c.bf16 %v197_v22, %v197_v22  ;;  %v9283_v27 = vpack.c.bf16 %v200_v23, %v200_v23  ;;  %v9289_v29 = vpack.c.bf16 %v202_v24, %v202_v24  ;;  %v168_v30 = vld [vmem:[%s11330_s1 + $0x18] sm:$0xff]  ;;  %v199_v34 = vld [vmem:[%s9222_s7 + $0x40] sm:$0xff]  ;;  %v201_v35 = vld [vmem:[%s9222_s7 + $0x50] sm:$0xff]  ;;  %vm6691_vm6 = vcmask 31744   ;;  %s8507_s20 = sshll.u32 %s11236_s5, 4  ;;  %s8493_s4 = scalar_lea.sflag [#allocation4], %s9218_s29  ;;  %s11287_s20 = int_to_ptr.vmem [resolvable:$true] %s8507_s20 }
  0x42   : > { %8594 = vmatprep.subr.msk.bf16.mxu0 %vm274_vm0, %v9266_v19  ;;  %8598 = vmatprep.subr.msk.bf16.mxu1 %vm274_vm0, %v9268_v20  ;;  %v288_v26 = vsel %vm274_vm0, %v9270_v21, 0  ;;  %v9300_v31 = vpack.c.bf16 %v168_v30, %v167_v12  ;;  %v9313_v33 = vpack.c.bf16 %v169_v32, %v169_v32  ;;  %v9323_v36 = vpack.c.bf16 %v199_v34, %v199_v34  ;;  %v204_v38 = vld [vmem:[%s9222_s7 + $0x68] sm:$0xff]  ;;  %v206_v39 = vld [vmem:[%s9222_s7 + $0x78] sm:$0xff]  ;;  %v203_v44 = vld [vmem:[%s9222_s7 + $0x60] sm:$0xff]  ;;  %s9017_s8 = scalar_lea.vmem %s11287_s20, 256  ;;  %p11374_p10 = scmp.ne.s32.totalorder %s11340_s21, 0 }
  0x43   : > { %v294_v28 = vsel %vm274_vm0, %v9275_v25, 0  ;;  %246 = vperm.xlu0 %8970, %v166_v10   ;;  %v9325_v37 = vpack.c.bf16 %v201_v35, %v201_v35  ;;  %v9331_v41 = vpack.c.bf16 %v204_v38, %v204_v38  ;;  %v9337_v43 = vpack.c.bf16 %v206_v39, %v206_v39  ;;  %v205_v45 = vld [vmem:[%s9222_s7 + $0x70] sm:$0xff]  ;;  %v9408_v50 = vld [vmem:[%s11330_s1 + $0x28] sm:$0xff]  ;;  %p9018_p6 = scmp.ne.s32.totalorder %s11287_s20, %s9017_s8  ;;  %s9097_s13 = smov [#allocation5]  }
  0x44   : > { %8587 = vmatmul.mubr.msk.bf16.vlgmr.msra.gmra.mrb[0].mxu0 %vm264_vm1, %v9259_v14  ;;  %8591 = vmatmul.mubr.msk.bf16.vlgmr.msra.gmra.mrb[0].mxu1 %vm264_vm1, %v9259_v14  ;;  %v300_v40 = vsel %vm274_vm0, %v9323_v36, 0  ;;  %v9361_v46 = vpack.c.bf16 %v203_v44, %v203_v44  ;;  %v9363_v47 = vpack.c.bf16 %v205_v45, %v205_v45  ;;  %s9021_s14 = sshll.u32 %s9097_s13, 4  ;;  %s9022_s14 = int_to_ptr.vmem [resolvable:$false] %s9021_s14 }
  0x45   : > { %365 = vmatprep.mubr.bf16.mxu0 %v11336_v0  ;;  %426 = vmatprep.mubr.bf16.mxu1 %v11336_v0  ;;  %v306_v42 = vsel %vm274_vm0, %v9325_v37, 0  ;;  %p9019_p11 = pnand %p9018_p6, %p11374_p10  ;;  %s9023_s16 = scalar_lea.vmem %s9022_s14, 512 }
  0x46   : > { %446 = vmatpush1.bf16.msra.mxu0 %v288_v26  ;;  %507 = vmatpush1.bf16.msra.mxu1 %v294_v28  ;;  %v312_v48 = vsel %vm274_vm0, %v9361_v46, 0  ;;  %v318_v49 = vsel %vm274_vm0, %v9363_v47, 0  ;;  %p9024_p8 = scmp.lt.s32.totalorder %s11287_s20, %s9022_s14  ;;  %p9025_p9 = scmp.lt.s32.totalorder %s9023_s16, %s9017_s8 }
  0x47   : > { %8602 = vmatprep.subr.msk.bf16.mxu0 %vm274_vm0, %v9283_v27  ;;  %8606 = vmatprep.subr.msk.bf16.mxu1 %vm274_vm0, %v9289_v29  ;;  %p9020_p12 = pneg %p9019_p11 }
  0x48   : > { %256 = vperm.xlu1 %8971, %v168_v30   ;;  %261 = vperm.xlu0 %8970, %v169_v32   ;;  %p9026_p0 = por %p9025_p9, %p9024_p8 }
  0x4a   : > { %p9027_p2 = pnand %p9026_p0, %p9020_p12 }
  0x4c   : > { %8588 = vmatmul.mubr.msk.bf16.gmra.mrb[4].mxu0 %vm264_vm1, %v9300_v31  ;;  %8592 = vmatmul.mubr.msk.bf16.gmra.mrb[4].mxu1 %vm264_vm1, %v9300_v31 }
  0x4d   : > { %375 = vmatprep.mubr.bf16.mxu0 %v11336_v0  ;;  %436 = vmatprep.mubr.bf16.mxu1 %v11336_v0 }
  0x4e   : > { %8972 = vset.pattern.permute.xlu1 %v11334_v51 }
  0x4f   : > { %941 = vperm.xlu1 %8972, %v9408_v50  }
  0x53   : > { %8974 = vset.pattern.permute.xlu1 %v11336_v0 }
  0x54   : > { %8589 = vmatmul.mubr.msk.bf16.gmra.mrb[8].mxu0 %vm264_vm1, %v9313_v33  ;;  %8593 = vmatmul.mubr.msk.bf16.gmra.mrb[8].mxu1 %vm264_vm1, %v9313_v33 }
  0x55   : > { %477 = vmatprep.mubr.bf16.mxu0 %v11336_v0  ;;  %538 = vmatprep.mubr.bf16.mxu1 %v11336_v0 }
  0x5c   : > { %8595 = vmatmul.mubr.msk.bf16.vlgmr.msra.gmra.mrb[12].mxu0 %vm264_vm1, %v9259_v14  ;;  %8599 = vmatmul.mubr.msk.bf16.vlgmr.msra.gmra.mrb[12].mxu1 %vm264_vm1, %v9259_v14 }
  0x5d   : > { %487 = vmatprep.mubr.bf16.mxu0 %v11336_v0  ;;  %548 = vmatprep.mubr.bf16.mxu1 %v11336_v0 }
  0x5e   : > { %568 = vmatpush1.bf16.msra.mxu0 %v300_v40  ;;  %629 = vmatpush1.bf16.msra.mxu1 %v306_v42 }
  0x5f   : > { %8610 = vmatprep.subr.msk.bf16.mxu0 %vm274_vm0, %v9331_v41  ;;  %8614 = vmatprep.subr.msk.bf16.mxu1 %vm274_vm0, %v9337_v43 }
  0x64   : > { %8596 = vmatmul.mubr.msk.bf16.gmra.mrb[16].mxu0 %vm264_vm1, %v9300_v31  ;;  %8600 = vmatmul.mubr.msk.bf16.gmra.mrb[16].mxu1 %vm264_vm1, %v9300_v31 }
  0x65   : > { %497 = vmatprep.mubr.bf16.mxu0 %v11336_v0  ;;  %558 = vmatprep.mubr.bf16.mxu1 %v11336_v0 }
  0x6c   : > { %8597 = vmatmul.mubr.msk.bf16.gmra.mrb[20].mxu0 %vm264_vm1, %v9313_v33  ;;  %8601 = vmatmul.mubr.msk.bf16.gmra.mrb[20].mxu1 %vm264_vm1, %v9313_v33 }
  0x6d   : > { %599 = vmatprep.mubr.bf16.mxu0 %v11336_v0  ;;  %660 = vmatprep.mubr.bf16.mxu1 %v11336_v0 }
  0x74   : > { %8603 = vmatmul.mubr.msk.bf16.vlgmr.msra.gmra.mrb[24].mxu0 %vm264_vm1, %v9259_v14  ;;  %8607 = vmatmul.mubr.msk.bf16.vlgmr.msra.gmra.mrb[24].mxu1 %vm264_vm1, %v9259_v14 }
  0x75   : > { %609 = vmatprep.mubr.bf16.mxu0 %v11336_v0  ;;  %670 = vmatprep.mubr.bf16.mxu1 %v11336_v0 }
  0x76   : > { %690 = vmatpush1.bf16.msra.mxu0 %v312_v48  ;;  %751 = vmatpush1.bf16.msra.mxu1 %v318_v49 }
  0x7c   : > { %8604 = vmatmul.mubr.msk.bf16.gmra.mrb[28].mxu0 %vm264_vm1, %v9300_v31  ;;  %8608 = vmatmul.mubr.msk.bf16.gmra.mrb[28].mxu1 %vm264_vm1, %v9300_v31 }
  0x7d   : > { %619 = vmatprep.mubr.bf16.mxu0 %v11336_v0  ;;  %680 = vmatprep.mubr.bf16.mxu1 %v11336_v0 }
  0x84   : > { %8605 = vmatmul.mubr.msk.bf16.gmra.mrb[32].mxu0 %vm264_vm1, %v9313_v33  ;;  %8609 = vmatmul.mubr.msk.bf16.gmra.mrb[32].mxu1 %vm264_vm1, %v9313_v33 }
  0x85   : > { %721 = vmatprep.mubr.bf16.mxu0 %v11336_v0  ;;  %782 = vmatprep.mubr.bf16.mxu1 %v11336_v0 }
  0x8c   : > { %8611 = vmatmul.mubr.msk.bf16.vlgmr.msra.gmra.mrb[36].mxu0 %vm264_vm1, %v9259_v14  ;;  %8615 = vmatmul.mubr.msk.bf16.vlgmr.msra.gmra.mrb[36].mxu1 %vm264_vm1, %v9259_v14 }
  0x8d   : > { %731 = vmatprep.mubr.bf16.mxu0 %v11336_v0  ;;  %792 = vmatprep.mubr.bf16.mxu1 %v11336_v0 }
  0x94   : > { %8612 = vmatmul.mubr.msk.bf16.gmra.mrb[40].mxu0 %vm264_vm1, %v9300_v31  ;;  %8616 = vmatmul.mubr.msk.bf16.gmra.mrb[40].mxu1 %vm264_vm1, %v9300_v31 }
  0x95   : > { %741 = vmatprep.mubr.bf16.mxu0 %v11336_v0  ;;  %802 = vmatprep.mubr.bf16.mxu1 %v11336_v0 }
  0x9c   : > { %8613 = vmatmul.mubr.msk.bf16.gmra.mrb[44].mxu0 %vm264_vm1, %v9313_v33  ;;  %8617 = vmatmul.mubr.msk.bf16.gmra.mrb[44].mxu1 %vm264_vm1, %v9313_v33 }
  0x9d   : > { %1029 = vmatprep.mubr.bf16.mxu0 %v11336_v0  ;;  %1070 = vmatprep.mubr.bf16.mxu1 %v11336_v0 }
  0xbe   : > { %v9413_v52 = vpop.permute.xlu0 %241 }
  0xbf   : > { %v9415_v53 = vpop.permute.xlu1 %251 }
  0xc2   : > { %v9417_v55 = vpop.permute.xlu0 %246 }
  0xc7   : > { %v9427_v32 = vpop.permute.xlu1 %256 }
 0x117   : > { %v357_v54 = vpop.f32.mrb[0].mxu0  ;;  %v418_v57 = vpop.f32.mrb[0].mxu1 }
 0x118   : > { %v358_v56 = vadd.f32 %v357_v54, %v9413_v52  ;;  %v359_v58 = vpop.f32.mrb[1].mxu0  ;;  %v419_v59 = vadd.f32 %v418_v57, %v9413_v52  ;;  %v420_v61 = vpop.f32.mrb[1].mxu1 }
 0x119   : > { %v360_v60 = vadd.f32 %v359_v58, %v9413_v52  ;;  %v361_v62 = vpop.f32.mrb[2].mxu0  ;;  %v421_v63 = vadd.f32 %v420_v61, %v9413_v52  ;;  %v422_v3 = vpop.f32.mrb[2].mxu1 }
 0x11a   : > { %v362_v2 = vadd.f32 %v361_v62, %v9417_v55  ;;  %v363_v4 = vpop.f32.mrb[3].mxu0  ;;  %v423_v8 = vadd.f32 %v422_v3, %v9417_v55  ;;  %v424_v10 = vpop.f32.mrb[3].mxu1  ;;  %v811_v12 = vmax.f32 %v358_v56, 0.0  ;;  %v813_v16 = vmax.f32 %v419_v59, 0.0 }
 0x11b   : > { %v364_v9 = vadd.f32 %v363_v4, %v9417_v55  ;;  %v425_v15 = vadd.f32 %v424_v10, %v9417_v55  ;;  %v812_v17 = vmax.f32 %v360_v60, 0.0  ;;  %v814_v23 = vmax.f32 %v421_v63, 0.0 }
 0x11c   : > { %v827_v13 = vmax.f32 %v362_v2, 0.0  ;;  %v829_v18 = vmax.f32 %v423_v8, 0.0 }
 0x11d   : > { %v828_v22 = vmax.f32 %v364_v9, 0.0  ;;  %v830_v26 = vmax.f32 %v425_v15, 0.0  ;;  %v9437_v9 = vpop.permute.xlu0 %261 }
 0x11e   : > { %v891_v24 = vpack.c.bf16 %v827_v13, %v811_v12  ;;  %v893_v28 = vpack.c.bf16 %v829_v18, %v813_v16 }
 0x11f   : > { %v367_v30 = vpop.f32.mrb[4].mxu0  ;;  %v892_v34 = vpack.c.bf16 %v828_v22, %v812_v17  ;;  %v428_v38 = vpop.f32.mrb[4].mxu1  ;;  %v894_v40 = vpack.c.bf16 %v830_v26, %v814_v23 }
 0x120   : > { %v368_v35 = vadd.f32 %v367_v30, %v9415_v53  ;;  %v369_v39 = vpop.f32.mrb[5].mxu0  ;;  %v429_v42 = vadd.f32 %v428_v38, %v9415_v53  ;;  %v430_v45 = vpop.f32.mrb[5].mxu1 }
 0x121   : > { %v370_v44 = vadd.f32 %v369_v39, %v9415_v53  ;;  %v371_v48 = vpop.f32.mrb[6].mxu0  ;;  %997 = vmatprep.subr.bf16.mxu0 %v892_v34  ;;  %v431_v49 = vadd.f32 %v430_v45, %v9415_v53  ;;  %v432_v56 = vpop.f32.mrb[6].mxu1  ;;  %1038 = vmatprep.subr.bf16.mxu1 %v894_v40 }
 0x122   : > { %v372_v54 = vadd.f32 %v371_v48, %v9427_v32  ;;  %v373_v57 = vpop.f32.mrb[7].mxu0  ;;  %998 = vmatpush1.bf16.msra.mxu0 %v891_v24  ;;  %v433_v58 = vadd.f32 %v432_v56, %v9427_v32  ;;  %v434_v60 = vpop.f32.mrb[7].mxu1  ;;  %1039 = vmatpush1.bf16.msra.mxu1 %v893_v28  ;;  %v843_v61 = vmax.f32 %v368_v35, 0.0  ;;  %v845_v2 = vmax.f32 %v429_v42, 0.0 }
 0x123   : > { %v374_v59 = vadd.f32 %v373_v57, %v9427_v32  ;;  %v435_v63 = vadd.f32 %v434_v60, %v9427_v32  ;;  %v844_v3 = vmax.f32 %v370_v44, 0.0  ;;  %v846_v10 = vmax.f32 %v431_v49, 0.0 }
 0x124   : > { %v859_v62 = vmax.f32 %v372_v54, 0.0  ;;  %v861_v4 = vmax.f32 %v433_v58, 0.0 }
 0x125   : > { %v860_v8 = vmax.f32 %v374_v59, 0.0  ;;  %v862_v13 = vmax.f32 %v435_v63, 0.0 }
 0x126   : > { %v907_v12 = vpack.c.bf16 %v859_v62, %v843_v61  ;;  %v909_v15 = vpack.c.bf16 %v861_v4, %v845_v2  ;;  %v9448_v61 = vpack.c.bf16 %v9408_v50, %v9408_v50 }
 0x127   : > { %v377_v16 = vpop.f32.mrb[8].mxu0  ;;  %v908_v17 = vpack.c.bf16 %v860_v8, %v844_v3  ;;  %v438_v22 = vpop.f32.mrb[8].mxu1  ;;  %v910_v24 = vpack.c.bf16 %v862_v13, %v846_v10 }
 0x128   : > { %v378_v18 = vadd.f32 %v377_v16, %v9437_v9  ;;  %v379_v23 = vpop.f32.mrb[9].mxu0  ;;  %v439_v26 = vadd.f32 %v438_v22, %v9437_v9  ;;  %v440_v30 = vpop.f32.mrb[9].mxu1 }
 0x129   : > { %v380_v28 = vadd.f32 %v379_v23, %v9437_v9  ;;  %v381_v34 = vpop.f32.mrb[10].mxu0  ;;  %999 = vmatprep.subr.bf16.mxu0 %v908_v17  ;;  %v441_v38 = vadd.f32 %v440_v30, %v9437_v9  ;;  %v442_v39 = vpop.f32.mrb[10].mxu1  ;;  %1040 = vmatprep.subr.bf16.mxu1 %v910_v24 }
 0x12a   : > { %v875_v35 = vmax.f32 %v378_v18, 0.0  ;;  %v382_v40 = vpop.f32.mrb[11].mxu0  ;;  %1000 = vmatpush1.bf16.msra.mxu0 %v907_v12  ;;  %v877_v42 = vmax.f32 %v439_v26, 0.0  ;;  %v443_v45 = vpop.f32.mrb[11].mxu1  ;;  %1041 = vmatpush1.bf16.msra.mxu1 %v909_v15 }
 0x12b   : > { %v876_v44 = vmax.f32 %v380_v28, 0.0  ;;  %v878_v49 = vmax.f32 %v441_v38, 0.0 }
 0x12c   : > { %v923_v48 = vpack.c.bf16 %v875_v35, %v875_v35  ;;  %v925_v54 = vpack.c.bf16 %v877_v42, %v877_v42 }
 0x12d   : > { %v924_v56 = vpack.c.bf16 %v876_v44, %v876_v44  ;;  %v926_v57 = vpack.c.bf16 %v878_v49, %v878_v49 }
 0x12e   : > { %v950_v58 = vsel %vm948_vm2, %v923_v48, 0  ;;  %v956_v60 = vsel %vm948_vm2, %v925_v54, 0 }
 0x12f   : > { %v479_v59 = vpop.f32.mrb[12].mxu0  ;;  %8618 = vmatprep.subr.msk.bf16.mxu0 %vm948_vm2, %v924_v56  ;;  %v540_v63 = vpop.f32.mrb[12].mxu1  ;;  %8620 = vmatprep.subr.msk.bf16.mxu1 %vm948_vm2, %v926_v57 }
 0x130   : > { %v480_v62 = vadd.f32 %v479_v59, %v9413_v52  ;;  %v481_v2 = vpop.f32.mrb[13].mxu0  ;;  %1002 = vmatpush1.bf16.msra.mxu0 %v950_v58  ;;  %v541_v3 = vadd.f32 %v540_v63, %v9413_v52  ;;  %v542_v8 = vpop.f32.mrb[13].mxu1  ;;  %1043 = vmatpush1.bf16.msra.mxu1 %v956_v60 }
 0x131   : > { %v482_v4 = vadd.f32 %v481_v2, %v9413_v52  ;;  %v483_v10 = vpop.f32.mrb[14].mxu0  ;;  %v543_v12 = vadd.f32 %v542_v8, %v9413_v52  ;;  %v544_v13 = vpop.f32.mrb[14].mxu1 }
 0x132   : > { %v484_v50 = vadd.f32 %v483_v10, %v9417_v55  ;;  %v485_v15 = vpop.f32.mrb[15].mxu0  ;;  %v545_v16 = vadd.f32 %v544_v13, %v9417_v55  ;;  %v546_v18 = vpop.f32.mrb[15].mxu1  ;;  %v815_v22 = vmax.f32 %v480_v62, 0.0  ;;  %v817_v26 = vmax.f32 %v541_v3, 0.0 }
 0x133   : > { %v486_v17 = vadd.f32 %v485_v15, %v9417_v55  ;;  %8619 = vmatmul.mubr.msk.bf16.vlgmr.msra.gmra.mrb[48].mxu0 %vm944_vm3, %v9448_v61  ;;  %v547_v24 = vadd.f32 %v546_v18, %v9417_v55  ;;  %8621 = vmatmul.mubr.msk.bf16.vlgmr.msra.gmra.mrb[48].mxu1 %vm944_vm3, %v9448_v61  ;;  %v816_v28 = vmax.f32 %v482_v4, 0.0  ;;  %v818_v35 = vmax.f32 %v543_v12, 0.0 }
 0x134   : > { %v831_v23 = vmax.f32 %v484_v50, 0.0  ;;  %1111 = vmatprep.mubr.bf16.mxu0 %v11336_v0  ;;  %v833_v30 = vmax.f32 %v545_v16, 0.0  ;;  %1152 = vmatprep.mubr.bf16.mxu1 %v11336_v0 }
 0x135   : > { %v832_v34 = vmax.f32 %v486_v17, 0.0  ;;  %v834_v39 = vmax.f32 %v547_v24, 0.0 }
 0x136   : > { %v895_v38 = vpack.c.bf16 %v831_v23, %v815_v22  ;;  %v897_v40 = vpack.c.bf16 %v833_v30, %v817_v26 }
 0x137   : > { %v489_v42 = vpop.f32.mrb[16].mxu0  ;;  %v896_v44 = vpack.c.bf16 %v832_v34, %v816_v28  ;;  %v550_v48 = vpop.f32.mrb[16].mxu1  ;;  %v898_v54 = vpack.c.bf16 %v834_v39, %v818_v35 }
 0x138   : > { %v490_v45 = vadd.f32 %v489_v42, %v9415_v53  ;;  %v491_v49 = vpop.f32.mrb[17].mxu0  ;;  %v551_v56 = vadd.f32 %v550_v48, %v9415_v53  ;;  %v552_v58 = vpop.f32.mrb[17].mxu1 }
 0x139   : > { %v492_v57 = vadd.f32 %v491_v49, %v9415_v53  ;;  %v493_v59 = vpop.f32.mrb[18].mxu0  ;;  %1079 = vmatprep.subr.bf16.mxu0 %v896_v44  ;;  %v553_v60 = vadd.f32 %v552_v58, %v9415_v53  ;;  %v554_v63 = vpop.f32.mrb[18].mxu1  ;;  %1120 = vmatprep.subr.bf16.mxu1 %v898_v54 }
 0x13a   : > { %v494_v62 = vadd.f32 %v493_v59, %v9427_v32  ;;  %v495_v2 = vpop.f32.mrb[19].mxu0  ;;  %1080 = vmatpush1.bf16.msra.mxu0 %v895_v38  ;;  %v555_v3 = vadd.f32 %v554_v63, %v9427_v32  ;;  %v556_v8 = vpop.f32.mrb[19].mxu1  ;;  %1121 = vmatpush1.bf16.msra.mxu1 %v897_v40  ;;  %v847_v10 = vmax.f32 %v490_v45, 0.0  ;;  %v849_v13 = vmax.f32 %v551_v56, 0.0 }
 0x13b   : > { %v496_v4 = vadd.f32 %v495_v2, %v9427_v32  ;;  %v557_v50 = vadd.f32 %v556_v8, %v9427_v32  ;;  %v848_v15 = vmax.f32 %v492_v57, 0.0  ;;  %v850_v18 = vmax.f32 %v553_v60, 0.0 }
 0x13c   : > { %v863_v12 = vmax.f32 %v494_v62, 0.0  ;;  %v865_v16 = vmax.f32 %v555_v3, 0.0 }
 0x13d   : > { %v864_v17 = vmax.f32 %v496_v4, 0.0  ;;  %v866_v23 = vmax.f32 %v557_v50, 0.0 }
 0x13e   : > { %v911_v22 = vpack.c.bf16 %v863_v12, %v847_v10  ;;  %v913_v24 = vpack.c.bf16 %v865_v16, %v849_v13 }
 0x13f   : > { %v499_v26 = vpop.f32.mrb[20].mxu0  ;;  %v912_v28 = vpack.c.bf16 %v864_v17, %v848_v15  ;;  %v560_v34 = vpop.f32.mrb[20].mxu1  ;;  %v914_v38 = vpack.c.bf16 %v866_v23, %v850_v18 }
 0x140   : > { %v500_v30 = vadd.f32 %v499_v26, %v9437_v9  ;;  %v501_v35 = vpop.f32.mrb[21].mxu0  ;;  %v561_v39 = vadd.f32 %v560_v34, %v9437_v9  ;;  %v562_v42 = vpop.f32.mrb[21].mxu1 }
 0x141   : > { %v502_v40 = vadd.f32 %v501_v35, %v9437_v9  ;;  %v503_v44 = vpop.f32.mrb[22].mxu0  ;;  %1081 = vmatprep.subr.bf16.mxu0 %v912_v28  ;;  %v563_v48 = vadd.f32 %v562_v42, %v9437_v9  ;;  %v564_v49 = vpop.f32.mrb[22].mxu1  ;;  %1122 = vmatprep.subr.bf16.mxu1 %v914_v38 }
 0x142   : > { %v879_v45 = vmax.f32 %v500_v30, 0.0  ;;  %v504_v54 = vpop.f32.mrb[23].mxu0  ;;  %1082 = vmatpush1.bf16.msra.mxu0 %v911_v22  ;;  %v881_v56 = vmax.f32 %v561_v39, 0.0  ;;  %v565_v58 = vpop.f32.mrb[23].mxu1  ;;  %1123 = vmatpush1.bf16.msra.mxu1 %v913_v24 }
 0x143   : > { %v880_v57 = vmax.f32 %v502_v40, 0.0  ;;  %v882_v60 = vmax.f32 %v563_v48, 0.0 }
 0x144   : > { %v927_v59 = vpack.c.bf16 %v879_v45, %v879_v45  ;;  %v929_v62 = vpack.c.bf16 %v881_v56, %v881_v56 }
 0x145   : > { %v928_v63 = vpack.c.bf16 %v880_v57, %v880_v57  ;;  %v930_v2 = vpack.c.bf16 %v882_v60, %v882_v60 }
 0x146   : > { %v962_v3 = vsel %vm948_vm2, %v927_v59, 0  ;;  %v968_v8 = vsel %vm948_vm2, %v929_v62, 0 }
 0x147   : > { %v601_v4 = vpop.f32.mrb[24].mxu0  ;;  %8622 = vmatprep.subr.msk.bf16.mxu0 %vm948_vm2, %v928_v63  ;;  %v662_v12 = vpop.f32.mrb[24].mxu1  ;;  %8624 = vmatprep.subr.msk.bf16.mxu1 %vm948_vm2, %v930_v2 }
 0x148   : > { %v602_v10 = vadd.f32 %v601_v4, %v9413_v52  ;;  %v603_v50 = vpop.f32.mrb[25].mxu0  ;;  %1084 = vmatpush1.bf16.msra.mxu0 %v962_v3  ;;  %v663_v13 = vadd.f32 %v662_v12, %v9413_v52  ;;  %v664_v16 = vpop.f32.mrb[25].mxu1  ;;  %1125 = vmatpush1.bf16.msra.mxu1 %v968_v8 }
 0x149   : > { %v604_v15 = vadd.f32 %v603_v50, %v9413_v52  ;;  %v605_v17 = vpop.f32.mrb[26].mxu0  ;;  %v665_v18 = vadd.f32 %v664_v16, %v9413_v52  ;;  %v666_v23 = vpop.f32.mrb[26].mxu1 }
 0x14a   : > { %v606_v22 = vadd.f32 %v605_v17, %v9417_v55  ;;  %v607_v24 = vpop.f32.mrb[27].mxu0  ;;  %v667_v26 = vadd.f32 %v666_v23, %v9417_v55  ;;  %v668_v30 = vpop.f32.mrb[27].mxu1  ;;  %v819_v34 = vmax.f32 %v602_v10, 0.0  ;;  %v821_v39 = vmax.f32 %v663_v13, 0.0 }
 0x14b   : > { %v608_v28 = vadd.f32 %v607_v24, %v9417_v55  ;;  %8623 = vmatmul.mubr.msk.bf16.vlgmr.msra.gmra.mrb[52].mxu0 %vm944_vm3, %v9448_v61  ;;  %v669_v38 = vadd.f32 %v668_v30, %v9417_v55  ;;  %8625 = vmatmul.mubr.msk.bf16.vlgmr.msra.gmra.mrb[52].mxu1 %vm944_vm3, %v9448_v61  ;;  %v820_v40 = vmax.f32 %v604_v15, 0.0  ;;  %v822_v45 = vmax.f32 %v665_v18, 0.0 }
 0x14c   : > { %v835_v35 = vmax.f32 %v606_v22, 0.0  ;;  %1193 = vmatprep.mubr.bf16.mxu0 %v11336_v0  ;;  %v837_v42 = vmax.f32 %v667_v26, 0.0  ;;  %1234 = vmatprep.mubr.bf16.mxu1 %v11336_v0 }
 0x14d   : > { %v836_v44 = vmax.f32 %v608_v28, 0.0  ;;  %v838_v49 = vmax.f32 %v669_v38, 0.0 }
 0x14e   : > { %v899_v48 = vpack.c.bf16 %v835_v35, %v819_v34  ;;  %v901_v54 = vpack.c.bf16 %v837_v42, %v821_v39 }
 0x14f   : > { %v611_v56 = vpop.f32.mrb[28].mxu0  ;;  %v900_v57 = vpack.c.bf16 %v836_v44, %v820_v40  ;;  %v672_v59 = vpop.f32.mrb[28].mxu1  ;;  %v902_v62 = vpack.c.bf16 %v838_v49, %v822_v45 }
 0x150   : > { %v612_v58 = vadd.f32 %v611_v56, %v9415_v53  ;;  %v613_v60 = vpop.f32.mrb[29].mxu0  ;;  %v673_v63 = vadd.f32 %v672_v59, %v9415_v53  ;;  %v674_v3 = vpop.f32.mrb[29].mxu1 }
 0x151   : > { %v614_v2 = vadd.f32 %v613_v60, %v9415_v53  ;;  %v615_v4 = vpop.f32.mrb[30].mxu0  ;;  %1161 = vmatprep.subr.bf16.mxu0 %v900_v57  ;;  %v675_v8 = vadd.f32 %v674_v3, %v9415_v53  ;;  %v676_v12 = vpop.f32.mrb[30].mxu1  ;;  %1202 = vmatprep.subr.bf16.mxu1 %v902_v62 }
 0x152   : > { %v616_v10 = vadd.f32 %v615_v4, %v9427_v32  ;;  %v617_v50 = vpop.f32.mrb[31].mxu0  ;;  %1162 = vmatpush1.bf16.msra.mxu0 %v899_v48  ;;  %v677_v13 = vadd.f32 %v676_v12, %v9427_v32  ;;  %v678_v16 = vpop.f32.mrb[31].mxu1  ;;  %1203 = vmatpush1.bf16.msra.mxu1 %v901_v54  ;;  %v851_v17 = vmax.f32 %v612_v58, 0.0  ;;  %v853_v23 = vmax.f32 %v673_v63, 0.0 }
 0x153   : > { %v618_v15 = vadd.f32 %v617_v50, %v9427_v32  ;;  %v679_v22 = vadd.f32 %v678_v16, %v9427_v32  ;;  %v852_v24 = vmax.f32 %v614_v2, 0.0  ;;  %v854_v30 = vmax.f32 %v675_v8, 0.0 }
 0x154   : > { %v867_v18 = vmax.f32 %v616_v10, 0.0  ;;  %v869_v26 = vmax.f32 %v677_v13, 0.0 }
 0x155   : > { %v868_v28 = vmax.f32 %v618_v15, 0.0  ;;  %v870_v35 = vmax.f32 %v679_v22, 0.0 }
 0x156   : > { %v915_v34 = vpack.c.bf16 %v867_v18, %v851_v17  ;;  %v917_v38 = vpack.c.bf16 %v869_v26, %v853_v23 }
 0x157   : > { %v621_v39 = vpop.f32.mrb[32].mxu0  ;;  %v916_v40 = vpack.c.bf16 %v868_v28, %v852_v24  ;;  %v682_v44 = vpop.f32.mrb[32].mxu1  ;;  %v918_v48 = vpack.c.bf16 %v870_v35, %v854_v30 }
 0x158   : > { %v622_v42 = vadd.f32 %v621_v39, %v9437_v9  ;;  %v623_v45 = vpop.f32.mrb[33].mxu0  ;;  %v683_v49 = vadd.f32 %v682_v44, %v9437_v9  ;;  %v684_v56 = vpop.f32.mrb[33].mxu1 }
 0x159   : > { %v624_v54 = vadd.f32 %v623_v45, %v9437_v9  ;;  %v625_v57 = vpop.f32.mrb[34].mxu0  ;;  %1163 = vmatprep.subr.bf16.mxu0 %v916_v40  ;;  %v685_v59 = vadd.f32 %v684_v56, %v9437_v9  ;;  %v686_v60 = vpop.f32.mrb[34].mxu1  ;;  %1204 = vmatprep.subr.bf16.mxu1 %v918_v48 }
 0x15a   : > { %v883_v58 = vmax.f32 %v622_v42, 0.0  ;;  %v626_v62 = vpop.f32.mrb[35].mxu0  ;;  %1164 = vmatpush1.bf16.msra.mxu0 %v915_v34  ;;  %v885_v63 = vmax.f32 %v683_v49, 0.0  ;;  %v687_v3 = vpop.f32.mrb[35].mxu1  ;;  %1205 = vmatpush1.bf16.msra.mxu1 %v917_v38 }
 0x15b   : > { %v884_v2 = vmax.f32 %v624_v54, 0.0  ;;  %v886_v8 = vmax.f32 %v685_v59, 0.0 }
 0x15c   : > { %v931_v4 = vpack.c.bf16 %v883_v58, %v883_v58  ;;  %v933_v10 = vpack.c.bf16 %v885_v63, %v885_v63 }
 0x15d   : > { %v932_v12 = vpack.c.bf16 %v884_v2, %v884_v2  ;;  %v934_v50 = vpack.c.bf16 %v886_v8, %v886_v8 }
 0x15e   : > { %v974_v13 = vsel %vm948_vm2, %v931_v4, 0  ;;  %v980_v16 = vsel %vm948_vm2, %v933_v10, 0 }
 0x15f   : > { %v723_v15 = vpop.f32.mrb[36].mxu0  ;;  %8626 = vmatprep.subr.msk.bf16.mxu0 %vm948_vm2, %v932_v12  ;;  %v784_v18 = vpop.f32.mrb[36].mxu1  ;;  %8628 = vmatprep.subr.msk.bf16.mxu1 %vm948_vm2, %v934_v50 }
 0x160   : > { %v724_v17 = vadd.f32 %v723_v15, %v9413_v52  ;;  %v725_v22 = vpop.f32.mrb[37].mxu0  ;;  %1166 = vmatpush1.bf16.msra.mxu0 %v974_v13  ;;  %v785_v23 = vadd.f32 %v784_v18, %v9413_v52  ;;  %v786_v26 = vpop.f32.mrb[37].mxu1  ;;  %1207 = vmatpush1.bf16.msra.mxu1 %v980_v16 }
 0x161   : > { %v726_v24 = vadd.f32 %v725_v22, %v9413_v52  ;;  %v727_v28 = vpop.f32.mrb[38].mxu0  ;;  %v787_v30 = vadd.f32 %v786_v26, %v9413_v52  ;;  %v788_v35 = vpop.f32.mrb[38].mxu1 }
 0x162   : > { %v728_v34 = vadd.f32 %v727_v28, %v9417_v55  ;;  %v729_v38 = vpop.f32.mrb[39].mxu0  ;;  %v789_v39 = vadd.f32 %v788_v35, %v9417_v55  ;;  %v790_v42 = vpop.f32.mrb[39].mxu1  ;;  %v823_v44 = vmax.f32 %v724_v17, 0.0  ;;  %v825_v49 = vmax.f32 %v785_v23, 0.0 }
 0x163   : > { %v730_v40 = vadd.f32 %v729_v38, %v9417_v55  ;;  %8627 = vmatmul.mubr.msk.bf16.vlgmr.msra.gmra.mrb[56].mxu0 %vm944_vm3, %v9448_v61  ;;  %v791_v48 = vadd.f32 %v790_v42, %v9417_v55  ;;  %8629 = vmatmul.mubr.msk.bf16.vlgmr.msra.gmra.mrb[56].mxu1 %vm944_vm3, %v9448_v61  ;;  %v824_v54 = vmax.f32 %v726_v24, 0.0  ;;  %v826_v58 = vmax.f32 %v787_v30, 0.0 }
 0x164   : > { %v839_v45 = vmax.f32 %v728_v34, 0.0  ;;  %1275 = vmatprep.mubr.bf16.mxu0 %v11336_v0  ;;  %v841_v56 = vmax.f32 %v789_v39, 0.0  ;;  %1316 = vmatprep.mubr.bf16.mxu1 %v11336_v0 }
 0x165   : > { %v840_v57 = vmax.f32 %v730_v40, 0.0  ;;  %v842_v60 = vmax.f32 %v791_v48, 0.0 }
 0x166   : > { %v903_v59 = vpack.c.bf16 %v839_v45, %v823_v44  ;;  %v905_v62 = vpack.c.bf16 %v841_v56, %v825_v49 }
 0x167   : > { %v733_v63 = vpop.f32.mrb[40].mxu0  ;;  %v904_v2 = vpack.c.bf16 %v840_v57, %v824_v54  ;;  %v794_v4 = vpop.f32.mrb[40].mxu1  ;;  %v906_v10 = vpack.c.bf16 %v842_v60, %v826_v58 }
 0x168   : > { %v734_v3 = vadd.f32 %v733_v63, %v9415_v53  ;;  %v735_v8 = vpop.f32.mrb[41].mxu0  ;;  %v795_v12 = vadd.f32 %v794_v4, %v9415_v53  ;;  %v796_v13 = vpop.f32.mrb[41].mxu1 }
 0x169   : > { %v736_v50 = vadd.f32 %v735_v8, %v9415_v53  ;;  %v737_v15 = vpop.f32.mrb[42].mxu0  ;;  %1243 = vmatprep.subr.bf16.mxu0 %v904_v2  ;;  %v797_v16 = vadd.f32 %v796_v13, %v9415_v53  ;;  %v798_v18 = vpop.f32.mrb[42].mxu1  ;;  %1284 = vmatprep.subr.bf16.mxu1 %v906_v10 }
 0x16a   : > { %v738_v17 = vadd.f32 %v737_v15, %v9427_v32  ;;  %v739_v22 = vpop.f32.mrb[43].mxu0  ;;  %1244 = vmatpush1.bf16.msra.mxu0 %v903_v59  ;;  %v799_v23 = vadd.f32 %v798_v18, %v9427_v32  ;;  %v800_v26 = vpop.f32.mrb[43].mxu1  ;;  %1285 = vmatpush1.bf16.msra.mxu1 %v905_v62  ;;  %v855_v28 = vmax.f32 %v734_v3, 0.0  ;;  %v857_v35 = vmax.f32 %v795_v12, 0.0 }
 0x16b   : > { %v740_v24 = vadd.f32 %v739_v22, %v9427_v32  ;;  %v801_v34 = vadd.f32 %v800_v26, %v9427_v32  ;;  %v856_v38 = vmax.f32 %v736_v50, 0.0  ;;  %v858_v42 = vmax.f32 %v797_v16, 0.0  ;;  %v9547_v26 = vpop.permute.xlu1 %941 }
 0x16c   : > { %v871_v30 = vmax.f32 %v738_v17, 0.0  ;;  %v873_v39 = vmax.f32 %v799_v23, 0.0 }
 0x16d   : > { %v872_v40 = vmax.f32 %v740_v24, 0.0  ;;  %v874_v45 = vmax.f32 %v801_v34, 0.0 }
 0x16e   : > { %v919_v44 = vpack.c.bf16 %v871_v30, %v855_v28  ;;  %v921_v48 = vpack.c.bf16 %v873_v39, %v857_v35 }
 0x16f   : > { %v743_v49 = vpop.f32.mrb[44].mxu0  ;;  %v920_v54 = vpack.c.bf16 %v872_v40, %v856_v38  ;;  %v804_v57 = vpop.f32.mrb[44].mxu1  ;;  %v922_v59 = vpack.c.bf16 %v874_v45, %v858_v42 }
 0x170   : > { %v744_v56 = vadd.f32 %v743_v49, %v9437_v9  ;;  %v745_v58 = vpop.f32.mrb[45].mxu0  ;;  %v805_v60 = vadd.f32 %v804_v57, %v9437_v9  ;;  %v806_v63 = vpop.f32.mrb[45].mxu1 }
 0x171   : > { %v746_v62 = vadd.f32 %v745_v58, %v9437_v9  ;;  %v747_v2 = vpop.f32.mrb[46].mxu0  ;;  %1245 = vmatprep.subr.bf16.mxu0 %v920_v54  ;;  %v807_v4 = vadd.f32 %v806_v63, %v9437_v9  ;;  %v808_v8 = vpop.f32.mrb[46].mxu1  ;;  %1286 = vmatprep.subr.bf16.mxu1 %v922_v59 }
 0x172   : > { %v887_v3 = vmax.f32 %v744_v56, 0.0  ;;  %v748_v10 = vpop.f32.mrb[47].mxu0  ;;  %1246 = vmatpush1.bf16.msra.mxu0 %v919_v44  ;;  %v889_v12 = vmax.f32 %v805_v60, 0.0  ;;  %v809_v13 = vpop.f32.mrb[47].mxu1  ;;  %1287 = vmatpush1.bf16.msra.mxu1 %v921_v48  ;;  %v171_v60 = vld [vmem:[%s11330_s1 + $0x30] sm:$0x7] }
 0x173   : > { %v888_v50 = vmax.f32 %v746_v62, 0.0  ;;  %v890_v16 = vmax.f32 %v807_v4, 0.0  ;;  %v9559_v8 = vpack.c.bf16 %v171_v60, %v171_v60  ;;  %v11335_v10 = vmov 8  }
 0x174   : > { %v935_v15 = vpack.c.bf16 %v887_v3, %v887_v3  ;;  %v937_v17 = vpack.c.bf16 %v889_v12, %v889_v12  ;;  %8973 = vset.pattern.permute.xlu0 %v11335_v10 }
 0x175   : > { %v936_v18 = vpack.c.bf16 %v888_v50, %v888_v50  ;;  %v938_v22 = vpack.c.bf16 %v890_v16, %v890_v16  ;;  %1359 = vperm.xlu0 %8973, %v171_v60  }
 0x176   : > { %v986_v23 = vsel %vm948_vm2, %v935_v15, 0  ;;  %v992_v24 = vsel %vm948_vm2, %v937_v17, 0 }
 0x177   : > { %8630 = vmatprep.subr.msk.bf16.mxu0 %vm948_vm2, %v936_v18  ;;  %8632 = vmatprep.subr.msk.bf16.mxu1 %vm948_vm2, %v938_v22 }
 0x178   : > { %1248 = vmatpush1.bf16.msra.mxu0 %v986_v23  ;;  %1289 = vmatpush1.bf16.msra.mxu1 %v992_v24 }
 0x179   : > { %8976 = vset.pattern.permute.xlu0 %v11333_v1 }
 0x17b   : > { %8631 = vmatmul.mubr.msk.bf16.vlgmr.msra.gmra.mrb[60].mxu0 %vm944_vm3, %v9448_v61  ;;  %8633 = vmatmul.mubr.msk.bf16.vlgmr.msra.gmra.mrb[60].mxu1 %vm944_vm3, %v9448_v61 }
 0x17c   : > { %1447 = vmatprep.mubr.bf16.mxu0 %v11336_v0  ;;  %1488 = vmatprep.mubr.bf16.mxu1 %v11336_v0 }
 0x206   : > { %v1031_v28 = vpop.f32.mrb[48].mxu0  ;;  %v1072_v30 = vpop.f32.mrb[48].mxu1 }
 0x207   : > { %v1033_v34 = vpop.f32.mrb[49].mxu0  ;;  %v1032_v35 = vadd.f32 %v1031_v28, %v9547_v26  ;;  %v1074_v38 = vpop.f32.mrb[49].mxu1  ;;  %v1073_v42 = vadd.f32 %v1072_v30, %v9547_v26 }
 0x208   : > { %v1035_v39 = vpop.f32.mrb[50].mxu0  ;;  %v1034_v40 = vadd.f32 %v1033_v34, %v9547_v26  ;;  %v1076_v44 = vpop.f32.mrb[50].mxu1  ;;  %v1075_v48 = vadd.f32 %v1074_v38, %v9547_v26 }
 0x209   : > { %v1036_v45 = vpop.f32.mrb[51].mxu0  ;;  %v1325_v49 = vmax.f32 %v1032_v35, 0.0  ;;  %v1077_v54 = vpop.f32.mrb[51].mxu1  ;;  %v1327_v57 = vmax.f32 %v1073_v42, 0.0 }
 0x20a   : > { %v1326_v56 = vmax.f32 %v1034_v40, 0.0  ;;  %v1328_v58 = vmax.f32 %v1075_v48, 0.0 }
 0x20b   : > { %v1341_v59 = vpack.c.bf16 %v1325_v49, %v1325_v49  ;;  %v1343_v63 = vpack.c.bf16 %v1327_v57, %v1327_v57 }
 0x20c   : > { %v1342_v62 = vpack.c.bf16 %v1326_v56, %v1326_v56  ;;  %v1344_v2 = vpack.c.bf16 %v1328_v58, %v1328_v58 }
 0x20d   : > { %v1368_v3 = vsel %vm1366_vm4, %v1341_v59, 0  ;;  %v1374_v4 = vsel %vm1366_vm4, %v1343_v63, 0 }
 0x20e   : > { %8634 = vmatprep.subr.msk.bf16.mxu0 %vm1366_vm4, %v1342_v62  ;;  %8636 = vmatprep.subr.msk.bf16.mxu1 %vm1366_vm4, %v1344_v2 }
 0x20f   : > { %1416 = vmatpush1.bf16.msra.mxu0 %v1368_v3  ;;  %1457 = vmatpush1.bf16.msra.mxu1 %v1374_v4 }
 0x212   : > { %8635 = vmatmul.mubr.msk.bf16.vlgmr.msra.gmra.mrb[64].mxu0 %vm1362_vm5, %v9559_v8  ;;  %8637 = vmatmul.mubr.msk.bf16.vlgmr.msra.gmra.mrb[64].mxu1 %vm1362_vm5, %v9559_v8 }
 0x213   : > { %1529 = vmatprep.mubr.bf16.mxu0 %v11336_v0  ;;  %1570 = vmatprep.mubr.bf16.mxu1 %v11336_v0 }
 0x21e   : > { %v1113_v12 = vpop.f32.mrb[52].mxu0  ;;  %v1154_v13 = vpop.f32.mrb[52].mxu1 }
 0x21f   : > { %v1114_v50 = vadd.f32 %v1113_v12, %v9547_v26  ;;  %v1115_v15 = vpop.f32.mrb[53].mxu0  ;;  %v1155_v16 = vadd.f32 %v1154_v13, %v9547_v26  ;;  %v1156_v18 = vpop.f32.mrb[53].mxu1 }
 0x220   : > { %v1116_v17 = vadd.f32 %v1115_v15, %v9547_v26  ;;  %v1117_v22 = vpop.f32.mrb[54].mxu0  ;;  %v1157_v24 = vadd.f32 %v1156_v18, %v9547_v26  ;;  %v1158_v28 = vpop.f32.mrb[54].mxu1 }
 0x221   : > { %v1329_v23 = vmax.f32 %v1114_v50, 0.0  ;;  %v1118_v30 = vpop.f32.mrb[55].mxu0  ;;  %v1331_v34 = vmax.f32 %v1155_v16, 0.0  ;;  %v1159_v38 = vpop.f32.mrb[55].mxu1 }
 0x222   : > { %v1330_v35 = vmax.f32 %v1116_v17, 0.0  ;;  %v1332_v40 = vmax.f32 %v1157_v24, 0.0 }
 0x223   : > { %v1345_v39 = vpack.c.bf16 %v1329_v23, %v1329_v23  ;;  %v1347_v42 = vpack.c.bf16 %v1331_v34, %v1331_v34 }
 0x224   : > { %v1346_v44 = vpack.c.bf16 %v1330_v35, %v1330_v35  ;;  %v1348_v45 = vpack.c.bf16 %v1332_v40, %v1332_v40 }
 0x225   : > { %v1380_v48 = vsel %vm1366_vm4, %v1345_v39, 0  ;;  %v1386_v49 = vsel %vm1366_vm4, %v1347_v42, 0 }
 0x226   : > { %8638 = vmatprep.subr.msk.bf16.mxu0 %vm1366_vm4, %v1346_v44  ;;  %8640 = vmatprep.subr.msk.bf16.mxu1 %vm1366_vm4, %v1348_v45 }
 0x227   : > { %1498 = vmatpush1.bf16.msra.mxu0 %v1380_v48  ;;  %1539 = vmatpush1.bf16.msra.mxu1 %v1386_v49 }
 0x22a   : > { %8639 = vmatmul.mubr.msk.bf16.vlgmr.msra.gmra.mrb[68].mxu0 %vm1362_vm5, %v9559_v8  ;;  %8641 = vmatmul.mubr.msk.bf16.vlgmr.msra.gmra.mrb[68].mxu1 %vm1362_vm5, %v9559_v8 }
 0x22b   : > { %1611 = vmatprep.mubr.bf16.mxu0 %v11336_v0  ;;  %1652 = vmatprep.mubr.bf16.mxu1 %v11336_v0 }
 0x236   : > { %v1195_v54 = vpop.f32.mrb[56].mxu0  ;;  %v1236_v57 = vpop.f32.mrb[56].mxu1 }
 0x237   : > { %v1196_v56 = vadd.f32 %v1195_v54, %v9547_v26  ;;  %v1197_v58 = vpop.f32.mrb[57].mxu0  ;;  %v1237_v59 = vadd.f32 %v1236_v57, %v9547_v26  ;;  %v1238_v62 = vpop.f32.mrb[57].mxu1 }
 0x238   : > { %v1198_v60 = vadd.f32 %v1197_v58, %v9547_v26  ;;  %v1199_v63 = vpop.f32.mrb[58].mxu0  ;;  %v1239_v3 = vadd.f32 %v1238_v62, %v9547_v26  ;;  %v1240_v4 = vpop.f32.mrb[58].mxu1 }
 0x239   : > { %v1333_v2 = vmax.f32 %v1196_v56, 0.0  ;;  %v1200_v12 = vpop.f32.mrb[59].mxu0  ;;  %v1335_v50 = vmax.f32 %v1237_v59, 0.0  ;;  %v1241_v15 = vpop.f32.mrb[59].mxu1 }
 0x23a   : > { %v1334_v13 = vmax.f32 %v1198_v60, 0.0  ;;  %v1336_v17 = vmax.f32 %v1239_v3, 0.0  ;;  %v1791_v3 = vrot.slane %v9239_v7, 1 }
 0x23b   : > { %v1349_v16 = vpack.c.bf16 %v1333_v2, %v1333_v2  ;;  %v1351_v18 = vpack.c.bf16 %v1335_v50, %v1335_v50  ;;  %v1792_v2 = vrot.slane %v9235_v5, 1  ;;  %v1794_v50 = vrot.slane %v9237_v6, 1 }
 0x23c   : > { %v1350_v22 = vpack.c.bf16 %v1334_v13, %v1334_v13  ;;  %v1352_v23 = vpack.c.bf16 %v1336_v17, %v1336_v17  ;;  %v1793_v13 = vrot.slane %v9248_v11, 1 }
 0x23d   : > { %v1392_v24 = vsel %vm1366_vm4, %v1349_v16, 0  ;;  %v1398_v28 = vsel %vm1366_vm4, %v1351_v18, 0  ;;  %v1808_v16 = vsel %vm274_vm0, %v1791_v3, 0  ;;  %v1796_v18 = vrot.slane %v9266_v19, 1 }
 0x23e   : > { %8642 = vmatprep.subr.msk.bf16.mxu0 %vm1366_vm4, %v1350_v22  ;;  %8644 = vmatprep.subr.msk.bf16.mxu1 %vm1366_vm4, %v1352_v23  ;;  %v1814_v17 = vsel %vm274_vm0, %v1793_v13, 0  ;;  %v1798_v22 = vrot.slane %v9268_v20, 1  ;;  %v1795_v23 = vrot.slane %v9270_v21, 1 }
 0x23f   : > { %1580 = vmatpush1.bf16.msra.mxu0 %v1392_v24  ;;  %1621 = vmatpush1.bf16.msra.mxu1 %v1398_v28  ;;  %v1797_v24 = vrot.slane %v9275_v25, 1 }
 0x240   : > { %v1820_v28 = vsel %vm274_vm0, %v1795_v23, 0 }
 0x242   : > { %8643 = vmatmul.mubr.msk.bf16.vlgmr.msra.gmra.mrb[72].mxu0 %vm1362_vm5, %v9559_v8  ;;  %8645 = vmatmul.mubr.msk.bf16.vlgmr.msra.gmra.mrb[72].mxu1 %vm1362_vm5, %v9559_v8 }
 0x243   : > { %1693 = vmatprep.mubr.bf16.mxu0 %v11336_v0  ;;  %1734 = vmatprep.mubr.bf16.mxu1 %v11336_v0 }
 0x24e   : > { %v1277_v30 = vpop.f32.mrb[60].mxu0  ;;  %v1318_v35 = vpop.f32.mrb[60].mxu1 }
 0x24f   : > { %v1278_v34 = vadd.f32 %v1277_v30, %v9547_v26  ;;  %v1279_v38 = vpop.f32.mrb[61].mxu0  ;;  %v1319_v39 = vadd.f32 %v1318_v35, %v9547_v26  ;;  %v1320_v42 = vpop.f32.mrb[61].mxu1  ;;  %v1800_v30 = vrot.slane %v9283_v27, 1  ;;  %v1802_v35 = vrot.slane %v9289_v29, 1 }
 0x250   : > { %v1280_v40 = vadd.f32 %v1279_v38, %v9547_v26  ;;  %v1281_v44 = vpop.f32.mrb[62].mxu0  ;;  %v1321_v48 = vadd.f32 %v1320_v42, %v9547_v26  ;;  %v1322_v49 = vpop.f32.mrb[62].mxu1  ;;  %v1799_v38 = vrot.slane %v9323_v36, 1  ;;  %v1804_v42 = vrot.slane %v9331_v41, 1 }
 0x251   : > { %v1337_v45 = vmax.f32 %v1278_v34, 0.0  ;;  %v1282_v54 = vpop.f32.mrb[63].mxu0  ;;  %v1339_v56 = vmax.f32 %v1319_v39, 0.0  ;;  %v1323_v58 = vpop.f32.mrb[63].mxu1  ;;  %v1826_v34 = vsel %vm274_vm0, %v1797_v24, 0  ;;  %v1801_v39 = vrot.slane %v9325_v37, 1 }
 0x252   : > { %v1338_v57 = vmax.f32 %v1280_v40, 0.0  ;;  %v1340_v60 = vmax.f32 %v1321_v48, 0.0  ;;  %v1832_v40 = vsel %vm274_vm0, %v1799_v38, 0  ;;  %v1803_v48 = vrot.slane %v9361_v46, 1 }
 0x253   : > { %v1353_v59 = vpack.c.bf16 %v1337_v45, %v1337_v45  ;;  %v1355_v62 = vpack.c.bf16 %v1339_v56, %v1339_v56  ;;  %v1838_v44 = vsel %vm274_vm0, %v1801_v39, 0  ;;  %v1806_v45 = vrot.slane %v9337_v43, 1 }
 0x254   : > { %v1354_v63 = vpack.c.bf16 %v1338_v57, %v1338_v57  ;;  %v1356_v4 = vpack.c.bf16 %v1340_v60, %v1340_v60  ;;  %v1805_v49 = vrot.slane %v9363_v47, 1  ;;  %v1844_v54 = vsel %vm274_vm0, %v1803_v48, 0 }
 0x255   : > { %v1404_v12 = vsel %vm1366_vm4, %v1353_v59, 0  ;;  %v1410_v15 = vsel %vm1366_vm4, %v1355_v62, 0 }
 0x256   : > { %8646 = vmatprep.subr.msk.bf16.mxu0 %vm1366_vm4, %v1354_v63  ;;  %8648 = vmatprep.subr.msk.bf16.mxu1 %vm1366_vm4, %v1356_v4  ;;  %v1850_v56 = vsel %vm274_vm0, %v1805_v49, 0 }
 0x257   : > { %1662 = vmatpush1.bf16.msra.mxu0 %v1404_v12  ;;  %1703 = vmatpush1.bf16.msra.mxu1 %v1410_v15 }
 0x258   : > { %8650 = vmatprep.subr.msk.bf16.mxu0 %vm274_vm0, %v1792_v2  ;;  %8654 = vmatprep.subr.msk.bf16.mxu1 %vm274_vm0, %v1794_v50 }
 0x25a   : > { %8647 = vmatmul.mubr.msk.bf16.vlgmr.msra.gmra.mrb[76].mxu0 %vm1362_vm5, %v9559_v8  ;;  %8649 = vmatmul.mubr.msk.bf16.vlgmr.msra.gmra.mrb[76].mxu1 %vm1362_vm5, %v9559_v8 }
 0x25b   : > { %1856 = vmatpush1.bf16.msra.mxu0 %v1808_v16  ;;  %1917 = vmatpush1.bf16.msra.mxu1 %v1814_v17 }
 0x25c   : > { %1887 = vmatprep.mubr.bf16.mxu0 %v11336_v0  ;;  %1948 = vmatprep.mubr.bf16.mxu1 %v11336_v0 }
 0x25d   : > { %8658 = vmatprep.subr.msk.bf16.mxu0 %vm274_vm0, %v1796_v18  ;;  %8662 = vmatprep.subr.msk.bf16.mxu1 %vm274_vm0, %v1798_v22 }
 0x262   : > { %8651 = vmatmul.mubr.msk.bf16.vlgmr.msra.gmra.mrb[80].mxu0 %vm264_vm1, %v9259_v14  ;;  %8655 = vmatmul.mubr.msk.bf16.vlgmr.msra.gmra.mrb[80].mxu1 %vm264_vm1, %v9259_v14 }
 0x263   : > { %1897 = vmatprep.mubr.bf16.mxu0 %v11336_v0  ;;  %1958 = vmatprep.mubr.bf16.mxu1 %v11336_v0 }
 0x264   : > { %1978 = vmatpush1.bf16.msra.mxu0 %v1820_v28  ;;  %2039 = vmatpush1.bf16.msra.mxu1 %v1826_v34 }
 0x265   : > { %8666 = vmatprep.subr.msk.bf16.mxu0 %vm274_vm0, %v1800_v30  ;;  %8670 = vmatprep.subr.msk.bf16.mxu1 %vm274_vm0, %v1802_v35 }
 0x26a   : > { %8652 = vmatmul.mubr.msk.bf16.gmra.mrb[84].mxu0 %vm264_vm1, %v9300_v31  ;;  %8656 = vmatmul.mubr.msk.bf16.gmra.mrb[84].mxu1 %vm264_vm1, %v9300_v31 }
 0x26b   : > { %1907 = vmatprep.mubr.bf16.mxu0 %v11336_v0  ;;  %1968 = vmatprep.mubr.bf16.mxu1 %v11336_v0 }
 0x272   : > { %8653 = vmatmul.mubr.msk.bf16.gmra.mrb[88].mxu0 %vm264_vm1, %v9313_v33  ;;  %8657 = vmatmul.mubr.msk.bf16.gmra.mrb[88].mxu1 %vm264_vm1, %v9313_v33 }
 0x273   : > { %2009 = vmatprep.mubr.bf16.mxu0 %v11336_v0  ;;  %2070 = vmatprep.mubr.bf16.mxu1 %v11336_v0 }
 0x27a   : > { %8659 = vmatmul.mubr.msk.bf16.vlgmr.msra.gmra.mrb[92].mxu0 %vm264_vm1, %v9259_v14  ;;  %8663 = vmatmul.mubr.msk.bf16.vlgmr.msra.gmra.mrb[92].mxu1 %vm264_vm1, %v9259_v14 }
 0x27b   : > { %2019 = vmatprep.mubr.bf16.mxu0 %v11336_v0  ;;  %2080 = vmatprep.mubr.bf16.mxu1 %v11336_v0 }
 0x27c   : > { %2100 = vmatpush1.bf16.msra.mxu0 %v1832_v40  ;;  %2161 = vmatpush1.bf16.msra.mxu1 %v1838_v44 }
 0x27d   : > { %8674 = vmatprep.subr.msk.bf16.mxu0 %vm274_vm0, %v1804_v42  ;;  %8678 = vmatprep.subr.msk.bf16.mxu1 %vm274_vm0, %v1806_v45 }
 0x282   : > { %8660 = vmatmul.mubr.msk.bf16.gmra.mrb[96].mxu0 %vm264_vm1, %v9300_v31  ;;  %8664 = vmatmul.mubr.msk.bf16.gmra.mrb[96].mxu1 %vm264_vm1, %v9300_v31 }
 0x283   : > { %2029 = vmatprep.mubr.bf16.mxu0 %v11336_v0  ;;  %2090 = vmatprep.mubr.bf16.mxu1 %v11336_v0 }
 0x28a   : > { %8661 = vmatmul.mubr.msk.bf16.gmra.mrb[100].mxu0 %vm264_vm1, %v9313_v33  ;;  %8665 = vmatmul.mubr.msk.bf16.gmra.mrb[100].mxu1 %vm264_vm1, %v9313_v33 }
 0x28b   : > { %2131 = vmatprep.mubr.bf16.mxu0 %v11336_v0  ;;  %2192 = vmatprep.mubr.bf16.mxu1 %v11336_v0 }
 0x292   : > { %8667 = vmatmul.mubr.msk.bf16.vlgmr.msra.gmra.mrb[104].mxu0 %vm264_vm1, %v9259_v14  ;;  %8671 = vmatmul.mubr.msk.bf16.vlgmr.msra.gmra.mrb[104].mxu1 %vm264_vm1, %v9259_v14 }
 0x293   : > { %2141 = vmatprep.mubr.bf16.mxu0 %v11336_v0  ;;  %2202 = vmatprep.mubr.bf16.mxu1 %v11336_v0 }
 0x294   : > { %2222 = vmatpush1.bf16.msra.mxu0 %v1844_v54  ;;  %2283 = vmatpush1.bf16.msra.mxu1 %v1850_v56 }
 0x29a   : > { %8668 = vmatmul.mubr.msk.bf16.gmra.mrb[108].mxu0 %vm264_vm1, %v9300_v31  ;;  %8672 = vmatmul.mubr.msk.bf16.gmra.mrb[108].mxu1 %vm264_vm1, %v9300_v31 }
 0x29b   : > { %2151 = vmatprep.mubr.bf16.mxu0 %v11336_v0  ;;  %2212 = vmatprep.mubr.bf16.mxu1 %v11336_v0 }
 0x2a2   : > { %8669 = vmatmul.mubr.msk.bf16.gmra.mrb[112].mxu0 %vm264_vm1, %v9313_v33  ;;  %8673 = vmatmul.mubr.msk.bf16.gmra.mrb[112].mxu1 %vm264_vm1, %v9313_v33 }
 0x2a3   : > { %2253 = vmatprep.mubr.bf16.mxu0 %v11336_v0  ;;  %2314 = vmatprep.mubr.bf16.mxu1 %v11336_v0 }
 0x2aa   : > { %8675 = vmatmul.mubr.msk.bf16.vlgmr.msra.gmra.mrb[116].mxu0 %vm264_vm1, %v9259_v14  ;;  %8679 = vmatmul.mubr.msk.bf16.vlgmr.msra.gmra.mrb[116].mxu1 %vm264_vm1, %v9259_v14 }
 0x2ab   : > { %2263 = vmatprep.mubr.bf16.mxu0 %v11336_v0  ;;  %2324 = vmatprep.mubr.bf16.mxu1 %v11336_v0 }
 0x2b2   : > { %8676 = vmatmul.mubr.msk.bf16.gmra.mrb[120].mxu0 %vm264_vm1, %v9300_v31  ;;  %8680 = vmatmul.mubr.msk.bf16.gmra.mrb[120].mxu1 %vm264_vm1, %v9300_v31 }
 0x2b3   : > { %2273 = vmatprep.mubr.bf16.mxu0 %v11336_v0  ;;  %2334 = vmatprep.mubr.bf16.mxu1 %v11336_v0 }
 0x2ba   : > { %8677 = vmatmul.mubr.msk.bf16.gmra.mrb[124].mxu0 %vm264_vm1, %v9313_v33  ;;  %8681 = vmatmul.mubr.msk.bf16.gmra.mrb[124].mxu1 %vm264_vm1, %v9313_v33 }
 0x2bb   : > { %2551 = vmatprep.mubr.bf16.mxu0 %v11336_v0  ;;  %2592 = vmatprep.mubr.bf16.mxu1 %v11336_v0 }
 0x2e5   : > { %v9716_v57 = vpop.f32.mrb[64].mxu0  ;;  %v9718_v58 = vpop.f32.mrb[64].mxu1 }
 0x2e6   : > { %v9720_v59 = vpop.f32.mrb[65].mxu0  ;;  %v9722_v60 = vpop.f32.mrb[65].mxu1 }
 0x2e7   : > { %v1453_v62 = vpop.f32.mrb[66].mxu0  ;;  %v1494_v63 = vpop.f32.mrb[66].mxu1 }
 0x2e8   : > { %v1454_v2 = vpop.f32.mrb[67].mxu0  ;;  %v1495_v3 = vpop.f32.mrb[67].mxu1 }
 0x2fd   : > { %v9724_v4 = vpop.f32.mrb[68].mxu0  ;;  %v9726_v12 = vpop.f32.mrb[68].mxu1 }
 0x2fe   : > { %v9728_v50 = vpop.f32.mrb[69].mxu0  ;;  %v9730_v13 = vpop.f32.mrb[69].mxu1 }
 0x2ff   : > { %v1535_v15 = vpop.f32.mrb[70].mxu0  ;;  %v1576_v16 = vpop.f32.mrb[70].mxu1 }
 0x300   : > { %v1536_v17 = vpop.f32.mrb[71].mxu0  ;;  %v1577_v18 = vpop.f32.mrb[71].mxu1 }
 0x315   : > { %v9732_v22 = vpop.f32.mrb[72].mxu0  ;;  %v9734_v23 = vpop.f32.mrb[72].mxu1 }
 0x316   : > { %v9736_v24 = vpop.f32.mrb[73].mxu0  ;;  %v9738_v28 = vpop.f32.mrb[73].mxu1 }
 0x317   : > { %11344 = vst [vmem:[#allocation8_spill] sm:$0xff] %v9736_v24  ;;  %11345 = vst [vmem:[#allocation9_spill] sm:$0xff] %v9738_v28  ;;  %v1617_v30 = vpop.f32.mrb[74].mxu0  ;;  %v1658_v34 = vpop.f32.mrb[74].mxu1 }
 0x318   : > { %v1618_v35 = vpop.f32.mrb[75].mxu0  ;;  %v1659_v38 = vpop.f32.mrb[75].mxu1 }
 0x32d   : > { %v9740_v39 = vpop.f32.mrb[76].mxu0  ;;  %v9742_v40 = vpop.f32.mrb[76].mxu1 }
 0x32e   : > { %11346 = vst [vmem:[#allocation10_spill] sm:$0xff] %v9740_v39  ;;  %11347 = vst [vmem:[#allocation11_spill] sm:$0xff] %v9742_v40  ;;  %v9744_v42 = vpop.f32.mrb[77].mxu0  ;;  %v9746_v44 = vpop.f32.mrb[77].mxu1 }
 0x32f   : > { %11348 = vst [vmem:[#allocation12_spill] sm:$0xff] %v9744_v42  ;;  %11349 = vst [vmem:[#allocation13_spill] sm:$0xff] %v9746_v44  ;;  %v1699_v45 = vpop.f32.mrb[78].mxu0  ;;  %v1740_v48 = vpop.f32.mrb[78].mxu1 }
 0x330   : > { %v1700_v49 = vpop.f32.mrb[79].mxu0  ;;  %v1741_v54 = vpop.f32.mrb[79].mxu1 }
 0x335   : > { %v1889_v56 = vpop.f32.mrb[80].mxu0  ;;  %v1950_v63 = vpop.f32.mrb[80].mxu1 }
 0x336   : > { %v1890_v62 = vadd.f32 %v1889_v56, %v9413_v52  ;;  %v1891_v2 = vpop.f32.mrb[81].mxu0  ;;  %v1951_v3 = vadd.f32 %v1950_v63, %v9413_v52  ;;  %v1952_v16 = vpop.f32.mrb[81].mxu1 }
 0x337   : > { %v1892_v15 = vadd.f32 %v1891_v2, %v9413_v52  ;;  %v1893_v17 = vpop.f32.mrb[82].mxu0  ;;  %v1953_v18 = vadd.f32 %v1952_v16, %v9413_v52  ;;  %v1954_v34 = vpop.f32.mrb[82].mxu1 }
 0x338   : > { %v1894_v30 = vadd.f32 %v1893_v17, %v9417_v55  ;;  %v1895_v35 = vpop.f32.mrb[83].mxu0  ;;  %v1955_v38 = vadd.f32 %v1954_v34, %v9417_v55  ;;  %v1956_v48 = vpop.f32.mrb[83].mxu1  ;;  %v2343_v49 = vmax.f32 %v1890_v62, 0.0  ;;  %v2345_v63 = vmax.f32 %v1951_v3, 0.0 }
 0x339   : > { %v1896_v45 = vadd.f32 %v1895_v35, %v9417_v55  ;;  %v1957_v56 = vadd.f32 %v1956_v48, %v9417_v55  ;;  %v2344_v1 = vmax.f32 %v1892_v15, 0.0  ;;  %v2346_v10 = vmax.f32 %v1953_v18, 0.0 }
 0x33a   : > { %v2359_v54 = vmax.f32 %v1894_v30, 0.0  ;;  %v2361_v2 = vmax.f32 %v1955_v38, 0.0 }
 0x33b   : > { %v2360_v51 = vmax.f32 %v1896_v45, 0.0  ;;  %v2362_v16 = vmax.f32 %v1957_v56, 0.0 }
 0x33c   : > { %v2423_v0 = vpack.c.bf16 %v2359_v54, %v2343_v49  ;;  %v2425_v44 = vpack.c.bf16 %v2361_v2, %v2345_v63 }
 0x33d   : > { %v1899_v17 = vpop.f32.mrb[84].mxu0  ;;  %v2424_v42 = vpack.c.bf16 %v2360_v51, %v2344_v1  ;;  %v1960_v34 = vpop.f32.mrb[84].mxu1  ;;  %v2426_v35 = vpack.c.bf16 %v2362_v16, %v2346_v10 }
 0x33e   : > { %v1900_v40 = vadd.f32 %v1899_v17, %v9415_v53  ;;  %v1901_v39 = vpop.f32.mrb[85].mxu0  ;;  %v1961_v62 = vadd.f32 %v1960_v34, %v9415_v53  ;;  %v1962_v48 = vpop.f32.mrb[85].mxu1 }
 0x33f   : > { %v1902_v30 = vadd.f32 %v1901_v39, %v9415_v53  ;;  %v1903_v3 = vpop.f32.mrb[86].mxu0  ;;  %2519 = vmatprep.subr.bf16.mxu0 %v2424_v42  ;;  %v1963_v15 = vadd.f32 %v1962_v48, %v9415_v53  ;;  %v1964_v38 = vpop.f32.mrb[86].mxu1  ;;  %2560 = vmatprep.subr.bf16.mxu1 %v2426_v35 }
 0x340   : > { %v1904_v18 = vadd.f32 %v1903_v3, %v9427_v32  ;;  %v1905_v45 = vpop.f32.mrb[87].mxu0  ;;  %2520 = vmatpush1.bf16.msra.mxu0 %v2423_v0  ;;  %v1965_v1 = vadd.f32 %v1964_v38, %v9427_v32  ;;  %v1966_v10 = vpop.f32.mrb[87].mxu1  ;;  %2561 = vmatpush1.bf16.msra.mxu1 %v2425_v44  ;;  %v2375_v49 = vmax.f32 %v1900_v40, 0.0  ;;  %v2377_v56 = vmax.f32 %v1961_v62, 0.0 }
 0x341   : > { %v1906_v51 = vadd.f32 %v1905_v45, %v9427_v32  ;;  %v1967_v39 = vadd.f32 %v1966_v10, %v9427_v32  ;;  %v2376_v42 = vmax.f32 %v1902_v30, 0.0  ;;  %v2378_v16 = vmax.f32 %v1963_v15, 0.0 }
 0x342   : > { %v2391_v54 = vmax.f32 %v1904_v18, 0.0  ;;  %v2393_v63 = vmax.f32 %v1965_v1, 0.0 }
 0x343   : > { %v2392_v2 = vmax.f32 %v1906_v51, 0.0  ;;  %v2394_v34 = vmax.f32 %v1967_v39, 0.0 }
 0x344   : > { %v2439_v17 = vpack.c.bf16 %v2391_v54, %v2375_v49  ;;  %v2441_v35 = vpack.c.bf16 %v2393_v63, %v2377_v56 }
 0x345   : > { %v1909_v48 = vpop.f32.mrb[88].mxu0  ;;  %v2440_v0 = vpack.c.bf16 %v2392_v2, %v2376_v42  ;;  %v1970_v38 = vpop.f32.mrb[88].mxu1  ;;  %v2442_v28 = vpack.c.bf16 %v2394_v34, %v2378_v16 }
 0x346   : > { %v1910_v3 = vadd.f32 %v1909_v48, %v9437_v9  ;;  %v1911_v45 = vpop.f32.mrb[89].mxu0  ;;  %v1971_v40 = vadd.f32 %v1970_v38, %v9437_v9  ;;  %v1972_v18 = vpop.f32.mrb[89].mxu1 }
 0x347   : > { %v1912_v44 = vadd.f32 %v1911_v45, %v9437_v9  ;;  %v1913_v62 = vpop.f32.mrb[90].mxu0  ;;  %2521 = vmatprep.subr.bf16.mxu0 %v2440_v0  ;;  %v1973_v15 = vadd.f32 %v1972_v18, %v9437_v9  ;;  %v1974_v1 = vpop.f32.mrb[90].mxu1  ;;  %2562 = vmatprep.subr.bf16.mxu1 %v2442_v28 }
 0x348   : > { %v2407_v30 = vmax.f32 %v1910_v3, 0.0  ;;  %v1914_v51 = vpop.f32.mrb[91].mxu0  ;;  %2522 = vmatpush1.bf16.msra.mxu0 %v2439_v17  ;;  %v2409_v10 = vmax.f32 %v1971_v40, 0.0  ;;  %v1975_v54 = vpop.f32.mrb[91].mxu1  ;;  %2563 = vmatpush1.bf16.msra.mxu1 %v2441_v35 }
 0x349   : > { %v2408_v49 = vmax.f32 %v1912_v44, 0.0  ;;  %v2410_v56 = vmax.f32 %v1973_v15, 0.0  ;;  %v11350_v54 = vmov 0  }
 0x34a   : > { %v2455_v39 = vpack.c.bf16 %v2407_v30, %v2407_v30  ;;  %v2457_v42 = vpack.c.bf16 %v2409_v10, %v2409_v10 }
 0x34b   : > { %v2456_v63 = vpack.c.bf16 %v2408_v49, %v2408_v49  ;;  %v2458_v2 = vpack.c.bf16 %v2410_v56, %v2410_v56 }
 0x34c   : > { %v2472_v16 = vsel %vm948_vm2, %v2455_v39, 0  ;;  %v2478_v48 = vsel %vm948_vm2, %v2457_v42, 0 }
 0x34d   : > { %v2011_v34 = vpop.f32.mrb[92].mxu0  ;;  %8682 = vmatprep.subr.msk.bf16.mxu0 %vm948_vm2, %v2456_v63  ;;  %v2072_v0 = vpop.f32.mrb[92].mxu1  ;;  %8684 = vmatprep.subr.msk.bf16.mxu1 %vm948_vm2, %v2458_v2 }
 0x34e   : > { %v2012_v28 = vadd.f32 %v2011_v34, %v9413_v52  ;;  %v2013_v17 = vpop.f32.mrb[93].mxu0  ;;  %2524 = vmatpush1.bf16.msra.mxu0 %v2472_v16  ;;  %v2073_v35 = vadd.f32 %v2072_v0, %v9413_v52  ;;  %v2074_v38 = vpop.f32.mrb[93].mxu1  ;;  %2565 = vmatpush1.bf16.msra.mxu1 %v2478_v48 }
 0x34f   : > { %v2014_v3 = vadd.f32 %v2013_v17, %v9413_v52  ;;  %v2015_v45 = vpop.f32.mrb[94].mxu0  ;;  %v2075_v40 = vadd.f32 %v2074_v38, %v9413_v52  ;;  %v2076_v18 = vpop.f32.mrb[94].mxu1 }
 0x350   : > { %v2016_v44 = vadd.f32 %v2015_v45, %v9417_v55  ;;  %v2017_v62 = vpop.f32.mrb[95].mxu0  ;;  %v2077_v30 = vadd.f32 %v2076_v18, %v9417_v55  ;;  %v2078_v1 = vpop.f32.mrb[95].mxu1  ;;  %v2347_v51 = vmax.f32 %v2012_v28, 0.0  ;;  %v2349_v39 = vmax.f32 %v2073_v35, 0.0 }
 0x351   : > { %v2018_v15 = vadd.f32 %v2017_v62, %v9417_v55  ;;  %8683 = vmatmul.mubr.msk.bf16.vlgmr.msra.gmra.mrb[128].mxu0 %vm944_vm3, %v9448_v61  ;;  %v2079_v49 = vadd.f32 %v2078_v1, %v9417_v55  ;;  %8685 = vmatmul.mubr.msk.bf16.vlgmr.msra.gmra.mrb[128].mxu1 %vm944_vm3, %v9448_v61  ;;  %v2348_v56 = vmax.f32 %v2014_v3, 0.0  ;;  %v2350_v2 = vmax.f32 %v2075_v40, 0.0 }
 0x352   : > { %v2363_v10 = vmax.f32 %v2016_v44, 0.0  ;;  %2633 = vmatprep.mubr.bf16.mxu0 %v11350_v54  ;;  %v2365_v42 = vmax.f32 %v2077_v30, 0.0  ;;  %2674 = vmatprep.mubr.bf16.mxu1 %v11350_v54 }
 0x353   : > { %v2364_v63 = vmax.f32 %v2018_v15, 0.0  ;;  %v2366_v34 = vmax.f32 %v2079_v49, 0.0 }
 0x354   : > { %v2427_v16 = vpack.c.bf16 %v2363_v10, %v2347_v51  ;;  %v2429_v48 = vpack.c.bf16 %v2365_v42, %v2349_v39 }
 0x355   : > { %v2021_v0 = vpop.f32.mrb[96].mxu0  ;;  %v2428_v28 = vpack.c.bf16 %v2364_v63, %v2348_v56  ;;  %v2082_v38 = vpop.f32.mrb[96].mxu1  ;;  %v2430_v44 = vpack.c.bf16 %v2366_v34, %v2350_v2 }
 0x356   : > { %v2022_v17 = vadd.f32 %v2021_v0, %v9415_v53  ;;  %v2023_v45 = vpop.f32.mrb[97].mxu0  ;;  %v2083_v18 = vadd.f32 %v2082_v38, %v9415_v53  ;;  %v2084_v3 = vpop.f32.mrb[97].mxu1 }
 0x357   : > { %v2024_v35 = vadd.f32 %v2023_v45, %v9415_v53  ;;  %v2025_v62 = vpop.f32.mrb[98].mxu0  ;;  %2601 = vmatprep.subr.bf16.mxu0 %v2428_v28  ;;  %v2085_v30 = vadd.f32 %v2084_v3, %v9415_v53  ;;  %v2086_v15 = vpop.f32.mrb[98].mxu1  ;;  %2642 = vmatprep.subr.bf16.mxu1 %v2430_v44 }
 0x358   : > { %v2026_v40 = vadd.f32 %v2025_v62, %v9427_v32  ;;  %v2027_v1 = vpop.f32.mrb[99].mxu0  ;;  %2602 = vmatpush1.bf16.msra.mxu0 %v2427_v16  ;;  %v2087_v51 = vadd.f32 %v2086_v15, %v9427_v32  ;;  %v2088_v49 = vpop.f32.mrb[99].mxu1  ;;  %2643 = vmatpush1.bf16.msra.mxu1 %v2429_v48  ;;  %v2379_v39 = vmax.f32 %v2022_v17, 0.0  ;;  %v2381_v63 = vmax.f32 %v2083_v18, 0.0 }
 0x359   : > { %v2028_v10 = vadd.f32 %v2027_v1, %v9427_v32  ;;  %v2089_v42 = vadd.f32 %v2088_v49, %v9427_v32  ;;  %v2380_v2 = vmax.f32 %v2024_v35, 0.0  ;;  %v2382_v28 = vmax.f32 %v2085_v30, 0.0 }
 0x35a   : > { %v2395_v56 = vmax.f32 %v2026_v40, 0.0  ;;  %v2397_v34 = vmax.f32 %v2087_v51, 0.0 }
 0x35b   : > { %v2396_v0 = vmax.f32 %v2028_v10, 0.0  ;;  %v2398_v45 = vmax.f32 %v2089_v42, 0.0 }
 0x35c   : > { %v2443_v38 = vpack.c.bf16 %v2395_v56, %v2379_v39  ;;  %v2445_v44 = vpack.c.bf16 %v2397_v34, %v2381_v63 }
 0x35d   : > { %v2031_v3 = vpop.f32.mrb[100].mxu0  ;;  %v2444_v16 = vpack.c.bf16 %v2396_v0, %v2380_v2  ;;  %v2092_v15 = vpop.f32.mrb[100].mxu1  ;;  %v2446_v24 = vpack.c.bf16 %v2398_v45, %v2382_v28 }
 0x35e   : > { %v2032_v62 = vadd.f32 %v2031_v3, %v9437_v9  ;;  %v2033_v1 = vpop.f32.mrb[101].mxu0  ;;  %v2093_v48 = vadd.f32 %v2092_v15, %v9437_v9  ;;  %v2094_v40 = vpop.f32.mrb[101].mxu1 }
 0x35f   : > { %v2034_v17 = vadd.f32 %v2033_v1, %v9437_v9  ;;  %v2035_v18 = vpop.f32.mrb[102].mxu0  ;;  %2603 = vmatprep.subr.bf16.mxu0 %v2444_v16  ;;  %v2095_v30 = vadd.f32 %v2094_v40, %v9437_v9  ;;  %v2096_v51 = vpop.f32.mrb[102].mxu1  ;;  %2644 = vmatprep.subr.bf16.mxu1 %v2446_v24 }
 0x360   : > { %v2411_v35 = vmax.f32 %v2032_v62, 0.0  ;;  %v2036_v10 = vpop.f32.mrb[103].mxu0  ;;  %2604 = vmatpush1.bf16.msra.mxu0 %v2443_v38  ;;  %v2413_v49 = vmax.f32 %v2093_v48, 0.0  ;;  %v2097_v56 = vpop.f32.mrb[103].mxu1  ;;  %2645 = vmatpush1.bf16.msra.mxu1 %v2445_v44 }
 0x361   : > { %v2412_v39 = vmax.f32 %v2034_v17, 0.0  ;;  %v2414_v63 = vmax.f32 %v2095_v30, 0.0 }
 0x362   : > { %v2459_v42 = vpack.c.bf16 %v2411_v35, %v2411_v35  ;;  %v2461_v2 = vpack.c.bf16 %v2413_v49, %v2413_v49 }
 0x363   : > { %v2460_v34 = vpack.c.bf16 %v2412_v39, %v2412_v39  ;;  %v2462_v0 = vpack.c.bf16 %v2414_v63, %v2414_v63 }
 0x364   : > { %v2484_v28 = vsel %vm948_vm2, %v2459_v42, 0  ;;  %v2490_v3 = vsel %vm948_vm2, %v2461_v2, 0 }
 0x365   : > { %v2133_v45 = vpop.f32.mrb[104].mxu0  ;;  %8686 = vmatprep.subr.msk.bf16.mxu0 %vm948_vm2, %v2460_v34  ;;  %v2194_v16 = vpop.f32.mrb[104].mxu1  ;;  %8688 = vmatprep.subr.msk.bf16.mxu1 %vm948_vm2, %v2462_v0 }
 0x366   : > { %v2134_v24 = vadd.f32 %v2133_v45, %v9413_v52  ;;  %v2135_v38 = vpop.f32.mrb[105].mxu0  ;;  %2606 = vmatpush1.bf16.msra.mxu0 %v2484_v28  ;;  %v2195_v44 = vadd.f32 %v2194_v16, %v9413_v52  ;;  %v2196_v15 = vpop.f32.mrb[105].mxu1  ;;  %2647 = vmatpush1.bf16.msra.mxu1 %v2490_v3 }
 0x367   : > { %v2136_v62 = vadd.f32 %v2135_v38, %v9413_v52  ;;  %v2137_v1 = vpop.f32.mrb[106].mxu0  ;;  %v2197_v48 = vadd.f32 %v2196_v15, %v9413_v52  ;;  %v2198_v40 = vpop.f32.mrb[106].mxu1 }
 0x368   : > { %v2138_v17 = vadd.f32 %v2137_v1, %v9417_v55  ;;  %v2139_v18 = vpop.f32.mrb[107].mxu0  ;;  %v2199_v35 = vadd.f32 %v2198_v40, %v9417_v55  ;;  %v2200_v51 = vpop.f32.mrb[107].mxu1  ;;  %v2351_v10 = vmax.f32 %v2134_v24, 0.0  ;;  %v2353_v56 = vmax.f32 %v2195_v44, 0.0 }
 0x369   : > { %v2140_v30 = vadd.f32 %v2139_v18, %v9417_v55  ;;  %8687 = vmatmul.mubr.msk.bf16.vlgmr.msra.gmra.mrb[132].mxu0 %vm944_vm3, %v9448_v61  ;;  %v2201_v39 = vadd.f32 %v2200_v51, %v9417_v55  ;;  %8689 = vmatmul.mubr.msk.bf16.vlgmr.msra.gmra.mrb[132].mxu1 %vm944_vm3, %v9448_v61  ;;  %v2352_v42 = vmax.f32 %v2136_v62, 0.0  ;;  %v2354_v34 = vmax.f32 %v2197_v48, 0.0 }
 0x36a   : > { %v2367_v49 = vmax.f32 %v2138_v17, 0.0  ;;  %2715 = vmatprep.mubr.bf16.mxu0 %v11350_v54  ;;  %v2369_v63 = vmax.f32 %v2199_v35, 0.0  ;;  %2756 = vmatprep.mubr.bf16.mxu1 %v11350_v54 }
 0x36b   : > { %v2368_v2 = vmax.f32 %v2140_v30, 0.0  ;;  %v2370_v28 = vmax.f32 %v2201_v39, 0.0 }
 0x36c   : > { %v2431_v0 = vpack.c.bf16 %v2367_v49, %v2351_v10  ;;  %v2433_v45 = vpack.c.bf16 %v2369_v63, %v2353_v56 }
 0x36d   : > { %v2143_v3 = vpop.f32.mrb[108].mxu0  ;;  %v2432_v24 = vpack.c.bf16 %v2368_v2, %v2352_v42  ;;  %v2204_v38 = vpop.f32.mrb[108].mxu1  ;;  %v2434_v1 = vpack.c.bf16 %v2370_v28, %v2354_v34 }
 0x36e   : > { %v2144_v16 = vadd.f32 %v2143_v3, %v9415_v53  ;;  %v2145_v15 = vpop.f32.mrb[109].mxu0  ;;  %v2205_v17 = vadd.f32 %v2204_v38, %v9415_v53  ;;  %v2206_v62 = vpop.f32.mrb[109].mxu1 }
 0x36f   : > { %v2146_v44 = vadd.f32 %v2145_v15, %v9415_v53  ;;  %v2147_v40 = vpop.f32.mrb[110].mxu0  ;;  %2683 = vmatprep.subr.bf16.mxu0 %v2432_v24  ;;  %v2207_v18 = vadd.f32 %v2206_v62, %v9415_v53  ;;  %v2208_v35 = vpop.f32.mrb[110].mxu1  ;;  %2724 = vmatprep.subr.bf16.mxu1 %v2434_v1 }
 0x370   : > { %v2148_v48 = vadd.f32 %v2147_v40, %v9427_v32  ;;  %v2149_v30 = vpop.f32.mrb[111].mxu0  ;;  %2684 = vmatpush1.bf16.msra.mxu0 %v2431_v0  ;;  %v2209_v51 = vadd.f32 %v2208_v35, %v9427_v32  ;;  %v2210_v49 = vpop.f32.mrb[111].mxu1  ;;  %2725 = vmatpush1.bf16.msra.mxu1 %v2433_v45  ;;  %v2383_v39 = vmax.f32 %v2144_v16, 0.0  ;;  %v2385_v63 = vmax.f32 %v2205_v17, 0.0 }
 0x371   : > { %v2150_v10 = vadd.f32 %v2149_v30, %v9427_v32  ;;  %v2211_v42 = vadd.f32 %v2210_v49, %v9427_v32  ;;  %v2384_v2 = vmax.f32 %v2146_v44, 0.0  ;;  %v2386_v3 = vmax.f32 %v2207_v18, 0.0 }
 0x372   : > { %v2399_v56 = vmax.f32 %v2148_v48, 0.0  ;;  %v2401_v34 = vmax.f32 %v2209_v51, 0.0 }
 0x373   : > { %v2400_v28 = vmax.f32 %v2150_v10, 0.0  ;;  %v2402_v38 = vmax.f32 %v2211_v42, 0.0 }
 0x374   : > { %v2447_v24 = vpack.c.bf16 %v2399_v56, %v2383_v39  ;;  %v2449_v15 = vpack.c.bf16 %v2401_v34, %v2385_v63 }
 0x375   : > { %v2153_v1 = vpop.f32.mrb[112].mxu0  ;;  %v2448_v0 = vpack.c.bf16 %v2400_v28, %v2384_v2  ;;  %v2214_v40 = vpop.f32.mrb[112].mxu1  ;;  %v2450_v30 = vpack.c.bf16 %v2402_v38, %v2386_v3 }
 0x376   : > { %v2154_v62 = vadd.f32 %v2153_v1, %v9437_v9  ;;  %v2155_v35 = vpop.f32.mrb[113].mxu0  ;;  %v2215_v45 = vadd.f32 %v2214_v40, %v9437_v9  ;;  %v2216_v48 = vpop.f32.mrb[113].mxu1 }
 0x377   : > { %v2156_v16 = vadd.f32 %v2155_v35, %v9437_v9  ;;  %v2157_v17 = vpop.f32.mrb[114].mxu0  ;;  %2685 = vmatprep.subr.bf16.mxu0 %v2448_v0  ;;  %v2217_v18 = vadd.f32 %v2216_v48, %v9437_v9  ;;  %v2218_v51 = vpop.f32.mrb[114].mxu1  ;;  %2726 = vmatprep.subr.bf16.mxu1 %v2450_v30 }
 0x378   : > { %v2415_v44 = vmax.f32 %v2154_v62, 0.0  ;;  %v2158_v10 = vpop.f32.mrb[115].mxu0  ;;  %2686 = vmatpush1.bf16.msra.mxu0 %v2447_v24  ;;  %v2417_v49 = vmax.f32 %v2215_v45, 0.0  ;;  %v2219_v56 = vpop.f32.mrb[115].mxu1  ;;  %2727 = vmatpush1.bf16.msra.mxu1 %v2449_v15 }
 0x379   : > { %v2416_v39 = vmax.f32 %v2156_v16, 0.0  ;;  %v2418_v63 = vmax.f32 %v2217_v18, 0.0 }
 0x37a   : > { %v2463_v42 = vpack.c.bf16 %v2415_v44, %v2415_v44  ;;  %v2465_v2 = vpack.c.bf16 %v2417_v49, %v2417_v49 }
 0x37b   : > { %v2464_v34 = vpack.c.bf16 %v2416_v39, %v2416_v39  ;;  %v2466_v28 = vpack.c.bf16 %v2418_v63, %v2418_v63 }
 0x37c   : > { %v2496_v3 = vsel %vm948_vm2, %v2463_v42, 0  ;;  %v2502_v1 = vsel %vm948_vm2, %v2465_v2, 0 }
 0x37d   : > { %v2255_v38 = vpop.f32.mrb[116].mxu0  ;;  %8690 = vmatprep.subr.msk.bf16.mxu0 %vm948_vm2, %v2464_v34  ;;  %v2316_v62 = vpop.f32.mrb[116].mxu1  ;;  %8692 = vmatprep.subr.msk.bf16.mxu1 %vm948_vm2, %v2466_v28 }
 0x37e   : > { %v2256_v0 = vadd.f32 %v2255_v38, %v9413_v52  ;;  %v2257_v24 = vpop.f32.mrb[117].mxu0  ;;  %2688 = vmatpush1.bf16.msra.mxu0 %v2496_v3  ;;  %v2317_v15 = vadd.f32 %v2316_v62, %v9413_v52  ;;  %v2318_v35 = vpop.f32.mrb[117].mxu1  ;;  %2729 = vmatpush1.bf16.msra.mxu1 %v2502_v1 }
 0x37f   : > { %v2258_v40 = vadd.f32 %v2257_v24, %v9413_v52  ;;  %v2259_v30 = vpop.f32.mrb[118].mxu0  ;;  %v2319_v45 = vadd.f32 %v2318_v35, %v9413_v52  ;;  %v2320_v48 = vpop.f32.mrb[118].mxu1 }
 0x380   : > { %v2260_v16 = vadd.f32 %v2259_v30, %v9417_v55  ;;  %v2261_v17 = vpop.f32.mrb[119].mxu0  ;;  %v2321_v44 = vadd.f32 %v2320_v48, %v9417_v55  ;;  %v2322_v51 = vpop.f32.mrb[119].mxu1  ;;  %v2355_v10 = vmax.f32 %v2256_v0, 0.0  ;;  %v2357_v56 = vmax.f32 %v2317_v15, 0.0 }
 0x381   : > { %v2262_v18 = vadd.f32 %v2261_v17, %v9417_v55  ;;  %8691 = vmatmul.mubr.msk.bf16.vlgmr.msra.gmra.mrb[136].mxu0 %vm944_vm3, %v9448_v61  ;;  %v2323_v39 = vadd.f32 %v2322_v51, %v9417_v55  ;;  %8693 = vmatmul.mubr.msk.bf16.vlgmr.msra.gmra.mrb[136].mxu1 %vm944_vm3, %v9448_v61  ;;  %v2356_v42 = vmax.f32 %v2258_v40, 0.0  ;;  %v2358_v34 = vmax.f32 %v2319_v45, 0.0 }
 0x382   : > { %v2371_v49 = vmax.f32 %v2260_v16, 0.0  ;;  %2797 = vmatprep.mubr.bf16.mxu0 %v11350_v54  ;;  %v2373_v63 = vmax.f32 %v2321_v44, 0.0  ;;  %2838 = vmatprep.mubr.bf16.mxu1 %v11350_v54 }
 0x383   : > { %v2372_v2 = vmax.f32 %v2262_v18, 0.0  ;;  %v2374_v3 = vmax.f32 %v2323_v39, 0.0 }
 0x384   : > { %v2435_v28 = vpack.c.bf16 %v2371_v49, %v2355_v10  ;;  %v2437_v38 = vpack.c.bf16 %v2373_v63, %v2357_v56 }
 0x385   : > { %v2265_v1 = vpop.f32.mrb[120].mxu0  ;;  %v2436_v0 = vpack.c.bf16 %v2372_v2, %v2356_v42  ;;  %v2326_v24 = vpop.f32.mrb[120].mxu1  ;;  %v2438_v30 = vpack.c.bf16 %v2374_v3, %v2358_v34 }
 0x386   : > { %v2266_v62 = vadd.f32 %v2265_v1, %v9415_v53  ;;  %v2267_v35 = vpop.f32.mrb[121].mxu0  ;;  %v2327_v16 = vadd.f32 %v2326_v24, %v9415_v53  ;;  %v2328_v40 = vpop.f32.mrb[121].mxu1 }
 0x387   : > { %v2268_v15 = vadd.f32 %v2267_v35, %v9415_v53  ;;  %v2269_v48 = vpop.f32.mrb[122].mxu0  ;;  %2765 = vmatprep.subr.bf16.mxu0 %v2436_v0  ;;  %v2329_v17 = vadd.f32 %v2328_v40, %v9415_v53  ;;  %v2330_v44 = vpop.f32.mrb[122].mxu1  ;;  %2806 = vmatprep.subr.bf16.mxu1 %v2438_v30 }
 0x388   : > { %v2270_v45 = vadd.f32 %v2269_v48, %v9427_v32  ;;  %v2271_v18 = vpop.f32.mrb[123].mxu0  ;;  %2766 = vmatpush1.bf16.msra.mxu0 %v2435_v28  ;;  %v2331_v51 = vadd.f32 %v2330_v44, %v9427_v32  ;;  %v2332_v49 = vpop.f32.mrb[123].mxu1  ;;  %2807 = vmatpush1.bf16.msra.mxu1 %v2437_v38  ;;  %v2387_v39 = vmax.f32 %v2266_v62, 0.0  ;;  %v2389_v63 = vmax.f32 %v2327_v16, 0.0 }
 0x389   : > { %v2272_v10 = vadd.f32 %v2271_v18, %v9427_v32  ;;  %v2333_v42 = vadd.f32 %v2332_v49, %v9427_v32  ;;  %v2388_v2 = vmax.f32 %v2268_v15, 0.0  ;;  %v2390_v1 = vmax.f32 %v2329_v17, 0.0 }
 0x38a   : > { %v2403_v56 = vmax.f32 %v2270_v45, 0.0  ;;  %v2405_v34 = vmax.f32 %v2331_v51, 0.0 }
 0x38b   : > { %v2404_v3 = vmax.f32 %v2272_v10, 0.0  ;;  %v2406_v24 = vmax.f32 %v2333_v42, 0.0 }
 0x38c   : > { %v2451_v0 = vpack.c.bf16 %v2403_v56, %v2387_v39  ;;  %v2453_v35 = vpack.c.bf16 %v2405_v34, %v2389_v63 }
 0x38d   : > { %v2275_v30 = vpop.f32.mrb[124].mxu0  ;;  %v2452_v28 = vpack.c.bf16 %v2404_v3, %v2388_v2  ;;  %v2336_v48 = vpop.f32.mrb[124].mxu1  ;;  %v2454_v18 = vpack.c.bf16 %v2406_v24, %v2390_v1 }
 0x38e   : > { %v2276_v40 = vadd.f32 %v2275_v30, %v9437_v9  ;;  %v2277_v44 = vpop.f32.mrb[125].mxu0  ;;  %v2337_v38 = vadd.f32 %v2336_v48, %v9437_v9  ;;  %v2338_v45 = vpop.f32.mrb[125].mxu1 }
 0x38f   : > { %v2278_v62 = vadd.f32 %v2277_v44, %v9437_v9  ;;  %v2279_v16 = vpop.f32.mrb[126].mxu0  ;;  %2767 = vmatprep.subr.bf16.mxu0 %v2452_v28  ;;  %v2339_v17 = vadd.f32 %v2338_v45, %v9437_v9  ;;  %v2340_v51 = vpop.f32.mrb[126].mxu1  ;;  %2808 = vmatprep.subr.bf16.mxu1 %v2454_v18 }
 0x390   : > { %v2419_v15 = vmax.f32 %v2276_v40, 0.0  ;;  %v2280_v10 = vpop.f32.mrb[127].mxu0  ;;  %2768 = vmatpush1.bf16.msra.mxu0 %v2451_v0  ;;  %v2421_v49 = vmax.f32 %v2337_v38, 0.0  ;;  %v2341_v56 = vpop.f32.mrb[127].mxu1  ;;  %2809 = vmatpush1.bf16.msra.mxu1 %v2453_v35 }
 0x391   : > { %v2420_v39 = vmax.f32 %v2278_v62, 0.0  ;;  %v2422_v63 = vmax.f32 %v2339_v17, 0.0 }
 0x392   : > { %v2467_v42 = vpack.c.bf16 %v2419_v15, %v2419_v15  ;;  %v2469_v2 = vpack.c.bf16 %v2421_v49, %v2421_v49 }
 0x393   : > { %v2468_v34 = vpack.c.bf16 %v2420_v39, %v2420_v39  ;;  %v2470_v3 = vpack.c.bf16 %v2422_v63, %v2422_v63 }
 0x394   : > { %v2508_v1 = vsel %vm948_vm2, %v2467_v42, 0  ;;  %v2514_v24 = vsel %vm948_vm2, %v2469_v2, 0 }
 0x395   : > { %8694 = vmatprep.subr.msk.bf16.mxu0 %vm948_vm2, %v2468_v34  ;;  %8696 = vmatprep.subr.msk.bf16.mxu1 %vm948_vm2, %v2470_v3 }
 0x396   : > { %2770 = vmatpush1.bf16.msra.mxu0 %v2508_v1  ;;  %2811 = vmatpush1.bf16.msra.mxu1 %v2514_v24 }
 0x399   : > { %8695 = vmatmul.mubr.msk.bf16.vlgmr.msra.gmra.mrb[140].mxu0 %vm944_vm3, %v9448_v61  ;;  %8697 = vmatmul.mubr.msk.bf16.vlgmr.msra.gmra.mrb[140].mxu1 %vm944_vm3, %v9448_v61 }
 0x39a   : > { %2959 = vmatprep.mubr.bf16.mxu0 %v11350_v54  ;;  %3000 = vmatprep.mubr.bf16.mxu1 %v11350_v54 }
 0x424   : > { %v2553_v0 = vpop.f32.mrb[128].mxu0  ;;  %v2594_v30 = vpop.f32.mrb[128].mxu1 }
 0x425   : > { %v2554_v35 = vadd.f32 %v2553_v0, %v9547_v26  ;;  %v2555_v28 = vpop.f32.mrb[129].mxu0  ;;  %v2595_v40 = vadd.f32 %v2594_v30, %v9547_v26  ;;  %v2596_v44 = vpop.f32.mrb[129].mxu1 }
 0x426   : > { %v2556_v48 = vadd.f32 %v2555_v28, %v9547_v26  ;;  %v2557_v18 = vpop.f32.mrb[130].mxu0  ;;  %v2597_v62 = vadd.f32 %v2596_v44, %v9547_v26  ;;  %v2598_v45 = vpop.f32.mrb[130].mxu1 }
 0x427   : > { %v2847_v38 = vmax.f32 %v2554_v35, 0.0  ;;  %v2558_v16 = vpop.f32.mrb[131].mxu0  ;;  %v2849_v15 = vmax.f32 %v2595_v40, 0.0  ;;  %v2599_v51 = vpop.f32.mrb[131].mxu1 }
 0x428   : > { %v2848_v17 = vmax.f32 %v2556_v48, 0.0  ;;  %v2850_v49 = vmax.f32 %v2597_v62, 0.0 }
 0x429   : > { %v2863_v10 = vpack.c.bf16 %v2847_v38, %v2847_v38  ;;  %v2865_v39 = vpack.c.bf16 %v2849_v15, %v2849_v15 }
 0x42a   : > { %v2864_v56 = vpack.c.bf16 %v2848_v17, %v2848_v17  ;;  %v2866_v42 = vpack.c.bf16 %v2850_v49, %v2850_v49 }
 0x42b   : > { %v2880_v63 = vsel %vm1366_vm4, %v2863_v10, 0  ;;  %v2886_v2 = vsel %vm1366_vm4, %v2865_v39, 0 }
 0x42c   : > { %8698 = vmatprep.subr.msk.bf16.mxu0 %vm1366_vm4, %v2864_v56  ;;  %8700 = vmatprep.subr.msk.bf16.mxu1 %vm1366_vm4, %v2866_v42 }
 0x42d   : > { %2928 = vmatpush1.bf16.msra.mxu0 %v2880_v63  ;;  %2969 = vmatpush1.bf16.msra.mxu1 %v2886_v2 }
 0x430   : > { %8699 = vmatmul.mubr.msk.bf16.vlgmr.msra.gmra.mrb[144].mxu0 %vm1362_vm5, %v9559_v8  ;;  %8701 = vmatmul.mubr.msk.bf16.vlgmr.msra.gmra.mrb[144].mxu1 %vm1362_vm5, %v9559_v8 }
 0x431   : > { %3041 = vmatprep.mubr.bf16.mxu0 %v11350_v54  ;;  %3082 = vmatprep.mubr.bf16.mxu1 %v11350_v54 }
 0x43c   : > { %v2635_v34 = vpop.f32.mrb[132].mxu0  ;;  %v2676_v1 = vpop.f32.mrb[132].mxu1 }
 0x43d   : > { %v2636_v3 = vadd.f32 %v2635_v34, %v9547_v26  ;;  %v2637_v24 = vpop.f32.mrb[133].mxu0  ;;  %v2677_v0 = vadd.f32 %v2676_v1, %v9547_v26  ;;  %v2678_v30 = vpop.f32.mrb[133].mxu1 }
 0x43e   : > { %v2638_v35 = vadd.f32 %v2637_v24, %v9547_v26  ;;  %v2639_v28 = vpop.f32.mrb[134].mxu0  ;;  %v2679_v48 = vadd.f32 %v2678_v30, %v9547_v26  ;;  %v2680_v44 = vpop.f32.mrb[134].mxu1 }
 0x43f   : > { %v2851_v40 = vmax.f32 %v2636_v3, 0.0  ;;  %v2640_v18 = vpop.f32.mrb[135].mxu0  ;;  %v2853_v38 = vmax.f32 %v2677_v0, 0.0  ;;  %v2681_v45 = vpop.f32.mrb[135].mxu1 }
 0x440   : > { %v2852_v62 = vmax.f32 %v2638_v35, 0.0  ;;  %v2854_v15 = vmax.f32 %v2679_v48, 0.0 }
 0x441   : > { %v2867_v16 = vpack.c.bf16 %v2851_v40, %v2851_v40  ;;  %v2869_v17 = vpack.c.bf16 %v2853_v38, %v2853_v38 }
 0x442   : > { %v2868_v51 = vpack.c.bf16 %v2852_v62, %v2852_v62  ;;  %v2870_v10 = vpack.c.bf16 %v2854_v15, %v2854_v15 }
 0x443   : > { %v2892_v49 = vsel %vm1366_vm4, %v2867_v16, 0  ;;  %v2898_v39 = vsel %vm1366_vm4, %v2869_v17, 0 }
 0x444   : > { %8702 = vmatprep.subr.msk.bf16.mxu0 %vm1366_vm4, %v2868_v51  ;;  %8704 = vmatprep.subr.msk.bf16.mxu1 %vm1366_vm4, %v2870_v10 }
 0x445   : > { %3010 = vmatpush1.bf16.msra.mxu0 %v2892_v49  ;;  %3051 = vmatpush1.bf16.msra.mxu1 %v2898_v39 }
 0x448   : > { %8703 = vmatmul.mubr.msk.bf16.vlgmr.msra.gmra.mrb[148].mxu0 %vm1362_vm5, %v9559_v8  ;;  %8705 = vmatmul.mubr.msk.bf16.vlgmr.msra.gmra.mrb[148].mxu1 %vm1362_vm5, %v9559_v8 }
 0x449   : > { %3123 = vmatprep.mubr.bf16.mxu0 %v11350_v54  ;;  %3164 = vmatprep.mubr.bf16.mxu1 %v11350_v54 }
 0x454   : > { %v2717_v56 = vpop.f32.mrb[136].mxu0  ;;  %v2758_v63 = vpop.f32.mrb[136].mxu1 }
 0x455   : > { %v2718_v42 = vadd.f32 %v2717_v56, %v9547_v26  ;;  %v2719_v2 = vpop.f32.mrb[137].mxu0  ;;  %v2759_v34 = vadd.f32 %v2758_v63, %v9547_v26  ;;  %v2760_v1 = vpop.f32.mrb[137].mxu1 }
 0x456   : > { %v2720_v3 = vadd.f32 %v2719_v2, %v9547_v26  ;;  %v2721_v24 = vpop.f32.mrb[138].mxu0  ;;  %v2761_v35 = vadd.f32 %v2760_v1, %v9547_v26  ;;  %v2762_v30 = vpop.f32.mrb[138].mxu1 }
 0x457   : > { %v2855_v0 = vmax.f32 %v2718_v42, 0.0  ;;  %v2722_v28 = vpop.f32.mrb[139].mxu0  ;;  %v2857_v40 = vmax.f32 %v2759_v34, 0.0  ;;  %v2763_v44 = vpop.f32.mrb[139].mxu1 }
 0x458   : > { %v2856_v48 = vmax.f32 %v2720_v3, 0.0  ;;  %v2858_v38 = vmax.f32 %v2761_v35, 0.0 }
 0x459   : > { %v2871_v18 = vpack.c.bf16 %v2855_v0, %v2855_v0  ;;  %v2873_v62 = vpack.c.bf16 %v2857_v40, %v2857_v40 }
 0x45a   : > { %v2872_v45 = vpack.c.bf16 %v2856_v48, %v2856_v48  ;;  %v2874_v16 = vpack.c.bf16 %v2858_v38, %v2858_v38  ;;  %v3287_v38 = vrot.slane %v9239_v7, 2 }
 0x45b   : > { %v2904_v15 = vsel %vm1366_vm4, %v2871_v18, 0  ;;  %v2910_v17 = vsel %vm1366_vm4, %v2873_v62, 0  ;;  %v3288_v18 = vrot.slane %v9235_v5, 2 }
 0x45c   : > { %8706 = vmatprep.subr.msk.bf16.mxu0 %vm1366_vm4, %v2872_v45  ;;  %8708 = vmatprep.subr.msk.bf16.mxu1 %vm1366_vm4, %v2874_v16  ;;  %v3290_v16 = vrot.slane %v9237_v6, 2 }
 0x45d   : > { %3092 = vmatpush1.bf16.msra.mxu0 %v2904_v15  ;;  %3133 = vmatpush1.bf16.msra.mxu1 %v2910_v17  ;;  %v3289_v15 = vrot.slane %v9248_v11, 2 }
 0x460   : > { %8707 = vmatmul.mubr.msk.bf16.vlgmr.msra.gmra.mrb[152].mxu0 %vm1362_vm5, %v9559_v8  ;;  %8709 = vmatmul.mubr.msk.bf16.vlgmr.msra.gmra.mrb[152].mxu1 %vm1362_vm5, %v9559_v8 }
 0x461   : > { %3205 = vmatprep.mubr.bf16.mxu0 %v11350_v54  ;;  %3246 = vmatprep.mubr.bf16.mxu1 %v11350_v54 }
 0x46c   : > { %v2799_v51 = vpop.f32.mrb[140].mxu0  ;;  %v2840_v49 = vpop.f32.mrb[140].mxu1 }
 0x46d   : > { %v2800_v10 = vadd.f32 %v2799_v51, %v9547_v26  ;;  %v2801_v39 = vpop.f32.mrb[141].mxu0  ;;  %v2841_v56 = vadd.f32 %v2840_v49, %v9547_v26  ;;  %v2842_v63 = vpop.f32.mrb[141].mxu1  ;;  %v3304_v51 = vsel %vm274_vm0, %v3287_v38, 0  ;;  %v3292_v49 = vrot.slane %v9266_v19, 2 }
 0x46e   : > { %v2802_v42 = vadd.f32 %v2801_v39, %v9547_v26  ;;  %v2803_v2 = vpop.f32.mrb[142].mxu0  ;;  %v2843_v3 = vadd.f32 %v2842_v63, %v9547_v26  ;;  %v2844_v1 = vpop.f32.mrb[142].mxu1  ;;  %v3294_v39 = vrot.slane %v9268_v20, 2 }
 0x46f   : > { %v2859_v34 = vmax.f32 %v2800_v10, 0.0  ;;  %v2804_v24 = vpop.f32.mrb[143].mxu0  ;;  %v2861_v0 = vmax.f32 %v2841_v56, 0.0  ;;  %v2845_v30 = vpop.f32.mrb[143].mxu1  ;;  %v3310_v10 = vsel %vm274_vm0, %v3289_v15, 0  ;;  %v3291_v56 = vrot.slane %v9270_v21, 2 }
 0x470   : > { %v2860_v35 = vmax.f32 %v2802_v42, 0.0  ;;  %v2862_v40 = vmax.f32 %v2843_v3, 0.0  ;;  %v3293_v42 = vrot.slane %v9275_v25, 2  ;;  %v3296_v2 = vrot.slane %v9283_v27, 2  ;;  %v10028_v38 = vpop.permute.xlu0 %1359 }
 0x471   : > { %v2875_v28 = vpack.c.bf16 %v2859_v34, %v2859_v34  ;;  %v2877_v48 = vpack.c.bf16 %v2861_v0, %v2861_v0  ;;  %v3316_v63 = vsel %vm274_vm0, %v3291_v56, 0  ;;  %v3298_v3 = vrot.slane %v9289_v29, 2 }
 0x472   : > { %v2876_v44 = vpack.c.bf16 %v2860_v35, %v2860_v35  ;;  %v2878_v62 = vpack.c.bf16 %v2862_v40, %v2862_v40  ;;  %v3322_v34 = vsel %vm274_vm0, %v3293_v42, 0  ;;  %v3295_v1 = vrot.slane %v9323_v36, 2 }
 0x473   : > { %v2916_v45 = vsel %vm1366_vm4, %v2875_v28, 0  ;;  %v2922_v17 = vsel %vm1366_vm4, %v2877_v48, 0  ;;  %v3297_v24 = vrot.slane %v9325_v37, 2  ;;  %v3300_v35 = vrot.slane %v9331_v41, 2 }
 0x474   : > { %8710 = vmatprep.subr.msk.bf16.mxu0 %vm1366_vm4, %v2876_v44  ;;  %8712 = vmatprep.subr.msk.bf16.mxu1 %vm1366_vm4, %v2878_v62  ;;  %v3328_v0 = vsel %vm274_vm0, %v3295_v1, 0  ;;  %v3302_v28 = vrot.slane %v9337_v43, 2  ;;  %v3299_v40 = vrot.slane %v9361_v46, 2  ;;  %v3301_v48 = vrot.slane %v9363_v47, 2 }
 0x475   : > { %3174 = vmatpush1.bf16.msra.mxu0 %v2916_v45  ;;  %3215 = vmatpush1.bf16.msra.mxu1 %v2922_v17  ;;  %v3334_v30 = vsel %vm274_vm0, %v3297_v24, 0  ;;  %v1450_v62 = vadd.f32 %v9716_v57, %v10028_v38  ;;  %v1452_v15 = vadd.f32 %v9720_v59, %v10028_v38 }
 0x476   : > { %8714 = vmatprep.subr.msk.bf16.mxu0 %vm274_vm0, %v3288_v18  ;;  %8718 = vmatprep.subr.msk.bf16.mxu1 %vm274_vm0, %v3290_v16  ;;  %v3340_v44 = vsel %vm274_vm0, %v3299_v40, 0  ;;  %v3346_v18 = vsel %vm274_vm0, %v3301_v48, 0  ;;  %v1491_v16 = vadd.f32 %v9718_v58, %v10028_v38 }
 0x477   : > { %v1744_v24 = vmax.f32 %v1452_v15, 0.0  ;;  %v1575_v15 = vadd.f32 %v9730_v13, %v10028_v38 }
 0x478   : > { %8711 = vmatmul.mubr.msk.bf16.vlgmr.msra.gmra.mrb[156].mxu0 %vm1362_vm5, %v9559_v8  ;;  %8713 = vmatmul.mubr.msk.bf16.vlgmr.msra.gmra.mrb[156].mxu1 %vm1362_vm5, %v9559_v8  ;;  %v1745_v59 = vmax.f32 %v1491_v16, 0.0 }
 0x479   : > { %3352 = vmatpush1.bf16.msra.mxu0 %v3304_v51  ;;  %3413 = vmatpush1.bf16.msra.mxu1 %v3310_v10 }
 0x47a   : > { %3383 = vmatprep.mubr.bf16.mxu0 %v11350_v54  ;;  %3444 = vmatprep.mubr.bf16.mxu1 %v11350_v54 }
 0x47b   : > { %8722 = vmatprep.subr.msk.bf16.mxu0 %vm274_vm0, %v3292_v49  ;;  %8726 = vmatprep.subr.msk.bf16.mxu1 %vm274_vm0, %v3294_v39  ;;  %v1493_v49 = vadd.f32 %v9722_v60, %v10028_v38 }
 0x47d   : > { %v1746_v60 = vmax.f32 %v1493_v49, 0.0 }
 0x480   : > { %8715 = vmatmul.mubr.msk.bf16.vlgmr.msra.gmra.mrb[160].mxu0 %vm264_vm1, %v9259_v14  ;;  %8719 = vmatmul.mubr.msk.bf16.vlgmr.msra.gmra.mrb[160].mxu1 %vm264_vm1, %v9259_v14 }
 0x481   : > { %3393 = vmatprep.mubr.bf16.mxu0 %v11350_v54  ;;  %3454 = vmatprep.mubr.bf16.mxu1 %v11350_v54 }
 0x482   : > { %3474 = vmatpush1.bf16.msra.mxu0 %v3316_v63  ;;  %3535 = vmatpush1.bf16.msra.mxu1 %v3322_v34  ;;  %v1743_v63 = vmax.f32 %v1450_v62, 0.0  ;;  %v1573_v62 = vadd.f32 %v9726_v12, %v10028_v38 }
 0x483   : > { %8730 = vmatprep.subr.msk.bf16.mxu0 %vm274_vm0, %v3296_v2  ;;  %8734 = vmatprep.subr.msk.bf16.mxu1 %vm274_vm0, %v3298_v3 }
 0x488   : > { %8716 = vmatmul.mubr.msk.bf16.gmra.mrb[164].mxu0 %vm264_vm1, %v9300_v31  ;;  %8720 = vmatmul.mubr.msk.bf16.gmra.mrb[164].mxu1 %vm264_vm1, %v9300_v31 }
 0x489   : > { %3403 = vmatprep.mubr.bf16.mxu0 %v11350_v54  ;;  %3464 = vmatprep.mubr.bf16.mxu1 %v11350_v54 }
 0x490   : > { %8717 = vmatmul.mubr.msk.bf16.gmra.mrb[168].mxu0 %vm264_vm1, %v9313_v33  ;;  %8721 = vmatmul.mubr.msk.bf16.gmra.mrb[168].mxu1 %vm264_vm1, %v9313_v33 }
 0x491   : > { %3505 = vmatprep.mubr.bf16.mxu0 %v11350_v54  ;;  %3566 = vmatprep.mubr.bf16.mxu1 %v11350_v54 }
 0x498   : > { %8723 = vmatmul.mubr.msk.bf16.vlgmr.msra.gmra.mrb[172].mxu0 %vm264_vm1, %v9259_v14  ;;  %8727 = vmatmul.mubr.msk.bf16.vlgmr.msra.gmra.mrb[172].mxu1 %vm264_vm1, %v9259_v14 }
 0x499   : > { %3515 = vmatprep.mubr.bf16.mxu0 %v11350_v54  ;;  %3576 = vmatprep.mubr.bf16.mxu1 %v11350_v54 }
 0x49a   : > { %3596 = vmatpush1.bf16.msra.mxu0 %v3328_v0  ;;  %3657 = vmatpush1.bf16.msra.mxu1 %v3334_v30 }
 0x49b   : > { %8738 = vmatprep.subr.msk.bf16.mxu0 %vm274_vm0, %v3300_v35  ;;  %8742 = vmatprep.subr.msk.bf16.mxu1 %vm274_vm0, %v3302_v28 }
 0x4a0   : > { %8724 = vmatmul.mubr.msk.bf16.gmra.mrb[176].mxu0 %vm264_vm1, %v9300_v31  ;;  %8728 = vmatmul.mubr.msk.bf16.gmra.mrb[176].mxu1 %vm264_vm1, %v9300_v31 }
 0x4a1   : > { %3525 = vmatprep.mubr.bf16.mxu0 %v11350_v54  ;;  %3586 = vmatprep.mubr.bf16.mxu1 %v11350_v54 }
 0x4a8   : > { %8725 = vmatmul.mubr.msk.bf16.gmra.mrb[180].mxu0 %vm264_vm1, %v9313_v33  ;;  %8729 = vmatmul.mubr.msk.bf16.gmra.mrb[180].mxu1 %vm264_vm1, %v9313_v33 }
 0x4a9   : > { %3627 = vmatprep.mubr.bf16.mxu0 %v11350_v54  ;;  %3688 = vmatprep.mubr.bf16.mxu1 %v11350_v54 }
 0x4b0   : > { %8731 = vmatmul.mubr.msk.bf16.vlgmr.msra.gmra.mrb[184].mxu0 %vm264_vm1, %v9259_v14  ;;  %8735 = vmatmul.mubr.msk.bf16.vlgmr.msra.gmra.mrb[184].mxu1 %vm264_vm1, %v9259_v14 }
 0x4b1   : > { %3637 = vmatprep.mubr.bf16.mxu0 %v11350_v54  ;;  %3698 = vmatprep.mubr.bf16.mxu1 %v11350_v54 }
 0x4b2   : > { %3718 = vmatpush1.bf16.msra.mxu0 %v3340_v44  ;;  %3779 = vmatpush1.bf16.msra.mxu1 %v3346_v18  ;;  %v1532_v18 = vadd.f32 %v9724_v4, %v10028_v38 }
 0x4b8   : > { %8732 = vmatmul.mubr.msk.bf16.gmra.mrb[188].mxu0 %vm264_vm1, %v9300_v31  ;;  %8736 = vmatmul.mubr.msk.bf16.gmra.mrb[188].mxu1 %vm264_vm1, %v9300_v31 }
 0x4b9   : > { %3647 = vmatprep.mubr.bf16.mxu0 %v11350_v54  ;;  %3708 = vmatprep.mubr.bf16.mxu1 %v11350_v54 }
 0x4c0   : > { %8733 = vmatmul.mubr.msk.bf16.gmra.mrb[192].mxu0 %vm264_vm1, %v9313_v33  ;;  %8737 = vmatmul.mubr.msk.bf16.gmra.mrb[192].mxu1 %vm264_vm1, %v9313_v33 }
 0x4c1   : > { %3749 = vmatprep.mubr.bf16.mxu0 %v11350_v54  ;;  %3810 = vmatprep.mubr.bf16.mxu1 %v11350_v54 }
 0x4c8   : > { %8739 = vmatmul.mubr.msk.bf16.vlgmr.msra.gmra.mrb[196].mxu0 %vm264_vm1, %v9259_v14  ;;  %8743 = vmatmul.mubr.msk.bf16.vlgmr.msra.gmra.mrb[196].mxu1 %vm264_vm1, %v9259_v14 }
 0x4c9   : > { %3759 = vmatprep.mubr.bf16.mxu0 %v11350_v54  ;;  %3820 = vmatprep.mubr.bf16.mxu1 %v11350_v54 }
 0x4d0   : > { %8740 = vmatmul.mubr.msk.bf16.gmra.mrb[200].mxu0 %vm264_vm1, %v9300_v31  ;;  %8744 = vmatmul.mubr.msk.bf16.gmra.mrb[200].mxu1 %vm264_vm1, %v9300_v31 }
 0x4d1   : > { %3769 = vmatprep.mubr.bf16.mxu0 %v11350_v54  ;;  %3830 = vmatprep.mubr.bf16.mxu1 %v11350_v54 }
 0x4d8   : > { %8741 = vmatmul.mubr.msk.bf16.gmra.mrb[204].mxu0 %vm264_vm1, %v9313_v33  ;;  %8745 = vmatmul.mubr.msk.bf16.gmra.mrb[204].mxu1 %vm264_vm1, %v9313_v33 }
 0x4d9   : > { %4047 = vmatprep.mubr.bf16.mxu0 %v11350_v54  ;;  %4088 = vmatprep.mubr.bf16.mxu1 %v11350_v54 }
 0x503   : > { %v2961_v45 = vpop.f32.mrb[144].mxu0  ;;  %v3002_v51 = vpop.f32.mrb[144].mxu1 }
 0x504   : > { %v2962_v17 = vadd.f32 %v2961_v45, %v10028_v38  ;;  %v2963_v10 = vpop.f32.mrb[145].mxu0  ;;  %v3003_v39 = vadd.f32 %v3002_v51, %v10028_v38  ;;  %v3004_v42 = vpop.f32.mrb[145].mxu1  ;;  %v1534_v45 = vadd.f32 %v9728_v50, %v10028_v38 }
 0x505   : > { %v2964_v56 = vadd.f32 %v2963_v10, %v10028_v38  ;;  %v2965_v57 = vpop.f32.mrb[146].mxu0  ;;  %v3005_v58 = vadd.f32 %v3004_v42, %v10028_v38  ;;  %v3006_v34 = vpop.f32.mrb[146].mxu1  ;;  %v1747_v42 = vmax.f32 %v1532_v18, 0.0  ;;  %v1655_v18 = vadd.f32 %v9734_v23, %v10028_v38 }
 0x506   : > { %v3255_v2 = vmax.f32 %v2962_v17, 0.0  ;;  %v2966_v3 = vpop.f32.mrb[147].mxu0  ;;  %v3257_v1 = vmax.f32 %v3003_v39, 0.0  ;;  %v3007_v35 = vpop.f32.mrb[147].mxu1 }
 0x507   : > { %v3256_v0 = vmax.f32 %v2964_v56, 0.0  ;;  %v3258_v28 = vmax.f32 %v3005_v58, 0.0  ;;  %v1748_v58 = vmax.f32 %v1534_v45, 0.0 }
 0x508   : > { %v10042_v30 = vadd.f32 %v3255_v2, %v1743_v63  ;;  %v10044_v40 = vadd.f32 %v3257_v1, %v1745_v59  ;;  %v1749_v2 = vmax.f32 %v1573_v62, 0.0  ;;  %v1750_v59 = vmax.f32 %v1575_v15, 0.0  ;;  %v11351_v62 = vld [vmem:[#allocation8_spill] sm:$0xff]  ;;  %v11352_v15 = vld [vmem:[#allocation9_spill] sm:$0xff] }
 0x509   : > { %v10046_v48 = vadd.f32 %v3256_v0, %v1744_v24  ;;  %v10048_v44 = vadd.f32 %v3258_v28, %v1746_v60  ;;  %v1614_v28 = vadd.f32 %v9732_v22, %v10028_v38  ;;  %v1616_v45 = vadd.f32 %v11351_v62, %v10028_v38 }
 0x51b   : > { %v3043_v16 = vpop.f32.mrb[148].mxu0  ;;  %v3084_v51 = vpop.f32.mrb[148].mxu1 }
 0x51c   : > { %v3044_v17 = vadd.f32 %v3043_v16, %v10028_v38  ;;  %v3045_v10 = vpop.f32.mrb[149].mxu0  ;;  %v3085_v49 = vadd.f32 %v3084_v51, %v10028_v38  ;;  %v3086_v56 = vpop.f32.mrb[149].mxu1 }
 0x51d   : > { %v3046_v39 = vadd.f32 %v3045_v10, %v10028_v38  ;;  %v3047_v4 = vpop.f32.mrb[150].mxu0  ;;  %v3087_v12 = vadd.f32 %v3086_v56, %v10028_v38  ;;  %v3088_v63 = vpop.f32.mrb[150].mxu1 }
 0x51e   : > { %v3259_v57 = vmax.f32 %v3044_v17, 0.0  ;;  %v3048_v50 = vpop.f32.mrb[151].mxu0  ;;  %v3261_v34 = vmax.f32 %v3085_v49, 0.0  ;;  %v3089_v3 = vpop.f32.mrb[151].mxu1  ;;  %v1657_v17 = vadd.f32 %v11352_v15, %v10028_v38 }
 0x51f   : > { %v3260_v13 = vmax.f32 %v3046_v39, 0.0  ;;  %v3262_v24 = vmax.f32 %v3087_v12, 0.0  ;;  %v1753_v50 = vmax.f32 %v1655_v18, 0.0 }
 0x520   : > { %v10062_v1 = vadd.f32 %v3259_v57, %v1747_v42  ;;  %v10064_v0 = vadd.f32 %v3261_v34, %v1749_v2  ;;  %v1751_v42 = vmax.f32 %v1614_v28, 0.0  ;;  %v1752_v2 = vmax.f32 %v1616_v45, 0.0  ;;  %v11356_v28 = vld [vmem:[#allocation10_spill] sm:$0xff]  ;;  %v11358_v45 = vld [vmem:[#allocation12_spill] sm:$0xff] }
 0x521   : > { %v10066_v35 = vadd.f32 %v3260_v13, %v1748_v58  ;;  %v10068_v60 = vadd.f32 %v3262_v24, %v1750_v59  ;;  %v1754_v3 = vmax.f32 %v1657_v17, 0.0  ;;  %v11359_v17 = vld [vmem:[#allocation13_spill] sm:$0xff] }
 0x533   : > { %v3125_v16 = vpop.f32.mrb[152].mxu0  ;;  %v3166_v10 = vpop.f32.mrb[152].mxu1 }
 0x534   : > { %v3126_v51 = vadd.f32 %v3125_v16, %v10028_v38  ;;  %v3127_v49 = vpop.f32.mrb[153].mxu0  ;;  %v3167_v39 = vadd.f32 %v3166_v10, %v10028_v38  ;;  %v3168_v4 = vpop.f32.mrb[153].mxu1  ;;  %v11357_v10 = vld [vmem:[#allocation11_spill] sm:$0xff] }
 0x535   : > { %v3128_v56 = vadd.f32 %v3127_v49, %v10028_v38  ;;  %v3129_v22 = vpop.f32.mrb[154].mxu0  ;;  %v3169_v23 = vadd.f32 %v3168_v4, %v10028_v38  ;;  %v3170_v12 = vpop.f32.mrb[154].mxu1  ;;  %v1737_v18 = vadd.f32 %v11357_v10, %v10028_v38  ;;  %v1698_v49 = vadd.f32 %v11358_v45, %v10028_v38 }
 0x536   : > { %v3263_v57 = vmax.f32 %v3126_v51, 0.0  ;;  %v3130_v63 = vpop.f32.mrb[155].mxu0  ;;  %v3265_v58 = vmax.f32 %v3167_v39, 0.0  ;;  %v3171_v13 = vpop.f32.mrb[155].mxu1  ;;  %v1696_v51 = vadd.f32 %v11356_v28, %v10028_v38 }
 0x537   : > { %v3264_v34 = vmax.f32 %v3128_v56, 0.0  ;;  %v3266_v24 = vmax.f32 %v3169_v23, 0.0  ;;  %v1739_v56 = vadd.f32 %v11359_v17, %v10028_v38 }
 0x538   : > { %v10082_v59 = vadd.f32 %v3263_v57, %v1751_v42  ;;  %v10084_v62 = vadd.f32 %v3265_v58, %v1753_v50  ;;  %v1755_v50 = vmax.f32 %v1696_v51, 0.0 }
 0x539   : > { %v10086_v16 = vadd.f32 %v3264_v34, %v1752_v2  ;;  %v10088_v15 = vadd.f32 %v3266_v24, %v1754_v3  ;;  %v1757_v3 = vmax.f32 %v1737_v18, 0.0  ;;  %v1756_v24 = vmax.f32 %v1698_v49, 0.0 }
 0x53a   : > { %11353 = vst [vmem:[#allocation8_spill] sm:$0xff] %v10084_v62 }
 0x53b   : > { %11354 = vst [vmem:[#allocation9_spill] sm:$0xff] %v10086_v16  ;;  %11355 = vst [vmem:[#allocation14_spill] sm:$0xff] %v10088_v15 }
 0x54b   : > { %v3207_v39 = vpop.f32.mrb[156].mxu0  ;;  %v3248_v22 = vpop.f32.mrb[156].mxu1 }
 0x54c   : > { %v3208_v4 = vadd.f32 %v3207_v39, %v10028_v38  ;;  %v3209_v42 = vpop.f32.mrb[157].mxu0  ;;  %v3249_v57 = vadd.f32 %v3248_v22, %v10028_v38  ;;  %v3250_v12 = vpop.f32.mrb[157].mxu1  ;;  %v1758_v39 = vmax.f32 %v1739_v56, 0.0 }
 0x54d   : > { %v3210_v23 = vadd.f32 %v3209_v42, %v10028_v38  ;;  %v3211_v63 = vpop.f32.mrb[158].mxu0  ;;  %v3251_v58 = vadd.f32 %v3250_v12, %v10028_v38  ;;  %v3252_v34 = vpop.f32.mrb[158].mxu1 }
 0x54e   : > { %v3267_v2 = vmax.f32 %v3208_v4, 0.0  ;;  %v3212_v13 = vpop.f32.mrb[159].mxu0  ;;  %v3269_v28 = vmax.f32 %v3249_v57, 0.0  ;;  %v3253_v45 = vpop.f32.mrb[159].mxu1 }
 0x54f   : > { %v3268_v10 = vmax.f32 %v3210_v23, 0.0  ;;  %v3270_v15 = vmax.f32 %v3251_v58, 0.0 }
 0x550   : > { %v10102_v17 = vadd.f32 %v3267_v2, %v1755_v50  ;;  %v10104_v22 = vadd.f32 %v3269_v28, %v1757_v3 }
 0x551   : > { %v10106_v42 = vadd.f32 %v3268_v10, %v1756_v24  ;;  %v10108_v63 = vadd.f32 %v3270_v15, %v1758_v39 }
 0x552   : > { %11360 = vst [vmem:[#allocation10_spill] sm:$0xff] %v10102_v17  ;;  %11361 = vst [vmem:[#allocation11_spill] sm:$0xff] %v10104_v22 }
 0x553   : > { %11362 = vst [vmem:[#allocation12_spill] sm:$0xff] %v10106_v42  ;;  %11363 = vst [vmem:[#allocation13_spill] sm:$0xff] %v10108_v63  ;;  %v3385_v51 = vpop.f32.mrb[160].mxu0  ;;  %v3446_v12 = vpop.f32.mrb[160].mxu1 }
 0x554   : > { %v3386_v4 = vadd.f32 %v3385_v51, %v9413_v52  ;;  %v3387_v34 = vpop.f32.mrb[161].mxu0  ;;  %v3447_v18 = vadd.f32 %v3446_v12, %v9413_v52  ;;  %v3448_v57 = vpop.f32.mrb[161].mxu1 }
 0x555   : > { %v3388_v49 = vadd.f32 %v3387_v34, %v9413_v52  ;;  %v3389_v56 = vpop.f32.mrb[162].mxu0  ;;  %v3449_v23 = vadd.f32 %v3448_v57, %v9413_v52  ;;  %v3450_v2 = vpop.f32.mrb[162].mxu1 }
 0x556   : > { %v3390_v50 = vadd.f32 %v3389_v56, %v9417_v55  ;;  %v3391_v58 = vpop.f32.mrb[163].mxu0  ;;  %v3451_v15 = vadd.f32 %v3450_v2, %v9417_v55  ;;  %v3452_v3 = vpop.f32.mrb[163].mxu1  ;;  %v3839_v24 = vmax.f32 %v3386_v4, 0.0  ;;  %v3841_v45 = vmax.f32 %v3447_v18, 0.0 }
 0x557   : > { %v3392_v13 = vadd.f32 %v3391_v58, %v9417_v55  ;;  %v3453_v10 = vadd.f32 %v3452_v3, %v9417_v55  ;;  %v3840_v39 = vmax.f32 %v3388_v49, 0.0  ;;  %v3842_v34 = vmax.f32 %v3449_v23, 0.0 }
 0x558   : > { %v3855_v28 = vmax.f32 %v3390_v50, 0.0  ;;  %v3857_v51 = vmax.f32 %v3451_v15, 0.0 }
 0x559   : > { %v3856_v12 = vmax.f32 %v3392_v13, 0.0  ;;  %v3858_v57 = vmax.f32 %v3453_v10, 0.0 }
 0x55a   : > { %v3919_v63 = vpack.c.bf16 %v3855_v28, %v3839_v24  ;;  %v3921_v42 = vpack.c.bf16 %v3857_v51, %v3841_v45 }
 0x55b   : > { %v3920_v56 = vpack.c.bf16 %v3856_v12, %v3840_v39  ;;  %v3395_v22 = vpop.f32.mrb[164].mxu0  ;;  %v3922_v17 = vpack.c.bf16 %v3858_v57, %v3842_v34  ;;  %v3456_v16 = vpop.f32.mrb[164].mxu1 }
 0x55c   : > { %v3396_v2 = vadd.f32 %v3395_v22, %v9415_v53  ;;  %v3397_v58 = vpop.f32.mrb[165].mxu0  ;;  %v3457_v4 = vadd.f32 %v3456_v16, %v9415_v53  ;;  %v3458_v3 = vpop.f32.mrb[165].mxu1 }
 0x55d   : > { %v3398_v50 = vadd.f32 %v3397_v58, %v9415_v53  ;;  %v3399_v18 = vpop.f32.mrb[166].mxu0  ;;  %4015 = vmatprep.subr.bf16.mxu0 %v3920_v56  ;;  %v3459_v49 = vadd.f32 %v3458_v3, %v9415_v53  ;;  %v3460_v15 = vpop.f32.mrb[166].mxu1  ;;  %4056 = vmatprep.subr.bf16.mxu1 %v3922_v17 }
 0x55e   : > { %v3400_v23 = vadd.f32 %v3399_v18, %v9427_v32  ;;  %v3401_v13 = vpop.f32.mrb[167].mxu0  ;;  %4016 = vmatpush1.bf16.msra.mxu0 %v3919_v63  ;;  %v3461_v24 = vadd.f32 %v3460_v15, %v9427_v32  ;;  %v3462_v28 = vpop.f32.mrb[167].mxu1  ;;  %4057 = vmatpush1.bf16.msra.mxu1 %v3921_v42  ;;  %v3871_v16 = vmax.f32 %v3396_v2, 0.0  ;;  %v3873_v39 = vmax.f32 %v3457_v4, 0.0 }
 0x55f   : > { %v3402_v22 = vadd.f32 %v3401_v13, %v9427_v32  ;;  %v3463_v45 = vadd.f32 %v3462_v28, %v9427_v32  ;;  %v3872_v51 = vmax.f32 %v3398_v50, 0.0  ;;  %v3874_v57 = vmax.f32 %v3459_v49, 0.0 }
 0x560   : > { %v3887_v10 = vmax.f32 %v3400_v23, 0.0  ;;  %v3889_v12 = vmax.f32 %v3461_v24, 0.0 }
 0x561   : > { %v3888_v34 = vmax.f32 %v3402_v22, 0.0  ;;  %v3890_v58 = vmax.f32 %v3463_v45, 0.0 }
 0x562   : > { %v3935_v56 = vpack.c.bf16 %v3887_v10, %v3871_v16  ;;  %v3937_v17 = vpack.c.bf16 %v3889_v12, %v3873_v39 }
 0x563   : > { %v3936_v3 = vpack.c.bf16 %v3888_v34, %v3872_v51  ;;  %v3405_v63 = vpop.f32.mrb[168].mxu0  ;;  %v3938_v18 = vpack.c.bf16 %v3890_v58, %v3874_v57  ;;  %v3466_v13 = vpop.f32.mrb[168].mxu1 }
 0x564   : > { %v3406_v15 = vadd.f32 %v3405_v63, %v9437_v9  ;;  %v3407_v62 = vpop.f32.mrb[169].mxu0  ;;  %v3467_v42 = vadd.f32 %v3466_v13, %v9437_v9  ;;  %v3468_v23 = vpop.f32.mrb[169].mxu1 }
 0x565   : > { %v3408_v2 = vadd.f32 %v3407_v62, %v9437_v9  ;;  %v3409_v4 = vpop.f32.mrb[170].mxu0  ;;  %4017 = vmatprep.subr.bf16.mxu0 %v3936_v3  ;;  %v3469_v49 = vadd.f32 %v3468_v23, %v9437_v9  ;;  %v3470_v24 = vpop.f32.mrb[170].mxu1  ;;  %4058 = vmatprep.subr.bf16.mxu1 %v3938_v18 }
 0x566   : > { %v3903_v50 = vmax.f32 %v3406_v15, 0.0  ;;  %v3410_v22 = vpop.f32.mrb[171].mxu0  ;;  %4018 = vmatpush1.bf16.msra.mxu0 %v3935_v56  ;;  %v3905_v28 = vmax.f32 %v3467_v42, 0.0  ;;  %v3471_v10 = vpop.f32.mrb[171].mxu1  ;;  %4059 = vmatpush1.bf16.msra.mxu1 %v3937_v17 }
 0x567   : > { %v3904_v16 = vmax.f32 %v3408_v2, 0.0  ;;  %v3906_v39 = vmax.f32 %v3469_v49, 0.0 }
 0x568   : > { %v3951_v45 = vpack.c.bf16 %v3903_v50, %v3903_v50  ;;  %v3953_v51 = vpack.c.bf16 %v3905_v28, %v3905_v28 }
 0x569   : > { %v3952_v12 = vpack.c.bf16 %v3904_v16, %v3904_v16  ;;  %v3954_v34 = vpack.c.bf16 %v3906_v39, %v3906_v39 }
 0x56a   : > { %v3968_v62 = vsel %vm948_vm2, %v3951_v45, 0  ;;  %v3974_v58 = vsel %vm948_vm2, %v3953_v51, 0 }
 0x56b   : > { %v3507_v57 = vpop.f32.mrb[172].mxu0  ;;  %8746 = vmatprep.subr.msk.bf16.mxu0 %vm948_vm2, %v3952_v12  ;;  %v3568_v63 = vpop.f32.mrb[172].mxu1  ;;  %8748 = vmatprep.subr.msk.bf16.mxu1 %vm948_vm2, %v3954_v34 }
 0x56c   : > { %v3508_v3 = vadd.f32 %v3507_v57, %v9413_v52  ;;  %v3509_v56 = vpop.f32.mrb[173].mxu0  ;;  %4020 = vmatpush1.bf16.msra.mxu0 %v3968_v62  ;;  %v3569_v17 = vadd.f32 %v3568_v63, %v9413_v52  ;;  %v3570_v15 = vpop.f32.mrb[173].mxu1  ;;  %4061 = vmatpush1.bf16.msra.mxu1 %v3974_v58 }
 0x56d   : > { %v3510_v18 = vadd.f32 %v3509_v56, %v9413_v52  ;;  %v3511_v13 = vpop.f32.mrb[174].mxu0  ;;  %v3571_v42 = vadd.f32 %v3570_v15, %v9413_v52  ;;  %v3572_v23 = vpop.f32.mrb[174].mxu1 }
 0x56e   : > { %v3512_v2 = vadd.f32 %v3511_v13, %v9417_v55  ;;  %v3513_v4 = vpop.f32.mrb[175].mxu0  ;;  %v3573_v50 = vadd.f32 %v3572_v23, %v9417_v55  ;;  %v3574_v24 = vpop.f32.mrb[175].mxu1  ;;  %v3843_v22 = vmax.f32 %v3508_v3, 0.0  ;;  %v3845_v10 = vmax.f32 %v3569_v17, 0.0 }
 0x56f   : > { %v3514_v49 = vadd.f32 %v3513_v4, %v9417_v55  ;;  %8747 = vmatmul.mubr.msk.bf16.vlgmr.msra.gmra.mrb[208].mxu0 %vm944_vm3, %v9448_v61  ;;  %v3575_v16 = vadd.f32 %v3574_v24, %v9417_v55  ;;  %8749 = vmatmul.mubr.msk.bf16.vlgmr.msra.gmra.mrb[208].mxu1 %vm944_vm3, %v9448_v61  ;;  %v3844_v45 = vmax.f32 %v3510_v18, 0.0  ;;  %v3846_v12 = vmax.f32 %v3571_v42, 0.0 }
 0x570   : > { %v3859_v28 = vmax.f32 %v3512_v2, 0.0  ;;  %4129 = vmatprep.mubr.bf16.mxu0 %v11350_v54  ;;  %v3861_v39 = vmax.f32 %v3573_v50, 0.0  ;;  %4170 = vmatprep.mubr.bf16.mxu1 %v11350_v54 }
 0x571   : > { %v3860_v51 = vmax.f32 %v3514_v49, 0.0  ;;  %v3862_v62 = vmax.f32 %v3575_v16, 0.0 }
 0x572   : > { %v3923_v34 = vpack.c.bf16 %v3859_v28, %v3843_v22  ;;  %v3925_v57 = vpack.c.bf16 %v3861_v39, %v3845_v10 }
 0x573   : > { %v3924_v58 = vpack.c.bf16 %v3860_v51, %v3844_v45  ;;  %v3517_v3 = vpop.f32.mrb[176].mxu0  ;;  %v3926_v63 = vpack.c.bf16 %v3862_v62, %v3846_v12  ;;  %v3578_v15 = vpop.f32.mrb[176].mxu1 }
 0x574   : > { %v3518_v56 = vadd.f32 %v3517_v3, %v9415_v53  ;;  %v3519_v13 = vpop.f32.mrb[177].mxu0  ;;  %v3579_v2 = vadd.f32 %v3578_v15, %v9415_v53  ;;  %v3580_v18 = vpop.f32.mrb[177].mxu1 }
 0x575   : > { %v3520_v17 = vadd.f32 %v3519_v13, %v9415_v53  ;;  %v3521_v23 = vpop.f32.mrb[178].mxu0  ;;  %4097 = vmatprep.subr.bf16.mxu0 %v3924_v58  ;;  %v3581_v4 = vadd.f32 %v3580_v18, %v9415_v53  ;;  %v3582_v50 = vpop.f32.mrb[178].mxu1  ;;  %4138 = vmatprep.subr.bf16.mxu1 %v3926_v63 }
 0x576   : > { %v3522_v42 = vadd.f32 %v3521_v23, %v9427_v32  ;;  %v3523_v49 = vpop.f32.mrb[179].mxu0  ;;  %4098 = vmatpush1.bf16.msra.mxu0 %v3923_v34  ;;  %v3583_v24 = vadd.f32 %v3582_v50, %v9427_v32  ;;  %v3584_v28 = vpop.f32.mrb[179].mxu1  ;;  %4139 = vmatpush1.bf16.msra.mxu1 %v3925_v57  ;;  %v3875_v16 = vmax.f32 %v3518_v56, 0.0  ;;  %v3877_v39 = vmax.f32 %v3579_v2, 0.0 }
 0x577   : > { %v3524_v22 = vadd.f32 %v3523_v49, %v9427_v32  ;;  %v3585_v45 = vadd.f32 %v3584_v28, %v9427_v32  ;;  %v3876_v51 = vmax.f32 %v3520_v17, 0.0  ;;  %v3878_v58 = vmax.f32 %v3581_v4, 0.0 }
 0x578   : > { %v3891_v10 = vmax.f32 %v3522_v42, 0.0  ;;  %v3893_v12 = vmax.f32 %v3583_v24, 0.0 }
 0x579   : > { %v3892_v62 = vmax.f32 %v3524_v22, 0.0  ;;  %v3894_v15 = vmax.f32 %v3585_v45, 0.0 }
 0x57a   : > { %v3939_v3 = vpack.c.bf16 %v3891_v10, %v3875_v16  ;;  %v3941_v63 = vpack.c.bf16 %v3893_v12, %v3877_v39 }
 0x57b   : > { %v3940_v13 = vpack.c.bf16 %v3892_v62, %v3876_v51  ;;  %v3527_v34 = vpop.f32.mrb[180].mxu0  ;;  %v3942_v18 = vpack.c.bf16 %v3894_v15, %v3878_v58  ;;  %v3588_v50 = vpop.f32.mrb[180].mxu1 }
 0x57c   : > { %v3528_v23 = vadd.f32 %v3527_v34, %v9437_v9  ;;  %v3529_v49 = vpop.f32.mrb[181].mxu0  ;;  %v3589_v57 = vadd.f32 %v3588_v50, %v9437_v9  ;;  %v3590_v42 = vpop.f32.mrb[181].mxu1 }
 0x57d   : > { %v3530_v56 = vadd.f32 %v3529_v49, %v9437_v9  ;;  %v3531_v2 = vpop.f32.mrb[182].mxu0  ;;  %4099 = vmatprep.subr.bf16.mxu0 %v3940_v13  ;;  %v3591_v4 = vadd.f32 %v3590_v42, %v9437_v9  ;;  %v3592_v24 = vpop.f32.mrb[182].mxu1  ;;  %4140 = vmatprep.subr.bf16.mxu1 %v3942_v18 }
 0x57e   : > { %v3907_v17 = vmax.f32 %v3528_v23, 0.0  ;;  %v3532_v22 = vpop.f32.mrb[183].mxu0  ;;  %4100 = vmatpush1.bf16.msra.mxu0 %v3939_v3  ;;  %v3909_v28 = vmax.f32 %v3589_v57, 0.0  ;;  %v3593_v10 = vpop.f32.mrb[183].mxu1  ;;  %4141 = vmatpush1.bf16.msra.mxu1 %v3941_v63 }
 0x57f   : > { %v3908_v16 = vmax.f32 %v3530_v56, 0.0  ;;  %v3910_v39 = vmax.f32 %v3591_v4, 0.0 }
 0x580   : > { %v3955_v45 = vpack.c.bf16 %v3907_v17, %v3907_v17  ;;  %v3957_v51 = vpack.c.bf16 %v3909_v28, %v3909_v28 }
 0x581   : > { %v3956_v12 = vpack.c.bf16 %v3908_v16, %v3908_v16  ;;  %v3958_v62 = vpack.c.bf16 %v3910_v39, %v3910_v39 }
 0x582   : > { %v3980_v58 = vsel %vm948_vm2, %v3955_v45, 0  ;;  %v3986_v13 = vsel %vm948_vm2, %v3957_v51, 0 }
 0x583   : > { %v3629_v15 = vpop.f32.mrb[184].mxu0  ;;  %8750 = vmatprep.subr.msk.bf16.mxu0 %vm948_vm2, %v3956_v12  ;;  %v3690_v18 = vpop.f32.mrb[184].mxu1  ;;  %8752 = vmatprep.subr.msk.bf16.mxu1 %vm948_vm2, %v3958_v62 }
 0x584   : > { %v3630_v34 = vadd.f32 %v3629_v15, %v9413_v52  ;;  %v3631_v3 = vpop.f32.mrb[185].mxu0  ;;  %4102 = vmatpush1.bf16.msra.mxu0 %v3980_v58  ;;  %v3691_v63 = vadd.f32 %v3690_v18, %v9413_v52  ;;  %v3692_v50 = vpop.f32.mrb[185].mxu1  ;;  %4143 = vmatpush1.bf16.msra.mxu1 %v3986_v13 }
 0x585   : > { %v3632_v23 = vadd.f32 %v3631_v3, %v9413_v52  ;;  %v3633_v49 = vpop.f32.mrb[186].mxu0  ;;  %v3693_v57 = vadd.f32 %v3692_v50, %v9413_v52  ;;  %v3694_v42 = vpop.f32.mrb[186].mxu1 }
 0x586   : > { %v3634_v56 = vadd.f32 %v3633_v49, %v9417_v55  ;;  %v3635_v2 = vpop.f32.mrb[187].mxu0  ;;  %v3695_v17 = vadd.f32 %v3694_v42, %v9417_v55  ;;  %v3696_v24 = vpop.f32.mrb[187].mxu1  ;;  %v3847_v22 = vmax.f32 %v3630_v34, 0.0  ;;  %v3849_v10 = vmax.f32 %v3691_v63, 0.0 }
 0x587   : > { %v3636_v4 = vadd.f32 %v3635_v2, %v9417_v55  ;;  %8751 = vmatmul.mubr.msk.bf16.vlgmr.msra.gmra.mrb[212].mxu0 %vm944_vm3, %v9448_v61  ;;  %v3697_v16 = vadd.f32 %v3696_v24, %v9417_v55  ;;  %8753 = vmatmul.mubr.msk.bf16.vlgmr.msra.gmra.mrb[212].mxu1 %vm944_vm3, %v9448_v61  ;;  %v3848_v45 = vmax.f32 %v3632_v23, 0.0  ;;  %v3850_v12 = vmax.f32 %v3693_v57, 0.0 }
 0x588   : > { %v3863_v28 = vmax.f32 %v3634_v56, 0.0  ;;  %4211 = vmatprep.mubr.bf16.mxu0 %v11350_v54  ;;  %v3865_v39 = vmax.f32 %v3695_v17, 0.0  ;;  %4252 = vmatprep.mubr.bf16.mxu1 %v11350_v54 }
 0x589   : > { %v3864_v51 = vmax.f32 %v3636_v4, 0.0  ;;  %v3866_v58 = vmax.f32 %v3697_v16, 0.0 }
 0x58a   : > { %v3927_v62 = vpack.c.bf16 %v3863_v28, %v3847_v22  ;;  %v3929_v15 = vpack.c.bf16 %v3865_v39, %v3849_v10 }
 0x58b   : > { %v3928_v13 = vpack.c.bf16 %v3864_v51, %v3848_v45  ;;  %v3639_v34 = vpop.f32.mrb[188].mxu0  ;;  %v3930_v18 = vpack.c.bf16 %v3866_v58, %v3850_v12  ;;  %v3700_v50 = vpop.f32.mrb[188].mxu1 }
 0x58c   : > { %v3640_v3 = vadd.f32 %v3639_v34, %v9415_v53  ;;  %v3641_v49 = vpop.f32.mrb[189].mxu0  ;;  %v3701_v56 = vadd.f32 %v3700_v50, %v9415_v53  ;;  %v3702_v23 = vpop.f32.mrb[189].mxu1 }
 0x58d   : > { %v3642_v63 = vadd.f32 %v3641_v49, %v9415_v53  ;;  %v3643_v42 = vpop.f32.mrb[190].mxu0  ;;  %4179 = vmatprep.subr.bf16.mxu0 %v3928_v13  ;;  %v3703_v2 = vadd.f32 %v3702_v23, %v9415_v53  ;;  %v3704_v17 = vpop.f32.mrb[190].mxu1  ;;  %4220 = vmatprep.subr.bf16.mxu1 %v3930_v18 }
 0x58e   : > { %v3644_v57 = vadd.f32 %v3643_v42, %v9427_v32  ;;  %v3645_v4 = vpop.f32.mrb[191].mxu0  ;;  %4180 = vmatpush1.bf16.msra.mxu0 %v3927_v62  ;;  %v3705_v24 = vadd.f32 %v3704_v17, %v9427_v32  ;;  %v3706_v28 = vpop.f32.mrb[191].mxu1  ;;  %4221 = vmatpush1.bf16.msra.mxu1 %v3929_v15  ;;  %v3879_v16 = vmax.f32 %v3640_v3, 0.0  ;;  %v3881_v39 = vmax.f32 %v3701_v56, 0.0 }
 0x58f   : > { %v3646_v22 = vadd.f32 %v3645_v4, %v9427_v32  ;;  %v3707_v45 = vadd.f32 %v3706_v28, %v9427_v32  ;;  %v3880_v51 = vmax.f32 %v3642_v63, 0.0  ;;  %v3882_v13 = vmax.f32 %v3703_v2, 0.0 }
 0x590   : > { %v3895_v10 = vmax.f32 %v3644_v57, 0.0  ;;  %v3897_v12 = vmax.f32 %v3705_v24, 0.0 }
 0x591   : > { %v3896_v58 = vmax.f32 %v3646_v22, 0.0  ;;  %v3898_v50 = vmax.f32 %v3707_v45, 0.0 }
 0x592   : > { %v3943_v34 = vpack.c.bf16 %v3895_v10, %v3879_v16  ;;  %v3945_v18 = vpack.c.bf16 %v3897_v12, %v3881_v39 }
 0x593   : > { %v3944_v49 = vpack.c.bf16 %v3896_v58, %v3880_v51  ;;  %v3649_v62 = vpop.f32.mrb[192].mxu0  ;;  %v3946_v23 = vpack.c.bf16 %v3898_v50, %v3882_v13  ;;  %v3710_v17 = vpop.f32.mrb[192].mxu1 }
 0x594   : > { %v3650_v42 = vadd.f32 %v3649_v62, %v9437_v9  ;;  %v3651_v4 = vpop.f32.mrb[193].mxu0  ;;  %v3711_v15 = vadd.f32 %v3710_v17, %v9437_v9  ;;  %v3712_v57 = vpop.f32.mrb[193].mxu1 }
 0x595   : > { %v3652_v3 = vadd.f32 %v3651_v4, %v9437_v9  ;;  %v3653_v56 = vpop.f32.mrb[194].mxu0  ;;  %4181 = vmatprep.subr.bf16.mxu0 %v3944_v49  ;;  %v3713_v2 = vadd.f32 %v3712_v57, %v9437_v9  ;;  %v3714_v24 = vpop.f32.mrb[194].mxu1  ;;  %4222 = vmatprep.subr.bf16.mxu1 %v3946_v23 }
 0x596   : > { %v3911_v63 = vmax.f32 %v3650_v42, 0.0  ;;  %v3654_v22 = vpop.f32.mrb[195].mxu0  ;;  %4182 = vmatpush1.bf16.msra.mxu0 %v3943_v34  ;;  %v3913_v28 = vmax.f32 %v3711_v15, 0.0  ;;  %v3715_v10 = vpop.f32.mrb[195].mxu1  ;;  %4223 = vmatpush1.bf16.msra.mxu1 %v3945_v18 }
 0x597   : > { %v3912_v16 = vmax.f32 %v3652_v3, 0.0  ;;  %v3914_v39 = vmax.f32 %v3713_v2, 0.0 }
 0x598   : > { %v3959_v45 = vpack.c.bf16 %v3911_v63, %v3911_v63  ;;  %v3961_v51 = vpack.c.bf16 %v3913_v28, %v3913_v28 }
 0x599   : > { %v3960_v12 = vpack.c.bf16 %v3912_v16, %v3912_v16  ;;  %v3962_v58 = vpack.c.bf16 %v3914_v39, %v3914_v39 }
 0x59a   : > { %v3992_v13 = vsel %vm948_vm2, %v3959_v45, 0  ;;  %v3998_v49 = vsel %vm948_vm2, %v3961_v51, 0 }
 0x59b   : > { %v3751_v50 = vpop.f32.mrb[196].mxu0  ;;  %8754 = vmatprep.subr.msk.bf16.mxu0 %vm948_vm2, %v3960_v12  ;;  %v3812_v23 = vpop.f32.mrb[196].mxu1  ;;  %8756 = vmatprep.subr.msk.bf16.mxu1 %vm948_vm2, %v3962_v58 }
 0x59c   : > { %v3752_v62 = vadd.f32 %v3751_v50, %v9413_v52  ;;  %v3753_v34 = vpop.f32.mrb[197].mxu0  ;;  %4184 = vmatpush1.bf16.msra.mxu0 %v3992_v13  ;;  %v3813_v18 = vadd.f32 %v3812_v23, %v9413_v52  ;;  %v3814_v17 = vpop.f32.mrb[197].mxu1  ;;  %4225 = vmatpush1.bf16.msra.mxu1 %v3998_v49 }
 0x59d   : > { %v3754_v42 = vadd.f32 %v3753_v34, %v9413_v52  ;;  %v3755_v4 = vpop.f32.mrb[198].mxu0  ;;  %v3815_v15 = vadd.f32 %v3814_v17, %v9413_v52  ;;  %v3816_v57 = vpop.f32.mrb[198].mxu1 }
 0x59e   : > { %v3756_v3 = vadd.f32 %v3755_v4, %v9417_v55  ;;  %v3757_v56 = vpop.f32.mrb[199].mxu0  ;;  %v3817_v63 = vadd.f32 %v3816_v57, %v9417_v55  ;;  %v3818_v24 = vpop.f32.mrb[199].mxu1  ;;  %v3851_v22 = vmax.f32 %v3752_v62, 0.0  ;;  %v3853_v10 = vmax.f32 %v3813_v18, 0.0 }
 0x59f   : > { %v3758_v2 = vadd.f32 %v3757_v56, %v9417_v55  ;;  %8755 = vmatmul.mubr.msk.bf16.vlgmr.msra.gmra.mrb[216].mxu0 %vm944_vm3, %v9448_v61  ;;  %v3819_v16 = vadd.f32 %v3818_v24, %v9417_v55  ;;  %8757 = vmatmul.mubr.msk.bf16.vlgmr.msra.gmra.mrb[216].mxu1 %vm944_vm3, %v9448_v61  ;;  %v3852_v45 = vmax.f32 %v3754_v42, 0.0  ;;  %v3854_v12 = vmax.f32 %v3815_v15, 0.0 }
 0x5a0   : > { %v3867_v28 = vmax.f32 %v3756_v3, 0.0  ;;  %4293 = vmatprep.mubr.bf16.mxu0 %v11350_v54  ;;  %v3869_v39 = vmax.f32 %v3817_v63, 0.0  ;;  %4334 = vmatprep.mubr.bf16.mxu1 %v11350_v54 }
 0x5a1   : > { %v3868_v51 = vmax.f32 %v3758_v2, 0.0  ;;  %v3870_v13 = vmax.f32 %v3819_v16, 0.0 }
 0x5a2   : > { %v3931_v58 = vpack.c.bf16 %v3867_v28, %v3851_v22  ;;  %v3933_v50 = vpack.c.bf16 %v3869_v39, %v3853_v10 }
 0x5a3   : > { %v3932_v49 = vpack.c.bf16 %v3868_v51, %v3852_v45  ;;  %v3761_v62 = vpop.f32.mrb[200].mxu0  ;;  %v3934_v23 = vpack.c.bf16 %v3870_v13, %v3854_v12  ;;  %v3822_v17 = vpop.f32.mrb[200].mxu1 }
 0x5a4   : > { %v3762_v34 = vadd.f32 %v3761_v62, %v9415_v53  ;;  %v3763_v4 = vpop.f32.mrb[201].mxu0  ;;  %v3823_v3 = vadd.f32 %v3822_v17, %v9415_v53  ;;  %v3824_v42 = vpop.f32.mrb[201].mxu1 }
 0x5a5   : > { %v3764_v18 = vadd.f32 %v3763_v4, %v9415_v53  ;;  %v3765_v57 = vpop.f32.mrb[202].mxu0  ;;  %4261 = vmatprep.subr.bf16.mxu0 %v3932_v49  ;;  %v3825_v56 = vadd.f32 %v3824_v42, %v9415_v53  ;;  %v3826_v63 = vpop.f32.mrb[202].mxu1  ;;  %4302 = vmatprep.subr.bf16.mxu1 %v3934_v23 }
 0x5a6   : > { %v3766_v15 = vadd.f32 %v3765_v57, %v9427_v32  ;;  %v3767_v2 = vpop.f32.mrb[203].mxu0  ;;  %4262 = vmatpush1.bf16.msra.mxu0 %v3931_v58  ;;  %v3827_v24 = vadd.f32 %v3826_v63, %v9427_v32  ;;  %v3828_v28 = vpop.f32.mrb[203].mxu1  ;;  %4303 = vmatpush1.bf16.msra.mxu1 %v3933_v50  ;;  %v3883_v16 = vmax.f32 %v3762_v34, 0.0  ;;  %v3885_v39 = vmax.f32 %v3823_v3, 0.0 }
 0x5a7   : > { %v3768_v22 = vadd.f32 %v3767_v2, %v9427_v32  ;;  %v3829_v45 = vadd.f32 %v3828_v28, %v9427_v32  ;;  %v3884_v51 = vmax.f32 %v3764_v18, 0.0  ;;  %v3886_v49 = vmax.f32 %v3825_v56, 0.0 }
 0x5a8   : > { %v3899_v10 = vmax.f32 %v3766_v15, 0.0  ;;  %v3901_v12 = vmax.f32 %v3827_v24, 0.0 }
 0x5a9   : > { %v3900_v13 = vmax.f32 %v3768_v22, 0.0  ;;  %v3902_v17 = vmax.f32 %v3829_v45, 0.0 }
 0x5aa   : > { %v3947_v62 = vpack.c.bf16 %v3899_v10, %v3883_v16  ;;  %v3949_v23 = vpack.c.bf16 %v3901_v12, %v3885_v39 }
 0x5ab   : > { %v3948_v4 = vpack.c.bf16 %v3900_v13, %v3884_v51  ;;  %v3771_v58 = vpop.f32.mrb[204].mxu0  ;;  %v3950_v42 = vpack.c.bf16 %v3902_v17, %v3886_v49  ;;  %v3832_v63 = vpop.f32.mrb[204].mxu1 }
 0x5ac   : > { %v3772_v57 = vadd.f32 %v3771_v58, %v9437_v9  ;;  %v3773_v2 = vpop.f32.mrb[205].mxu0  ;;  %v3833_v50 = vadd.f32 %v3832_v63, %v9437_v9  ;;  %v3834_v15 = vpop.f32.mrb[205].mxu1 }
 0x5ad   : > { %v3774_v34 = vadd.f32 %v3773_v2, %v9437_v9  ;;  %v3775_v3 = vpop.f32.mrb[206].mxu0  ;;  %4263 = vmatprep.subr.bf16.mxu0 %v3948_v4  ;;  %v3835_v56 = vadd.f32 %v3834_v15, %v9437_v9  ;;  %v3836_v24 = vpop.f32.mrb[206].mxu1  ;;  %4304 = vmatprep.subr.bf16.mxu1 %v3950_v42 }
 0x5ae   : > { %v3915_v18 = vmax.f32 %v3772_v57, 0.0  ;;  %v3776_v22 = vpop.f32.mrb[207].mxu0  ;;  %4264 = vmatpush1.bf16.msra.mxu0 %v3947_v62  ;;  %v3917_v28 = vmax.f32 %v3833_v50, 0.0  ;;  %v3837_v10 = vpop.f32.mrb[207].mxu1  ;;  %4305 = vmatpush1.bf16.msra.mxu1 %v3949_v23 }
 0x5af   : > { %v3916_v16 = vmax.f32 %v3774_v34, 0.0  ;;  %v3918_v39 = vmax.f32 %v3835_v56, 0.0 }
 0x5b0   : > { %v3963_v45 = vpack.c.bf16 %v3915_v18, %v3915_v18  ;;  %v3965_v51 = vpack.c.bf16 %v3917_v28, %v3917_v28 }
 0x5b1   : > { %v3964_v12 = vpack.c.bf16 %v3916_v16, %v3916_v16  ;;  %v3966_v13 = vpack.c.bf16 %v3918_v39, %v3918_v39 }
 0x5b2   : > { %v4004_v49 = vsel %vm948_vm2, %v3963_v45, 0  ;;  %v4010_v17 = vsel %vm948_vm2, %v3965_v51, 0 }
 0x5b3   : > { %8758 = vmatprep.subr.msk.bf16.mxu0 %vm948_vm2, %v3964_v12  ;;  %8760 = vmatprep.subr.msk.bf16.mxu1 %vm948_vm2, %v3966_v13 }
 0x5b4   : > { %4266 = vmatpush1.bf16.msra.mxu0 %v4004_v49  ;;  %4307 = vmatpush1.bf16.msra.mxu1 %v4010_v17 }
 0x5b7   : > { %8759 = vmatmul.mubr.msk.bf16.vlgmr.msra.gmra.mrb[220].mxu0 %vm944_vm3, %v9448_v61  ;;  %8761 = vmatmul.mubr.msk.bf16.vlgmr.msra.gmra.mrb[220].mxu1 %vm944_vm3, %v9448_v61 }
 0x5b8   : > { %4455 = vmatprep.mubr.bf16.mxu0 %v11350_v54  ;;  %4496 = vmatprep.mubr.bf16.mxu1 %v11350_v54 }
 0x642   : > { %v4049_v62 = vpop.f32.mrb[208].mxu0  ;;  %v4090_v4 = vpop.f32.mrb[208].mxu1 }
 0x643   : > { %v4050_v23 = vadd.f32 %v4049_v62, %v9547_v26  ;;  %v4051_v58 = vpop.f32.mrb[209].mxu0  ;;  %v4091_v42 = vadd.f32 %v4090_v4, %v9547_v26  ;;  %v4092_v63 = vpop.f32.mrb[209].mxu1 }
 0x644   : > { %v4052_v57 = vadd.f32 %v4051_v58, %v9547_v26  ;;  %v4053_v2 = vpop.f32.mrb[210].mxu0  ;;  %v4093_v34 = vadd.f32 %v4092_v63, %v9547_v26  ;;  %v4094_v15 = vpop.f32.mrb[210].mxu1 }
 0x645   : > { %v4343_v50 = vmax.f32 %v4050_v23, 0.0  ;;  %v4054_v3 = vpop.f32.mrb[211].mxu0  ;;  %v4345_v18 = vmax.f32 %v4091_v42, 0.0  ;;  %v4095_v24 = vpop.f32.mrb[211].mxu1 }
 0x646   : > { %v4344_v56 = vmax.f32 %v4052_v57, 0.0  ;;  %v4346_v28 = vmax.f32 %v4093_v34, 0.0 }
 0x647   : > { %v4359_v22 = vpack.c.bf16 %v4343_v50, %v4343_v50  ;;  %v4361_v16 = vpack.c.bf16 %v4345_v18, %v4345_v18 }
 0x648   : > { %v4360_v10 = vpack.c.bf16 %v4344_v56, %v4344_v56  ;;  %v4362_v45 = vpack.c.bf16 %v4346_v28, %v4346_v28 }
 0x649   : > { %v4376_v39 = vsel %vm1366_vm4, %v4359_v22, 0  ;;  %v4382_v51 = vsel %vm1366_vm4, %v4361_v16, 0 }
 0x64a   : > { %8762 = vmatprep.subr.msk.bf16.mxu0 %vm1366_vm4, %v4360_v10  ;;  %8764 = vmatprep.subr.msk.bf16.mxu1 %vm1366_vm4, %v4362_v45 }
 0x64b   : > { %4424 = vmatpush1.bf16.msra.mxu0 %v4376_v39  ;;  %4465 = vmatpush1.bf16.msra.mxu1 %v4382_v51 }
 0x64e   : > { %8763 = vmatmul.mubr.msk.bf16.vlgmr.msra.gmra.mrb[224].mxu0 %vm1362_vm5, %v9559_v8  ;;  %8765 = vmatmul.mubr.msk.bf16.vlgmr.msra.gmra.mrb[224].mxu1 %vm1362_vm5, %v9559_v8 }
 0x64f   : > { %4537 = vmatprep.mubr.bf16.mxu0 %v11350_v54  ;;  %4578 = vmatprep.mubr.bf16.mxu1 %v11350_v54 }
 0x65a   : > { %v4131_v12 = vpop.f32.mrb[212].mxu0  ;;  %v4172_v49 = vpop.f32.mrb[212].mxu1 }
 0x65b   : > { %v4132_v13 = vadd.f32 %v4131_v12, %v9547_v26  ;;  %v4133_v17 = vpop.f32.mrb[213].mxu0  ;;  %v4173_v62 = vadd.f32 %v4172_v49, %v9547_v26  ;;  %v4174_v4 = vpop.f32.mrb[213].mxu1 }
 0x65c   : > { %v4134_v23 = vadd.f32 %v4133_v17, %v9547_v26  ;;  %v4135_v58 = vpop.f32.mrb[214].mxu0  ;;  %v4175_v57 = vadd.f32 %v4174_v4, %v9547_v26  ;;  %v4176_v63 = vpop.f32.mrb[214].mxu1 }
 0x65d   : > { %v4347_v42 = vmax.f32 %v4132_v13, 0.0  ;;  %v4136_v2 = vpop.f32.mrb[215].mxu0  ;;  %v4349_v50 = vmax.f32 %v4173_v62, 0.0  ;;  %v4177_v15 = vpop.f32.mrb[215].mxu1 }
 0x65e   : > { %v4348_v34 = vmax.f32 %v4134_v23, 0.0  ;;  %v4350_v18 = vmax.f32 %v4175_v57, 0.0 }
 0x65f   : > { %v4363_v3 = vpack.c.bf16 %v4347_v42, %v4347_v42  ;;  %v4365_v56 = vpack.c.bf16 %v4349_v50, %v4349_v50 }
 0x660   : > { %v4364_v24 = vpack.c.bf16 %v4348_v34, %v4348_v34  ;;  %v4366_v22 = vpack.c.bf16 %v4350_v18, %v4350_v18 }
 0x661   : > { %v4388_v28 = vsel %vm1366_vm4, %v4363_v3, 0  ;;  %v4394_v16 = vsel %vm1366_vm4, %v4365_v56, 0 }
 0x662   : > { %8766 = vmatprep.subr.msk.bf16.mxu0 %vm1366_vm4, %v4364_v24  ;;  %8768 = vmatprep.subr.msk.bf16.mxu1 %vm1366_vm4, %v4366_v22 }
 0x663   : > { %4506 = vmatpush1.bf16.msra.mxu0 %v4388_v28  ;;  %4547 = vmatpush1.bf16.msra.mxu1 %v4394_v16 }
 0x666   : > { %8767 = vmatmul.mubr.msk.bf16.vlgmr.msra.gmra.mrb[228].mxu0 %vm1362_vm5, %v9559_v8  ;;  %8769 = vmatmul.mubr.msk.bf16.vlgmr.msra.gmra.mrb[228].mxu1 %vm1362_vm5, %v9559_v8 }
 0x667   : > { %4619 = vmatprep.mubr.bf16.mxu0 %v11350_v54  ;;  %4660 = vmatprep.mubr.bf16.mxu1 %v11350_v54 }
 0x672   : > { %v4213_v10 = vpop.f32.mrb[216].mxu0  ;;  %v4254_v39 = vpop.f32.mrb[216].mxu1 }
 0x673   : > { %v4214_v45 = vadd.f32 %v4213_v10, %v9547_v26  ;;  %v4215_v51 = vpop.f32.mrb[217].mxu0  ;;  %v4255_v12 = vadd.f32 %v4254_v39, %v9547_v26  ;;  %v4256_v49 = vpop.f32.mrb[217].mxu1 }
 0x674   : > { %v4216_v13 = vadd.f32 %v4215_v51, %v9547_v26  ;;  %v4217_v17 = vpop.f32.mrb[218].mxu0  ;;  %v4257_v23 = vadd.f32 %v4256_v49, %v9547_v26  ;;  %v4258_v4 = vpop.f32.mrb[218].mxu1 }
 0x675   : > { %v4351_v62 = vmax.f32 %v4214_v45, 0.0  ;;  %v4218_v58 = vpop.f32.mrb[219].mxu0  ;;  %v4353_v42 = vmax.f32 %v4255_v12, 0.0  ;;  %v4259_v63 = vpop.f32.mrb[219].mxu1 }
 0x676   : > { %v4352_v57 = vmax.f32 %v4216_v13, 0.0  ;;  %v4354_v50 = vmax.f32 %v4257_v23, 0.0 }
 0x677   : > { %v4367_v2 = vpack.c.bf16 %v4351_v62, %v4351_v62  ;;  %v4369_v34 = vpack.c.bf16 %v4353_v42, %v4353_v42 }
 0x678   : > { %v4368_v15 = vpack.c.bf16 %v4352_v57, %v4352_v57  ;;  %v4370_v3 = vpack.c.bf16 %v4354_v50, %v4354_v50  ;;  %v4783_v50 = vrot.slane %v9239_v7, 3 }
 0x679   : > { %v4400_v18 = vsel %vm1366_vm4, %v4367_v2, 0  ;;  %v4406_v56 = vsel %vm1366_vm4, %v4369_v34, 0  ;;  %v4784_v2 = vrot.slane %v9235_v5, 3 }
 0x67a   : > { %8770 = vmatprep.subr.msk.bf16.mxu0 %vm1366_vm4, %v4368_v15  ;;  %8772 = vmatprep.subr.msk.bf16.mxu1 %vm1366_vm4, %v4370_v3  ;;  %v4786_v3 = vrot.slane %v9237_v6, 3  ;;  %v4800_v5 = vsel %vm274_vm0, %v4783_v50, 0  ;;  %v4788_v6 = vrot.slane %v9266_v19, 3  ;;  %v4789_v19 = vrot.slane %v9275_v25, 3 }
 0x67b   : > { %4588 = vmatpush1.bf16.msra.mxu0 %v4400_v18  ;;  %4629 = vmatpush1.bf16.msra.mxu1 %v4406_v56  ;;  %v4785_v18 = vrot.slane %v9248_v11, 3  ;;  %v4790_v11 = vrot.slane %v9268_v20, 3  ;;  %v4792_v20 = vrot.slane %v9283_v27, 3  ;;  %v4793_v25 = vrot.slane %v9325_v37, 3 }
 0x67c   : > { %v4797_v37 = vrot.slane %v9363_v47, 3 }
 0x67d   : > { %v4806_v7 = vsel %vm274_vm0, %v4785_v18, 0 }
 0x67e   : > { %8771 = vmatmul.mubr.msk.bf16.vlgmr.msra.gmra.mrb[232].mxu0 %vm1362_vm5, %v9559_v8  ;;  %8773 = vmatmul.mubr.msk.bf16.vlgmr.msra.gmra.mrb[232].mxu1 %vm1362_vm5, %v9559_v8 }
 0x67f   : > { %4701 = vmatprep.mubr.bf16.mxu0 %v11350_v54  ;;  %4742 = vmatprep.mubr.bf16.mxu1 %v11350_v54 }
 0x68a   : > { %v4295_v24 = vpop.f32.mrb[220].mxu0  ;;  %v4336_v28 = vpop.f32.mrb[220].mxu1 }
 0x68b   : > { %v4296_v22 = vadd.f32 %v4295_v24, %v9547_v26  ;;  %v4297_v16 = vpop.f32.mrb[221].mxu0  ;;  %v4337_v10 = vadd.f32 %v4336_v28, %v9547_v26  ;;  %v4338_v39 = vpop.f32.mrb[221].mxu1  ;;  %v4787_v24 = vrot.slane %v9270_v21, 3  ;;  %v4818_v28 = vsel %vm274_vm0, %v4789_v19, 0 }
 0x68c   : > { %v4298_v45 = vadd.f32 %v4297_v16, %v9547_v26  ;;  %v4299_v51 = vpop.f32.mrb[222].mxu0  ;;  %v4339_v13 = vadd.f32 %v4338_v39, %v9547_v26  ;;  %v4340_v49 = vpop.f32.mrb[222].mxu1  ;;  %v4794_v16 = vrot.slane %v9289_v29, 3  ;;  %v4791_v21 = vrot.slane %v9323_v36, 3 }
 0x68d   : > { %v4355_v12 = vmax.f32 %v4296_v22, 0.0  ;;  %v4300_v17 = vpop.f32.mrb[223].mxu0  ;;  %v4357_v62 = vmax.f32 %v4337_v10, 0.0  ;;  %v4341_v4 = vpop.f32.mrb[223].mxu1  ;;  %v4812_v22 = vsel %vm274_vm0, %v4787_v24, 0  ;;  %v4796_v29 = vrot.slane %v9331_v41, 3 }
 0x68e   : > { %v4356_v23 = vmax.f32 %v4298_v45, 0.0  ;;  %v4358_v42 = vmax.f32 %v4339_v13, 0.0  ;;  %v4824_v27 = vsel %vm274_vm0, %v4791_v21, 0  ;;  %v4830_v10 = vsel %vm274_vm0, %v4793_v25, 0 }
 0x68f   : > { %v4371_v58 = vpack.c.bf16 %v4355_v12, %v4355_v12  ;;  %v4373_v57 = vpack.c.bf16 %v4357_v62, %v4357_v62  ;;  %v4798_v45 = vrot.slane %v9337_v43, 3  ;;  %v4795_v36 = vrot.slane %v9361_v46, 3 }
 0x690   : > { %v4372_v63 = vpack.c.bf16 %v4356_v23, %v4356_v23  ;;  %v4374_v34 = vpack.c.bf16 %v4358_v42, %v4358_v42  ;;  %v4842_v43 = vsel %vm274_vm0, %v4797_v37, 0 }
 0x691   : > { %v4412_v15 = vsel %vm1366_vm4, %v4371_v58, 0  ;;  %v4418_v56 = vsel %vm1366_vm4, %v4373_v57, 0  ;;  %v4836_v41 = vsel %vm274_vm0, %v4795_v36, 0 }
 0x692   : > { %8774 = vmatprep.subr.msk.bf16.mxu0 %vm1366_vm4, %v4372_v63  ;;  %8776 = vmatprep.subr.msk.bf16.mxu1 %vm1366_vm4, %v4374_v34 }
 0x693   : > { %4670 = vmatpush1.bf16.msra.mxu0 %v4412_v15  ;;  %4711 = vmatpush1.bf16.msra.mxu1 %v4418_v56 }
 0x694   : > { %8778 = vmatprep.subr.msk.bf16.mxu0 %vm274_vm0, %v4784_v2  ;;  %8782 = vmatprep.subr.msk.bf16.mxu1 %vm274_vm0, %v4786_v3 }
 0x696   : > { %8775 = vmatmul.mubr.msk.bf16.vlgmr.msra.gmra.mrb[236].mxu0 %vm1362_vm5, %v9559_v8  ;;  %8777 = vmatmul.mubr.msk.bf16.vlgmr.msra.gmra.mrb[236].mxu1 %vm1362_vm5, %v9559_v8 }
 0x697   : > { %4848 = vmatpush1.bf16.msra.mxu0 %v4800_v5  ;;  %4909 = vmatpush1.bf16.msra.mxu1 %v4806_v7 }
 0x698   : > { %4879 = vmatprep.mubr.bf16.mxu0 %v11350_v54  ;;  %4940 = vmatprep.mubr.bf16.mxu1 %v11350_v54 }
 0x699   : > { %8786 = vmatprep.subr.msk.bf16.mxu0 %vm274_vm0, %v4788_v6  ;;  %8790 = vmatprep.subr.msk.bf16.mxu1 %vm274_vm0, %v4790_v11 }
 0x69e   : > { %8779 = vmatmul.mubr.msk.bf16.vlgmr.msra.gmra.mrb[240].mxu0 %vm264_vm1, %v9259_v14  ;;  %8783 = vmatmul.mubr.msk.bf16.vlgmr.msra.gmra.mrb[240].mxu1 %vm264_vm1, %v9259_v14 }
 0x69f   : > { %4889 = vmatprep.mubr.bf16.mxu0 %v11350_v54  ;;  %4950 = vmatprep.mubr.bf16.mxu1 %v11350_v54 }
 0x6a0   : > { %4970 = vmatpush1.bf16.msra.mxu0 %v4812_v22  ;;  %5031 = vmatpush1.bf16.msra.mxu1 %v4818_v28 }
 0x6a1   : > { %8794 = vmatprep.subr.msk.bf16.mxu0 %vm274_vm0, %v4792_v20  ;;  %8798 = vmatprep.subr.msk.bf16.mxu1 %vm274_vm0, %v4794_v16 }
 0x6a6   : > { %8780 = vmatmul.mubr.msk.bf16.gmra.mrb[244].mxu0 %vm264_vm1, %v9300_v31  ;;  %8784 = vmatmul.mubr.msk.bf16.gmra.mrb[244].mxu1 %vm264_vm1, %v9300_v31 }
 0x6a7   : > { %4899 = vmatprep.mubr.bf16.mxu0 %v11350_v54  ;;  %4960 = vmatprep.mubr.bf16.mxu1 %v11350_v54 }
 0x6ae   : > { %8781 = vmatmul.mubr.msk.bf16.gmra.mrb[248].mxu0 %vm264_vm1, %v9313_v33  ;;  %8785 = vmatmul.mubr.msk.bf16.gmra.mrb[248].mxu1 %vm264_vm1, %v9313_v33 }
 0x6af   : > { %5001 = vmatprep.mubr.bf16.mxu0 %v11350_v54  ;;  %5062 = vmatprep.mubr.bf16.mxu1 %v11350_v54 }
 0x6b6   : > { %8787 = vmatmul.mubr.msk.bf16.vlgmr.msra.gmra.mrb[252].mxu0 %vm264_vm1, %v9259_v14  ;;  %8791 = vmatmul.mubr.msk.bf16.vlgmr.msra.gmra.mrb[252].mxu1 %vm264_vm1, %v9259_v14 }
 0x6b7   : > { %5011 = vmatprep.mubr.bf16.mxu0 %v11350_v54  ;;  %5072 = vmatprep.mubr.bf16.mxu1 %v11350_v54 }
 0x6b8   : > { %5092 = vmatpush1.bf16.msra.mxu0 %v4824_v27  ;;  %5153 = vmatpush1.bf16.msra.mxu1 %v4830_v10 }
 0x6b9   : > { %8802 = vmatprep.subr.msk.bf16.mxu0 %vm274_vm0, %v4796_v29  ;;  %8806 = vmatprep.subr.msk.bf16.mxu1 %vm274_vm0, %v4798_v45 }
 0x6be   : > { %8788 = vmatmul.mubr.msk.bf16.gmra.mrb[0].mxu0 %vm264_vm1, %v9300_v31  ;;  %8792 = vmatmul.mubr.msk.bf16.gmra.mrb[0].mxu1 %vm264_vm1, %v9300_v31 }
 0x6bf   : > { %5021 = vmatprep.mubr.bf16.mxu0 %v11350_v54  ;;  %5082 = vmatprep.mubr.bf16.mxu1 %v11350_v54 }
 0x6c6   : > { %8789 = vmatmul.mubr.msk.bf16.gmra.mrb[4].mxu0 %vm264_vm1, %v9313_v33  ;;  %8793 = vmatmul.mubr.msk.bf16.gmra.mrb[4].mxu1 %vm264_vm1, %v9313_v33 }
 0x6c7   : > { %5123 = vmatprep.mubr.bf16.mxu0 %v11350_v54  ;;  %5184 = vmatprep.mubr.bf16.mxu1 %v11350_v54 }
 0x6ce   : > { %8795 = vmatmul.mubr.msk.bf16.vlgmr.msra.gmra.mrb[8].mxu0 %vm264_vm1, %v9259_v14  ;;  %8799 = vmatmul.mubr.msk.bf16.vlgmr.msra.gmra.mrb[8].mxu1 %vm264_vm1, %v9259_v14 }
 0x6cf   : > { %5133 = vmatprep.mubr.bf16.mxu0 %v11350_v54  ;;  %5194 = vmatprep.mubr.bf16.mxu1 %v11350_v54 }
 0x6d0   : > { %5214 = vmatpush1.bf16.msra.mxu0 %v4836_v41  ;;  %5275 = vmatpush1.bf16.msra.mxu1 %v4842_v43 }
 0x6d6   : > { %8796 = vmatmul.mubr.msk.bf16.gmra.mrb[12].mxu0 %vm264_vm1, %v9300_v31  ;;  %8800 = vmatmul.mubr.msk.bf16.gmra.mrb[12].mxu1 %vm264_vm1, %v9300_v31 }
 0x6d7   : > { %5143 = vmatprep.mubr.bf16.mxu0 %v11350_v54  ;;  %5204 = vmatprep.mubr.bf16.mxu1 %v11350_v54 }
 0x6de   : > { %8797 = vmatmul.mubr.msk.bf16.gmra.mrb[16].mxu0 %vm264_vm1, %v9313_v33  ;;  %8801 = vmatmul.mubr.msk.bf16.gmra.mrb[16].mxu1 %vm264_vm1, %v9313_v33 }
 0x6df   : > { %5245 = vmatprep.mubr.bf16.mxu0 %v11350_v54  ;;  %5306 = vmatprep.mubr.bf16.mxu1 %v11350_v54 }
 0x6e6   : > { %8803 = vmatmul.mubr.msk.bf16.vlgmr.msra.gmra.mrb[20].mxu0 %vm264_vm1, %v9259_v14  ;;  %8807 = vmatmul.mubr.msk.bf16.vlgmr.msra.gmra.mrb[20].mxu1 %vm264_vm1, %v9259_v14 }
 0x6e7   : > { %5255 = vmatprep.mubr.bf16.mxu0 %v11350_v54  ;;  %5316 = vmatprep.mubr.bf16.mxu1 %v11350_v54 }
 0x6ee   : > { %8804 = vmatmul.mubr.msk.bf16.gmra.mrb[24].mxu0 %vm264_vm1, %v9300_v31  ;;  %8808 = vmatmul.mubr.msk.bf16.gmra.mrb[24].mxu1 %vm264_vm1, %v9300_v31 }
 0x6ef   : > { %5265 = vmatprep.mubr.bf16.mxu0 %v11350_v54  ;;  %5326 = vmatprep.mubr.bf16.mxu1 %v11350_v54 }
 0x6f6   : > { %8805 = vmatmul.mubr.msk.bf16.gmra.mrb[28].mxu0 %vm264_vm1, %v9313_v33  ;;  %8809 = vmatmul.mubr.msk.bf16.gmra.mrb[28].mxu1 %vm264_vm1, %v9313_v33 }
 0x6f7   : > { %5543 = vmatprep.mubr.bf16.mxu0 %v11350_v54  ;;  %5584 = vmatprep.mubr.bf16.mxu1 %v11350_v54 }
 0x721   : > { %v4457_v14 = vpop.f32.mrb[224].mxu0  ;;  %v4498_v47 = vpop.f32.mrb[224].mxu1 }
 0x722   : > { %v4458_v46 = vadd.f32 %v4457_v14, %v10028_v38  ;;  %v4459_v39 = vpop.f32.mrb[225].mxu0  ;;  %v4499_v31 = vadd.f32 %v4498_v47, %v10028_v38  ;;  %v4500_v12 = vpop.f32.mrb[225].mxu1 }
 0x723   : > { %v4460_v51 = vadd.f32 %v4459_v39, %v10028_v38  ;;  %v4461_v13 = vpop.f32.mrb[226].mxu0  ;;  %v4501_v17 = vadd.f32 %v4500_v12, %v10028_v38  ;;  %v4502_v62 = vpop.f32.mrb[226].mxu1  ;;  %v11365_v12 = vld [vmem:[#allocation9_spill] sm:$0xff] }
 0x724   : > { %v4751_v49 = vmax.f32 %v4458_v46, 0.0  ;;  %v4462_v33 = vpop.f32.mrb[227].mxu0  ;;  %v4753_v23 = vmax.f32 %v4499_v31, 0.0  ;;  %v4503_v58 = vpop.f32.mrb[227].mxu1  ;;  %v11364_v31 = vld [vmem:[#allocation8_spill] sm:$0xff] }
 0x725   : > { %v4752_v4 = vmax.f32 %v4460_v51, 0.0  ;;  %v4754_v57 = vmax.f32 %v4501_v17, 0.0 }
 0x726   : > { %v10395_v42 = vadd.f32 %v4751_v49, %v10042_v30  ;;  %v10398_v63 = vadd.f32 %v4753_v23, %v10044_v40  ;;  %v11366_v49 = vld [vmem:[#allocation14_spill] sm:$0xff] }
 0x727   : > { %v10401_v2 = vadd.f32 %v4752_v4, %v10046_v48  ;;  %v10404_v50 = vadd.f32 %v4754_v57, %v10048_v44 }
 0x739   : > { %v4539_v34 = vpop.f32.mrb[228].mxu0  ;;  %v4580_v3 = vpop.f32.mrb[228].mxu1 }
 0x73a   : > { %v4540_v15 = vadd.f32 %v4539_v34, %v10028_v38  ;;  %v4541_v18 = vpop.f32.mrb[229].mxu0  ;;  %v4581_v56 = vadd.f32 %v4580_v3, %v10028_v38  ;;  %v4582_v5 = vpop.f32.mrb[229].mxu1 }
 0x73b   : > { %v4542_v30 = vadd.f32 %v4541_v18, %v10028_v38  ;;  %v4543_v7 = vpop.f32.mrb[230].mxu0  ;;  %v4583_v40 = vadd.f32 %v4582_v5, %v10028_v38  ;;  %v4584_v11 = vpop.f32.mrb[230].mxu1 }
 0x73c   : > { %v4755_v6 = vmax.f32 %v4540_v15, 0.0  ;;  %v4544_v48 = vpop.f32.mrb[231].mxu0  ;;  %v4757_v24 = vmax.f32 %v4581_v56, 0.0  ;;  %v4585_v44 = vpop.f32.mrb[231].mxu1 }
 0x73d   : > { %v4756_v19 = vmax.f32 %v4542_v30, 0.0  ;;  %v4758_v20 = vmax.f32 %v4583_v40, 0.0  ;;  %v11368_v48 = vld [vmem:[#allocation11_spill] sm:$0xff] }
 0x73e   : > { %v10411_v22 = vadd.f32 %v4755_v6, %v10062_v1  ;;  %v10414_v28 = vadd.f32 %v4757_v24, %v10064_v0  ;;  %v11367_v6 = vld [vmem:[#allocation10_spill] sm:$0xff] }
 0x73f   : > { %v10417_v16 = vadd.f32 %v4756_v19, %v10066_v35  ;;  %v10420_v21 = vadd.f32 %v4758_v20, %v10068_v60  ;;  %v11369_v19 = vld [vmem:[#allocation12_spill] sm:$0xff]  ;;  %v11370_v20 = vld [vmem:[#allocation13_spill] sm:$0xff] }
 0x751   : > { %v4621_v25 = vpop.f32.mrb[232].mxu0  ;;  %v4662_v29 = vpop.f32.mrb[232].mxu1 }
 0x752   : > { %v4622_v27 = vadd.f32 %v4621_v25, %v10028_v38  ;;  %v4623_v10 = vpop.f32.mrb[233].mxu0  ;;  %v4663_v45 = vadd.f32 %v4662_v29, %v10028_v38  ;;  %v4664_v36 = vpop.f32.mrb[233].mxu1 }
 0x753   : > { %v4624_v1 = vadd.f32 %v4623_v10, %v10028_v38  ;;  %v4625_v37 = vpop.f32.mrb[234].mxu0  ;;  %v4665_v0 = vadd.f32 %v4664_v36, %v10028_v38  ;;  %v4666_v43 = vpop.f32.mrb[234].mxu1 }
 0x754   : > { %v4759_v41 = vmax.f32 %v4622_v27, 0.0  ;;  %v4626_v35 = vpop.f32.mrb[235].mxu0  ;;  %v4761_v14 = vmax.f32 %v4663_v45, 0.0  ;;  %v4667_v60 = vpop.f32.mrb[235].mxu1 }
 0x755   : > { %v4760_v46 = vmax.f32 %v4624_v1, 0.0  ;;  %v4762_v39 = vmax.f32 %v4665_v0, 0.0 }
 0x756   : > { %v10427_v47 = vadd.f32 %v4759_v41, %v10082_v59  ;;  %v10430_v51 = vadd.f32 %v4761_v14, %v11364_v31 }
 0x757   : > { %v10433_v13 = vadd.f32 %v4760_v46, %v11365_v12  ;;  %v10436_v17 = vadd.f32 %v4762_v39, %v11366_v49 }
 0x769   : > { %v4703_v62 = vpop.f32.mrb[236].mxu0  ;;  %v4744_v23 = vpop.f32.mrb[236].mxu1 }
 0x76a   : > { %v4704_v33 = vadd.f32 %v4703_v62, %v10028_v38  ;;  %v4705_v4 = vpop.f32.mrb[237].mxu0  ;;  %v4745_v58 = vadd.f32 %v4744_v23, %v10028_v38  ;;  %v4746_v57 = vpop.f32.mrb[237].mxu1 }
 0x76b   : > { %v4706_v59 = vadd.f32 %v4705_v4, %v10028_v38  ;;  %v4707_v34 = vpop.f32.mrb[238].mxu0  ;;  %v4747_v3 = vadd.f32 %v4746_v57, %v10028_v38  ;;  %v4748_v18 = vpop.f32.mrb[238].mxu1 }
 0x76c   : > { %v4763_v15 = vmax.f32 %v4704_v33, 0.0  ;;  %v4708_v56 = vpop.f32.mrb[239].mxu0  ;;  %v4765_v30 = vmax.f32 %v4745_v58, 0.0  ;;  %v4749_v7 = vpop.f32.mrb[239].mxu1 }
 0x76d   : > { %v4764_v5 = vmax.f32 %v4706_v59, 0.0  ;;  %v4766_v11 = vmax.f32 %v4747_v3, 0.0 }
 0x76e   : > { %v10443_v40 = vadd.f32 %v4763_v15, %v11367_v6  ;;  %v10446_v24 = vadd.f32 %v4765_v30, %v11368_v48 }
 0x76f   : > { %v10449_v44 = vadd.f32 %v4764_v5, %v11369_v19  ;;  %v10452_v25 = vadd.f32 %v4766_v11, %v11370_v20 }
 0x771   : > { %v4881_v27 = vpop.f32.mrb[240].mxu0  ;;  %v4942_v10 = vpop.f32.mrb[240].mxu1 }
 0x772   : > { %v4882_v29 = vadd.f32 %v4881_v27, %v9413_v52  ;;  %v4883_v45 = vpop.f32.mrb[241].mxu0  ;;  %v4943_v1 = vadd.f32 %v4942_v10, %v9413_v52  ;;  %v4944_v37 = vpop.f32.mrb[241].mxu1 }
 0x773   : > { %v4884_v36 = vadd.f32 %v4883_v45, %v9413_v52  ;;  %v4885_v41 = vpop.f32.mrb[242].mxu0  ;;  %v4945_v0 = vadd.f32 %v4944_v37, %v9413_v52  ;;  %v4946_v35 = vpop.f32.mrb[242].mxu1 }
 0x774   : > { %v4886_v43 = vadd.f32 %v4885_v41, %v9417_v55  ;;  %v4887_v14 = vpop.f32.mrb[243].mxu0  ;;  %v4947_v46 = vadd.f32 %v4946_v35, %v9417_v55  ;;  %v4948_v39 = vpop.f32.mrb[243].mxu1  ;;  %v5335_v31 = vmax.f32 %v4882_v29, 0.0  ;;  %v5337_v62 = vmax.f32 %v4943_v1, 0.0 }
 0x775   : > { %v4888_v60 = vadd.f32 %v4887_v14, %v9417_v55  ;;  %v4949_v49 = vadd.f32 %v4948_v39, %v9417_v55  ;;  %v5336_v33 = vmax.f32 %v4884_v36, 0.0  ;;  %v5338_v58 = vmax.f32 %v4945_v0, 0.0 }
 0x776   : > { %v5351_v12 = vmax.f32 %v4886_v43, 0.0  ;;  %v5353_v23 = vmax.f32 %v4947_v46, 0.0 }
 0x777   : > { %v5352_v4 = vmax.f32 %v4888_v60, 0.0  ;;  %v5354_v57 = vmax.f32 %v4949_v49, 0.0 }
 0x778   : > { %v5415_v59 = vpack.c.bf16 %v5351_v12, %v5335_v31  ;;  %v5417_v34 = vpack.c.bf16 %v5353_v23, %v5337_v62 }
 0x779   : > { %v5416_v15 = vpack.c.bf16 %v5352_v4, %v5336_v33  ;;  %v4891_v3 = vpop.f32.mrb[244].mxu0  ;;  %v5418_v18 = vpack.c.bf16 %v5354_v57, %v5338_v58  ;;  %v4952_v30 = vpop.f32.mrb[244].mxu1 }
 0x77a   : > { %v4892_v56 = vadd.f32 %v4891_v3, %v9415_v53  ;;  %v4893_v5 = vpop.f32.mrb[245].mxu0  ;;  %v4953_v7 = vadd.f32 %v4952_v30, %v9415_v53  ;;  %v4954_v11 = vpop.f32.mrb[245].mxu1 }
 0x77b   : > { %v4894_v6 = vadd.f32 %v4893_v5, %v9415_v53  ;;  %v4895_v48 = vpop.f32.mrb[246].mxu0  ;;  %5511 = vmatprep.subr.bf16.mxu0 %v5416_v15  ;;  %v4955_v19 = vadd.f32 %v4954_v11, %v9415_v53  ;;  %v4956_v27 = vpop.f32.mrb[246].mxu1  ;;  %5552 = vmatprep.subr.bf16.mxu1 %v5418_v18 }
 0x77c   : > { %v4896_v20 = vadd.f32 %v4895_v48, %v9427_v32  ;;  %v4897_v29 = vpop.f32.mrb[247].mxu0  ;;  %5512 = vmatpush1.bf16.msra.mxu0 %v5415_v59  ;;  %v4957_v10 = vadd.f32 %v4956_v27, %v9427_v32  ;;  %v4958_v1 = vpop.f32.mrb[247].mxu1  ;;  %5553 = vmatpush1.bf16.msra.mxu1 %v5417_v34  ;;  %v5367_v36 = vmax.f32 %v4892_v56, 0.0  ;;  %v5369_v0 = vmax.f32 %v4953_v7, 0.0 }
 0x77d   : > { %v4898_v45 = vadd.f32 %v4897_v29, %v9427_v32  ;;  %v4959_v41 = vadd.f32 %v4958_v1, %v9427_v32  ;;  %v5368_v43 = vmax.f32 %v4894_v6, 0.0  ;;  %v5370_v46 = vmax.f32 %v4955_v19, 0.0 }
 0x77e   : > { %v5383_v37 = vmax.f32 %v4896_v20, 0.0  ;;  %v5385_v35 = vmax.f32 %v4957_v10, 0.0 }
 0x77f   : > { %v5384_v14 = vmax.f32 %v4898_v45, 0.0  ;;  %v5386_v39 = vmax.f32 %v4959_v41, 0.0 }
 0x780   : > { %v5431_v60 = vpack.c.bf16 %v5383_v37, %v5367_v36  ;;  %v5433_v31 = vpack.c.bf16 %v5385_v35, %v5369_v0 }
 0x781   : > { %v5432_v12 = vpack.c.bf16 %v5384_v14, %v5368_v43  ;;  %v4901_v49 = vpop.f32.mrb[248].mxu0  ;;  %v5434_v62 = vpack.c.bf16 %v5386_v39, %v5370_v46  ;;  %v4962_v23 = vpop.f32.mrb[248].mxu1 }
 0x782   : > { %v4902_v33 = vadd.f32 %v4901_v49, %v9437_v9  ;;  %v4903_v4 = vpop.f32.mrb[249].mxu0  ;;  %v4963_v58 = vadd.f32 %v4962_v23, %v9437_v9  ;;  %v4964_v57 = vpop.f32.mrb[249].mxu1 }
 0x783   : > { %v4904_v59 = vadd.f32 %v4903_v4, %v9437_v9  ;;  %v4905_v34 = vpop.f32.mrb[250].mxu0  ;;  %5513 = vmatprep.subr.bf16.mxu0 %v5432_v12  ;;  %v4965_v3 = vadd.f32 %v4964_v57, %v9437_v9  ;;  %v4966_v18 = vpop.f32.mrb[250].mxu1  ;;  %5554 = vmatprep.subr.bf16.mxu1 %v5434_v62 }
 0x784   : > { %v5399_v15 = vmax.f32 %v4902_v33, 0.0  ;;  %v4906_v56 = vpop.f32.mrb[251].mxu0  ;;  %5514 = vmatpush1.bf16.msra.mxu0 %v5431_v60  ;;  %v5401_v30 = vmax.f32 %v4963_v58, 0.0  ;;  %v4967_v7 = vpop.f32.mrb[251].mxu1  ;;  %5555 = vmatpush1.bf16.msra.mxu1 %v5433_v31 }
 0x785   : > { %v5400_v5 = vmax.f32 %v4904_v59, 0.0  ;;  %v5402_v11 = vmax.f32 %v4965_v3, 0.0 }
 0x786   : > { %v5447_v6 = vpack.c.bf16 %v5399_v15, %v5399_v15  ;;  %v5449_v48 = vpack.c.bf16 %v5401_v30, %v5401_v30 }
 0x787   : > { %v5448_v19 = vpack.c.bf16 %v5400_v5, %v5400_v5  ;;  %v5450_v20 = vpack.c.bf16 %v5402_v11, %v5402_v11 }
 0x788   : > { %v5464_v27 = vsel %vm948_vm2, %v5447_v6, 0  ;;  %v5470_v10 = vsel %vm948_vm2, %v5449_v48, 0 }
 0x789   : > { %v5003_v29 = vpop.f32.mrb[252].mxu0  ;;  %8810 = vmatprep.subr.msk.bf16.mxu0 %vm948_vm2, %v5448_v19  ;;  %v5064_v1 = vpop.f32.mrb[252].mxu1  ;;  %8812 = vmatprep.subr.msk.bf16.mxu1 %vm948_vm2, %v5450_v20 }
 0x78a   : > { %v5004_v45 = vadd.f32 %v5003_v29, %v9413_v52  ;;  %v5005_v36 = vpop.f32.mrb[253].mxu0  ;;  %5516 = vmatpush1.bf16.msra.mxu0 %v5464_v27  ;;  %v5065_v37 = vadd.f32 %v5064_v1, %v9413_v52  ;;  %v5066_v0 = vpop.f32.mrb[253].mxu1  ;;  %5557 = vmatpush1.bf16.msra.mxu1 %v5470_v10 }
 0x78b   : > { %v5006_v41 = vadd.f32 %v5005_v36, %v9413_v52  ;;  %v5007_v43 = vpop.f32.mrb[254].mxu0  ;;  %v5067_v35 = vadd.f32 %v5066_v0, %v9413_v52  ;;  %v5068_v46 = vpop.f32.mrb[254].mxu1 }
 0x78c   : > { %v5008_v14 = vadd.f32 %v5007_v43, %v9417_v55  ;;  %v5009_v60 = vpop.f32.mrb[255].mxu0  ;;  %v5069_v39 = vadd.f32 %v5068_v46, %v9417_v55  ;;  %v5070_v12 = vpop.f32.mrb[255].mxu1  ;;  %v5339_v49 = vmax.f32 %v5004_v45, 0.0  ;;  %v5341_v23 = vmax.f32 %v5065_v37, 0.0 }
 0x78d   : > { %v5010_v31 = vadd.f32 %v5009_v60, %v9417_v55  ;;  %8811 = vmatmul.mubr.msk.bf16.vlgmr.msra.gmra.mrb[32].mxu0 %vm944_vm3, %v9448_v61  ;;  %v5071_v33 = vadd.f32 %v5070_v12, %v9417_v55  ;;  %8813 = vmatmul.mubr.msk.bf16.vlgmr.msra.gmra.mrb[32].mxu1 %vm944_vm3, %v9448_v61  ;;  %v5340_v4 = vmax.f32 %v5006_v41, 0.0  ;;  %v5342_v57 = vmax.f32 %v5067_v35, 0.0 }
 0x78e   : > { %v5355_v62 = vmax.f32 %v5008_v14, 0.0  ;;  %5625 = vmatprep.mubr.bf16.mxu0 %v11350_v54  ;;  %v5357_v58 = vmax.f32 %v5069_v39, 0.0  ;;  %5666 = vmatprep.mubr.bf16.mxu1 %v11350_v54 }
 0x78f   : > { %v5356_v59 = vmax.f32 %v5010_v31, 0.0  ;;  %v5358_v15 = vmax.f32 %v5071_v33, 0.0 }
 0x790   : > { %v5419_v34 = vpack.c.bf16 %v5355_v62, %v5339_v49  ;;  %v5421_v3 = vpack.c.bf16 %v5357_v58, %v5341_v23 }
 0x791   : > { %v5420_v18 = vpack.c.bf16 %v5356_v59, %v5340_v4  ;;  %v5013_v56 = vpop.f32.mrb[0].mxu0  ;;  %v5422_v30 = vpack.c.bf16 %v5358_v15, %v5342_v57  ;;  %v5074_v7 = vpop.f32.mrb[0].mxu1 }
 0x792   : > { %v5014_v5 = vadd.f32 %v5013_v56, %v9415_v53  ;;  %v5015_v6 = vpop.f32.mrb[1].mxu0  ;;  %v5075_v11 = vadd.f32 %v5074_v7, %v9415_v53  ;;  %v5076_v19 = vpop.f32.mrb[1].mxu1 }
 0x793   : > { %v5016_v48 = vadd.f32 %v5015_v6, %v9415_v53  ;;  %v5017_v20 = vpop.f32.mrb[2].mxu0  ;;  %5593 = vmatprep.subr.bf16.mxu0 %v5420_v18  ;;  %v5077_v27 = vadd.f32 %v5076_v19, %v9415_v53  ;;  %v5078_v10 = vpop.f32.mrb[2].mxu1  ;;  %5634 = vmatprep.subr.bf16.mxu1 %v5422_v30 }
 0x794   : > { %v5018_v29 = vadd.f32 %v5017_v20, %v9427_v32  ;;  %v5019_v45 = vpop.f32.mrb[3].mxu0  ;;  %5594 = vmatpush1.bf16.msra.mxu0 %v5419_v34  ;;  %v5079_v1 = vadd.f32 %v5078_v10, %v9427_v32  ;;  %v5080_v37 = vpop.f32.mrb[3].mxu1  ;;  %5635 = vmatpush1.bf16.msra.mxu1 %v5421_v3  ;;  %v5371_v41 = vmax.f32 %v5014_v5, 0.0  ;;  %v5373_v35 = vmax.f32 %v5075_v11, 0.0 }
 0x795   : > { %v5020_v36 = vadd.f32 %v5019_v45, %v9427_v32  ;;  %v5081_v43 = vadd.f32 %v5080_v37, %v9427_v32  ;;  %v5372_v14 = vmax.f32 %v5016_v48, 0.0  ;;  %v5374_v39 = vmax.f32 %v5077_v27, 0.0 }
 0x796   : > { %v5387_v0 = vmax.f32 %v5018_v29, 0.0  ;;  %v5389_v46 = vmax.f32 %v5079_v1, 0.0 }
 0x797   : > { %v5388_v60 = vmax.f32 %v5020_v36, 0.0  ;;  %v5390_v12 = vmax.f32 %v5081_v43, 0.0 }
 0x798   : > { %v5435_v31 = vpack.c.bf16 %v5387_v0, %v5371_v41  ;;  %v5437_v49 = vpack.c.bf16 %v5389_v46, %v5373_v35 }
 0x799   : > { %v5436_v62 = vpack.c.bf16 %v5388_v60, %v5372_v14  ;;  %v5023_v33 = vpop.f32.mrb[4].mxu0  ;;  %v5438_v23 = vpack.c.bf16 %v5390_v12, %v5374_v39  ;;  %v5084_v58 = vpop.f32.mrb[4].mxu1 }
 0x79a   : > { %v5024_v4 = vadd.f32 %v5023_v33, %v9437_v9  ;;  %v5025_v59 = vpop.f32.mrb[5].mxu0  ;;  %v5085_v57 = vadd.f32 %v5084_v58, %v9437_v9  ;;  %v5086_v15 = vpop.f32.mrb[5].mxu1 }
 0x79b   : > { %v5026_v34 = vadd.f32 %v5025_v59, %v9437_v9  ;;  %v5027_v3 = vpop.f32.mrb[6].mxu0  ;;  %5595 = vmatprep.subr.bf16.mxu0 %v5436_v62  ;;  %v5087_v56 = vadd.f32 %v5086_v15, %v9437_v9  ;;  %v5088_v30 = vpop.f32.mrb[6].mxu1  ;;  %5636 = vmatprep.subr.bf16.mxu1 %v5438_v23 }
 0x79c   : > { %v5403_v18 = vmax.f32 %v5024_v4, 0.0  ;;  %v5028_v5 = vpop.f32.mrb[7].mxu0  ;;  %5596 = vmatpush1.bf16.msra.mxu0 %v5435_v31  ;;  %v5405_v7 = vmax.f32 %v5085_v57, 0.0  ;;  %v5089_v11 = vpop.f32.mrb[7].mxu1  ;;  %5637 = vmatpush1.bf16.msra.mxu1 %v5437_v49 }
 0x79d   : > { %v5404_v6 = vmax.f32 %v5026_v34, 0.0  ;;  %v5406_v19 = vmax.f32 %v5087_v56, 0.0 }
 0x79e   : > { %v5451_v48 = vpack.c.bf16 %v5403_v18, %v5403_v18  ;;  %v5453_v20 = vpack.c.bf16 %v5405_v7, %v5405_v7 }
 0x79f   : > { %v5452_v27 = vpack.c.bf16 %v5404_v6, %v5404_v6  ;;  %v5454_v29 = vpack.c.bf16 %v5406_v19, %v5406_v19 }
 0x7a0   : > { %v5476_v10 = vsel %vm948_vm2, %v5451_v48, 0  ;;  %v5482_v1 = vsel %vm948_vm2, %v5453_v20, 0 }
 0x7a1   : > { %v5125_v45 = vpop.f32.mrb[8].mxu0  ;;  %8814 = vmatprep.subr.msk.bf16.mxu0 %vm948_vm2, %v5452_v27  ;;  %v5186_v37 = vpop.f32.mrb[8].mxu1  ;;  %8816 = vmatprep.subr.msk.bf16.mxu1 %vm948_vm2, %v5454_v29 }
 0x7a2   : > { %v5126_v36 = vadd.f32 %v5125_v45, %v9413_v52  ;;  %v5127_v41 = vpop.f32.mrb[9].mxu0  ;;  %5598 = vmatpush1.bf16.msra.mxu0 %v5476_v10  ;;  %v5187_v0 = vadd.f32 %v5186_v37, %v9413_v52  ;;  %v5188_v35 = vpop.f32.mrb[9].mxu1  ;;  %5639 = vmatpush1.bf16.msra.mxu1 %v5482_v1 }
 0x7a3   : > { %v5128_v43 = vadd.f32 %v5127_v41, %v9413_v52  ;;  %v5129_v14 = vpop.f32.mrb[10].mxu0  ;;  %v5189_v46 = vadd.f32 %v5188_v35, %v9413_v52  ;;  %v5190_v39 = vpop.f32.mrb[10].mxu1 }
 0x7a4   : > { %v5130_v60 = vadd.f32 %v5129_v14, %v9417_v55  ;;  %v5131_v31 = vpop.f32.mrb[11].mxu0  ;;  %v5191_v12 = vadd.f32 %v5190_v39, %v9417_v55  ;;  %v5192_v62 = vpop.f32.mrb[11].mxu1  ;;  %v5343_v33 = vmax.f32 %v5126_v36, 0.0  ;;  %v5345_v58 = vmax.f32 %v5187_v0, 0.0 }
 0x7a5   : > { %v5132_v49 = vadd.f32 %v5131_v31, %v9417_v55  ;;  %8815 = vmatmul.mubr.msk.bf16.vlgmr.msra.gmra.mrb[36].mxu0 %vm944_vm3, %v9448_v61  ;;  %v5193_v4 = vadd.f32 %v5192_v62, %v9417_v55  ;;  %8817 = vmatmul.mubr.msk.bf16.vlgmr.msra.gmra.mrb[36].mxu1 %vm944_vm3, %v9448_v61  ;;  %v5344_v59 = vmax.f32 %v5128_v43, 0.0  ;;  %v5346_v15 = vmax.f32 %v5189_v46, 0.0 }
 0x7a6   : > { %v5359_v23 = vmax.f32 %v5130_v60, 0.0  ;;  %5707 = vmatprep.mubr.bf16.mxu0 %v11350_v54  ;;  %v5361_v57 = vmax.f32 %v5191_v12, 0.0  ;;  %5748 = vmatprep.mubr.bf16.mxu1 %v11350_v54 }
 0x7a7   : > { %v5360_v34 = vmax.f32 %v5132_v49, 0.0  ;;  %v5362_v18 = vmax.f32 %v5193_v4, 0.0 }
 0x7a8   : > { %v5423_v3 = vpack.c.bf16 %v5359_v23, %v5343_v33  ;;  %v5425_v56 = vpack.c.bf16 %v5361_v57, %v5345_v58 }
 0x7a9   : > { %v5424_v30 = vpack.c.bf16 %v5360_v34, %v5344_v59  ;;  %v5135_v5 = vpop.f32.mrb[12].mxu0  ;;  %v5426_v7 = vpack.c.bf16 %v5362_v18, %v5346_v15  ;;  %v5196_v11 = vpop.f32.mrb[12].mxu1 }
 0x7aa   : > { %v5136_v6 = vadd.f32 %v5135_v5, %v9415_v53  ;;  %v5137_v48 = vpop.f32.mrb[13].mxu0  ;;  %v5197_v19 = vadd.f32 %v5196_v11, %v9415_v53  ;;  %v5198_v27 = vpop.f32.mrb[13].mxu1 }
 0x7ab   : > { %v5138_v20 = vadd.f32 %v5137_v48, %v9415_v53  ;;  %v5139_v29 = vpop.f32.mrb[14].mxu0  ;;  %5675 = vmatprep.subr.bf16.mxu0 %v5424_v30  ;;  %v5199_v10 = vadd.f32 %v5198_v27, %v9415_v53  ;;  %v5200_v1 = vpop.f32.mrb[14].mxu1  ;;  %5716 = vmatprep.subr.bf16.mxu1 %v5426_v7 }
 0x7ac   : > { %v5140_v45 = vadd.f32 %v5139_v29, %v9427_v32  ;;  %v5141_v36 = vpop.f32.mrb[15].mxu0  ;;  %5676 = vmatpush1.bf16.msra.mxu0 %v5423_v3  ;;  %v5201_v37 = vadd.f32 %v5200_v1, %v9427_v32  ;;  %v5202_v0 = vpop.f32.mrb[15].mxu1  ;;  %5717 = vmatpush1.bf16.msra.mxu1 %v5425_v56  ;;  %v5375_v43 = vmax.f32 %v5136_v6, 0.0  ;;  %v5377_v46 = vmax.f32 %v5197_v19, 0.0 }
 0x7ad   : > { %v5142_v41 = vadd.f32 %v5141_v36, %v9427_v32  ;;  %v5203_v14 = vadd.f32 %v5202_v0, %v9427_v32  ;;  %v5376_v60 = vmax.f32 %v5138_v20, 0.0  ;;  %v5378_v12 = vmax.f32 %v5199_v10, 0.0 }
 0x7ae   : > { %v5391_v35 = vmax.f32 %v5140_v45, 0.0  ;;  %v5393_v39 = vmax.f32 %v5201_v37, 0.0 }
 0x7af   : > { %v5392_v31 = vmax.f32 %v5142_v41, 0.0  ;;  %v5394_v62 = vmax.f32 %v5203_v14, 0.0 }
 0x7b0   : > { %v5439_v49 = vpack.c.bf16 %v5391_v35, %v5375_v43  ;;  %v5441_v33 = vpack.c.bf16 %v5393_v39, %v5377_v46 }
 0x7b1   : > { %v5440_v23 = vpack.c.bf16 %v5392_v31, %v5376_v60  ;;  %v5145_v4 = vpop.f32.mrb[16].mxu0  ;;  %v5442_v58 = vpack.c.bf16 %v5394_v62, %v5378_v12  ;;  %v5206_v57 = vpop.f32.mrb[16].mxu1 }
 0x7b2   : > { %v5146_v59 = vadd.f32 %v5145_v4, %v9437_v9  ;;  %v5147_v34 = vpop.f32.mrb[17].mxu0  ;;  %v5207_v15 = vadd.f32 %v5206_v57, %v9437_v9  ;;  %v5208_v18 = vpop.f32.mrb[17].mxu1 }
 0x7b3   : > { %v5148_v3 = vadd.f32 %v5147_v34, %v9437_v9  ;;  %v5149_v56 = vpop.f32.mrb[18].mxu0  ;;  %5677 = vmatprep.subr.bf16.mxu0 %v5440_v23  ;;  %v5209_v5 = vadd.f32 %v5208_v18, %v9437_v9  ;;  %v5210_v7 = vpop.f32.mrb[18].mxu1  ;;  %5718 = vmatprep.subr.bf16.mxu1 %v5442_v58 }
 0x7b4   : > { %v5407_v30 = vmax.f32 %v5146_v59, 0.0  ;;  %v5150_v6 = vpop.f32.mrb[19].mxu0  ;;  %5678 = vmatpush1.bf16.msra.mxu0 %v5439_v49  ;;  %v5409_v11 = vmax.f32 %v5207_v15, 0.0  ;;  %v5211_v19 = vpop.f32.mrb[19].mxu1  ;;  %5719 = vmatpush1.bf16.msra.mxu1 %v5441_v33 }
 0x7b5   : > { %v5408_v48 = vmax.f32 %v5148_v3, 0.0  ;;  %v5410_v27 = vmax.f32 %v5209_v5, 0.0 }
 0x7b6   : > { %v5455_v20 = vpack.c.bf16 %v5407_v30, %v5407_v30  ;;  %v5457_v29 = vpack.c.bf16 %v5409_v11, %v5409_v11 }
 0x7b7   : > { %v5456_v10 = vpack.c.bf16 %v5408_v48, %v5408_v48  ;;  %v5458_v45 = vpack.c.bf16 %v5410_v27, %v5410_v27 }
 0x7b8   : > { %v5488_v1 = vsel %vm948_vm2, %v5455_v20, 0  ;;  %v5494_v37 = vsel %vm948_vm2, %v5457_v29, 0 }
 0x7b9   : > { %v5247_v36 = vpop.f32.mrb[20].mxu0  ;;  %8818 = vmatprep.subr.msk.bf16.mxu0 %vm948_vm2, %v5456_v10  ;;  %v5308_v0 = vpop.f32.mrb[20].mxu1  ;;  %8820 = vmatprep.subr.msk.bf16.mxu1 %vm948_vm2, %v5458_v45 }
 0x7ba   : > { %v5248_v41 = vadd.f32 %v5247_v36, %v9413_v52  ;;  %v5249_v43 = vpop.f32.mrb[21].mxu0  ;;  %5680 = vmatpush1.bf16.msra.mxu0 %v5488_v1  ;;  %v5309_v35 = vadd.f32 %v5308_v0, %v9413_v52  ;;  %v5310_v46 = vpop.f32.mrb[21].mxu1  ;;  %5721 = vmatpush1.bf16.msra.mxu1 %v5494_v37 }
 0x7bb   : > { %v5250_v14 = vadd.f32 %v5249_v43, %v9413_v52  ;;  %v5251_v60 = vpop.f32.mrb[22].mxu0  ;;  %v5311_v39 = vadd.f32 %v5310_v46, %v9413_v52  ;;  %v5312_v12 = vpop.f32.mrb[22].mxu1 }
 0x7bc   : > { %v5252_v31 = vadd.f32 %v5251_v60, %v9417_v55  ;;  %v5253_v49 = vpop.f32.mrb[23].mxu0  ;;  %v5313_v62 = vadd.f32 %v5312_v12, %v9417_v55  ;;  %v5314_v23 = vpop.f32.mrb[23].mxu1  ;;  %v5347_v4 = vmax.f32 %v5248_v41, 0.0  ;;  %v5349_v52 = vmax.f32 %v5309_v35, 0.0 }
 0x7bd   : > { %v5254_v33 = vadd.f32 %v5253_v49, %v9417_v55  ;;  %8819 = vmatmul.mubr.msk.bf16.vlgmr.msra.gmra.mrb[40].mxu0 %vm944_vm3, %v9448_v61  ;;  %v5315_v59 = vadd.f32 %v5314_v23, %v9417_v55  ;;  %8821 = vmatmul.mubr.msk.bf16.vlgmr.msra.gmra.mrb[40].mxu1 %vm944_vm3, %v9448_v61  ;;  %v5348_v57 = vmax.f32 %v5250_v14, 0.0  ;;  %v5350_v3 = vmax.f32 %v5311_v39, 0.0 }
 0x7be   : > { %v5363_v58 = vmax.f32 %v5252_v31, 0.0  ;;  %5789 = vmatprep.mubr.bf16.mxu0 %v11350_v54  ;;  %v5365_v34 = vmax.f32 %v5313_v62, 0.0  ;;  %5830 = vmatprep.mubr.bf16.mxu1 %v11350_v54 }
 0x7bf   : > { %v5364_v15 = vmax.f32 %v5254_v33, 0.0  ;;  %v5366_v56 = vmax.f32 %v5315_v59, 0.0 }
 0x7c0   : > { %v5427_v18 = vpack.c.bf16 %v5363_v58, %v5347_v4  ;;  %v5429_v30 = vpack.c.bf16 %v5365_v34, %v5349_v52 }
 0x7c1   : > { %v5428_v5 = vpack.c.bf16 %v5364_v15, %v5348_v57  ;;  %v5257_v7 = vpop.f32.mrb[24].mxu0  ;;  %v5430_v6 = vpack.c.bf16 %v5366_v56, %v5350_v3  ;;  %v5318_v11 = vpop.f32.mrb[24].mxu1 }
 0x7c2   : > { %v5258_v55 = vadd.f32 %v5257_v7, %v9415_v53  ;;  %v5259_v48 = vpop.f32.mrb[25].mxu0  ;;  %v5319_v19 = vadd.f32 %v5318_v11, %v9415_v53  ;;  %v5320_v27 = vpop.f32.mrb[25].mxu1 }
 0x7c3   : > { %v5260_v20 = vadd.f32 %v5259_v48, %v9415_v53  ;;  %v5261_v29 = vpop.f32.mrb[26].mxu0  ;;  %5757 = vmatprep.subr.bf16.mxu0 %v5428_v5  ;;  %v5321_v10 = vadd.f32 %v5320_v27, %v9415_v53  ;;  %v5322_v1 = vpop.f32.mrb[26].mxu1  ;;  %5798 = vmatprep.subr.bf16.mxu1 %v5430_v6 }
 0x7c4   : > { %v5262_v45 = vadd.f32 %v5261_v29, %v9427_v32  ;;  %v5263_v36 = vpop.f32.mrb[27].mxu0  ;;  %5758 = vmatpush1.bf16.msra.mxu0 %v5427_v18  ;;  %v5323_v37 = vadd.f32 %v5322_v1, %v9427_v32  ;;  %v5324_v0 = vpop.f32.mrb[27].mxu1  ;;  %5799 = vmatpush1.bf16.msra.mxu1 %v5429_v30  ;;  %v5379_v43 = vmax.f32 %v5258_v55, 0.0  ;;  %v5381_v46 = vmax.f32 %v5319_v19, 0.0 }
 0x7c5   : > { %v5264_v41 = vadd.f32 %v5263_v36, %v9427_v32  ;;  %v5325_v14 = vadd.f32 %v5324_v0, %v9427_v32  ;;  %v5380_v60 = vmax.f32 %v5260_v20, 0.0  ;;  %v5382_v31 = vmax.f32 %v5321_v10, 0.0 }
 0x7c6   : > { %v5395_v35 = vmax.f32 %v5262_v45, 0.0  ;;  %v5397_v39 = vmax.f32 %v5323_v37, 0.0  ;;  %v9093_v10 = vmov 1   ;;  %v9094_v1 = vmov 3  }
 0x7c7   : > { %v5396_v53 = vmax.f32 %v5264_v41, 0.0  ;;  %v5398_v49 = vmax.f32 %v5325_v14, 0.0 }
 0x7c8   : > { %v5443_v12 = vpack.c.bf16 %v5395_v35, %v5379_v43  ;;  %v5445_v62 = vpack.c.bf16 %v5397_v39, %v5381_v46 }
 0x7c9   : > { %v5444_v33 = vpack.c.bf16 %v5396_v53, %v5380_v60  ;;  %v5267_v23 = vpop.f32.mrb[28].mxu0  ;;  %v5446_v4 = vpack.c.bf16 %v5398_v49, %v5382_v31  ;;  %v5328_v59 = vpop.f32.mrb[28].mxu1 }
 0x7ca   : > { %v5268_v58 = vadd.f32 %v5267_v23, %v9437_v9  ;;  %v5269_v52 = vpop.f32.mrb[29].mxu0  ;;  %v5329_v57 = vadd.f32 %v5328_v59, %v9437_v9  ;;  %v5330_v32 = vpop.f32.mrb[29].mxu1 }
 0x7cb   : > { %v5270_v34 = vadd.f32 %v5269_v52, %v9437_v9  ;;  %v5271_v15 = vpop.f32.mrb[30].mxu0  ;;  %5759 = vmatprep.subr.bf16.mxu0 %v5444_v33  ;;  %v5331_v18 = vadd.f32 %v5330_v32, %v9437_v9  ;;  %v5332_v56 = vpop.f32.mrb[30].mxu1  ;;  %5800 = vmatprep.subr.bf16.mxu1 %v5446_v4  ;;  %v172_v9 = vld [vmem:[%s11330_s1 + $0x38] sm:$0x3] }
 0x7cc   : > { %v5411_v3 = vmax.f32 %v5268_v58, 0.0  ;;  %v5272_v30 = vpop.f32.mrb[31].mxu0  ;;  %5760 = vmatpush1.bf16.msra.mxu0 %v5443_v12  ;;  %v5413_v5 = vmax.f32 %v5329_v57, 0.0  ;;  %v5333_v6 = vpop.f32.mrb[31].mxu1  ;;  %5801 = vmatpush1.bf16.msra.mxu1 %v5445_v62  ;;  %v6279_v45 = vmul.f32 4.0, %v172_v9 }
 0x7cd   : > { %v5412_v7 = vmax.f32 %v5270_v34, 0.0  ;;  %v5414_v11 = vmax.f32 %v5331_v18, 0.0  ;;  %6282 = vperm.xlu1 %8974, %v172_v9   ;;  %6466 = vperm.xlu0 %8976, %v172_v9  }
 0x7ce   : > { %v5459_v55 = vpack.c.bf16 %v5411_v3, %v5411_v3  ;;  %v5461_v48 = vpack.c.bf16 %v5413_v5, %v5413_v5 }
 0x7cf   : > { %v5460_v19 = vpack.c.bf16 %v5412_v7, %v5412_v7  ;;  %v5462_v20 = vpack.c.bf16 %v5414_v11, %v5414_v11 }
 0x7d0   : > { %v5500_v27 = vsel %vm948_vm2, %v5459_v55, 0  ;;  %v5506_v29 = vsel %vm948_vm2, %v5461_v48, 0 }
 0x7d1   : > { %8822 = vmatprep.subr.msk.bf16.mxu0 %vm948_vm2, %v5460_v19  ;;  %8824 = vmatprep.subr.msk.bf16.mxu1 %vm948_vm2, %v5462_v20 }
 0x7d2   : > { %5762 = vmatpush1.bf16.msra.mxu0 %v5500_v27  ;;  %5803 = vmatpush1.bf16.msra.mxu1 %v5506_v29 }
 0x7d3   : > { %8975 = vset.pattern.permute.xlu1 %v9093_v10 }
 0x7d4   : > { %6366 = vperm.xlu1 %8975, %v172_v9  }
 0x7d5   : > { %8823 = vmatmul.mubr.msk.bf16.vlgmr.msra.gmra.mrb[44].mxu0 %vm944_vm3, %v9448_v61  ;;  %8825 = vmatmul.mubr.msk.bf16.vlgmr.msra.gmra.mrb[44].mxu1 %vm944_vm3, %v9448_v61 }
 0x7d6   : > { %5951 = vmatprep.mubr.bf16.mxu0 %v11350_v54  ;;  %5992 = vmatprep.mubr.bf16.mxu1 %v11350_v54 }
 0x7d8   : > { %8977 = vset.pattern.permute.xlu1 %v9094_v1 }
 0x7d9   : > { %6567 = vperm.xlu1 %8977, %v6279_v45  }
 0x860   : > { %v5545_v61 = vpop.f32.mrb[32].mxu0  ;;  %v5586_v37 = vpop.f32.mrb[32].mxu1 }
 0x861   : > { %v5546_v36 = vadd.f32 %v5545_v61, %v9547_v26  ;;  %v5547_v41 = vpop.f32.mrb[33].mxu0  ;;  %v5587_v0 = vadd.f32 %v5586_v37, %v9547_v26  ;;  %v5588_v35 = vpop.f32.mrb[33].mxu1 }
 0x862   : > { %v5548_v43 = vadd.f32 %v5547_v41, %v9547_v26  ;;  %v5549_v14 = vpop.f32.mrb[34].mxu0  ;;  %v5589_v60 = vadd.f32 %v5588_v35, %v9547_v26  ;;  %v5590_v39 = vpop.f32.mrb[34].mxu1 }
 0x863   : > { %v5839_v46 = vmax.f32 %v5546_v36, 0.0  ;;  %v5550_v53 = vpop.f32.mrb[35].mxu0  ;;  %v5841_v31 = vmax.f32 %v5587_v0, 0.0  ;;  %v5591_v49 = vpop.f32.mrb[35].mxu1 }
 0x864   : > { %v5840_v12 = vmax.f32 %v5548_v43, 0.0  ;;  %v5842_v33 = vmax.f32 %v5589_v60, 0.0 }
 0x865   : > { %v5855_v62 = vpack.c.bf16 %v5839_v46, %v5839_v46  ;;  %v5857_v23 = vpack.c.bf16 %v5841_v31, %v5841_v31 }
 0x866   : > { %v5856_v4 = vpack.c.bf16 %v5840_v12, %v5840_v12  ;;  %v5858_v58 = vpack.c.bf16 %v5842_v33, %v5842_v33 }
 0x867   : > { %v5872_v59 = vsel %vm1366_vm4, %v5855_v62, 0  ;;  %v5878_v52 = vsel %vm1366_vm4, %v5857_v23, 0 }
 0x868   : > { %8826 = vmatprep.subr.msk.bf16.mxu0 %vm1366_vm4, %v5856_v4  ;;  %8828 = vmatprep.subr.msk.bf16.mxu1 %vm1366_vm4, %v5858_v58 }
 0x869   : > { %5920 = vmatpush1.bf16.msra.mxu0 %v5872_v59  ;;  %5961 = vmatpush1.bf16.msra.mxu1 %v5878_v52 }
 0x86c   : > { %8827 = vmatmul.mubr.msk.bf16.vlgmr.msra.gmra.mrb[48].mxu0 %vm1362_vm5, %v9559_v8  ;;  %8829 = vmatmul.mubr.msk.bf16.vlgmr.msra.gmra.mrb[48].mxu1 %vm1362_vm5, %v9559_v8 }
 0x86d   : > { %6033 = vmatprep.mubr.bf16.mxu0 %v11350_v54  ;;  %6074 = vmatprep.mubr.bf16.mxu1 %v11350_v54 }
 0x878   : > { %v5627_v57 = vpop.f32.mrb[36].mxu0  ;;  %v5668_v32 = vpop.f32.mrb[36].mxu1 }
 0x879   : > { %v5628_v34 = vadd.f32 %v5627_v57, %v9547_v26  ;;  %v5629_v15 = vpop.f32.mrb[37].mxu0  ;;  %v5669_v3 = vadd.f32 %v5668_v32, %v9547_v26  ;;  %v5670_v56 = vpop.f32.mrb[37].mxu1 }
 0x87a   : > { %v5630_v18 = vadd.f32 %v5629_v15, %v9547_v26  ;;  %v5631_v30 = vpop.f32.mrb[38].mxu0  ;;  %v5671_v7 = vadd.f32 %v5670_v56, %v9547_v26  ;;  %v5672_v6 = vpop.f32.mrb[38].mxu1 }
 0x87b   : > { %v5843_v5 = vmax.f32 %v5628_v34, 0.0  ;;  %v5632_v55 = vpop.f32.mrb[39].mxu0  ;;  %v5845_v11 = vmax.f32 %v5669_v3, 0.0  ;;  %v5673_v19 = vpop.f32.mrb[39].mxu1 }
 0x87c   : > { %v5844_v48 = vmax.f32 %v5630_v18, 0.0  ;;  %v5846_v27 = vmax.f32 %v5671_v7, 0.0 }
 0x87d   : > { %v5859_v20 = vpack.c.bf16 %v5843_v5, %v5843_v5  ;;  %v5861_v29 = vpack.c.bf16 %v5845_v11, %v5845_v11 }
 0x87e   : > { %v5860_v9 = vpack.c.bf16 %v5844_v48, %v5844_v48  ;;  %v5862_v45 = vpack.c.bf16 %v5846_v27, %v5846_v27 }
 0x87f   : > { %v5884_v61 = vsel %vm1366_vm4, %v5859_v20, 0  ;;  %v5890_v36 = vsel %vm1366_vm4, %v5861_v29, 0 }
 0x880   : > { %8830 = vmatprep.subr.msk.bf16.mxu0 %vm1366_vm4, %v5860_v9  ;;  %8832 = vmatprep.subr.msk.bf16.mxu1 %vm1366_vm4, %v5862_v45 }
 0x881   : > { %6002 = vmatpush1.bf16.msra.mxu0 %v5884_v61  ;;  %6043 = vmatpush1.bf16.msra.mxu1 %v5890_v36 }
 0x884   : > { %8831 = vmatmul.mubr.msk.bf16.vlgmr.msra.gmra.mrb[52].mxu0 %vm1362_vm5, %v9559_v8  ;;  %8833 = vmatmul.mubr.msk.bf16.vlgmr.msra.gmra.mrb[52].mxu1 %vm1362_vm5, %v9559_v8 }
 0x885   : > { %6115 = vmatprep.mubr.bf16.mxu0 %v11350_v54  ;;  %6156 = vmatprep.mubr.bf16.mxu1 %v11350_v54 }
 0x890   : > { %v5709_v37 = vpop.f32.mrb[40].mxu0  ;;  %v5750_v0 = vpop.f32.mrb[40].mxu1 }
 0x891   : > { %v5710_v41 = vadd.f32 %v5709_v37, %v9547_v26  ;;  %v5711_v43 = vpop.f32.mrb[41].mxu0  ;;  %v5751_v35 = vadd.f32 %v5750_v0, %v9547_v26  ;;  %v5752_v46 = vpop.f32.mrb[41].mxu1  ;;  %v10643_v0 = vld [vmem:[%s11330_s1 + $0x48] sm:$0xff] }
 0x892   : > { %v5712_v14 = vadd.f32 %v5711_v43, %v9547_v26  ;;  %v5713_v60 = vpop.f32.mrb[42].mxu0  ;;  %v5753_v53 = vadd.f32 %v5752_v46, %v9547_v26  ;;  %v5754_v31 = vpop.f32.mrb[42].mxu1  ;;  %v9095_v43 = vmov 4   ;;  %v11371_v46 = vmov 8  }
 0x893   : > { %v5847_v39 = vmax.f32 %v5710_v41, 0.0  ;;  %v5714_v12 = vpop.f32.mrb[43].mxu0  ;;  %v5849_v49 = vmax.f32 %v5751_v35, 0.0  ;;  %v5755_v33 = vpop.f32.mrb[43].mxu1  ;;  %8978 = vset.pattern.permute.xlu1 %v9095_v43  ;;  %8979 = vset.pattern.permute.xlu0 %v9095_v43  ;;  %v10655_v35 = vld [vmem:[%s11330_s1 + $0x60] sm:$0xf]  ;;  %v6285_v60 = vlaneseq }
 0x894   : > { %v5848_v62 = vmax.f32 %v5712_v14, 0.0  ;;  %v5850_v4 = vmax.f32 %v5753_v53, 0.0  ;;  %6673 = vperm.xlu0 %8979, %v10643_v0   ;;  %v10662_v14 = vld [vmem:[%s11330_s1 + $0x58] sm:$0xff]  ;;  %v10669_v12 = vpop.permute.xlu1 %6282 }
 0x895   : > { %v5863_v23 = vpack.c.bf16 %v5847_v39, %v5847_v39  ;;  %v5865_v58 = vpack.c.bf16 %v5849_v49, %v5849_v49  ;;  %v11372_v39 = vmov 36   ;;  %v10667_v53 = vshrl.u32 %v6285_v60, 7 }
 0x896   : > { %v5864_v59 = vpack.c.bf16 %v5848_v62, %v5848_v62  ;;  %v5866_v52 = vpack.c.bf16 %v5850_v4, %v5850_v4 }
 0x897   : > { %v5896_v57 = vsel %vm1366_vm4, %v5863_v23, 0  ;;  %v5902_v34 = vsel %vm1366_vm4, %v5865_v58, 0 }
 0x898   : > { %8834 = vmatprep.subr.msk.bf16.mxu0 %vm1366_vm4, %v5864_v59  ;;  %8836 = vmatprep.subr.msk.bf16.mxu1 %vm1366_vm4, %v5866_v52 }
 0x899   : > { %6084 = vmatpush1.bf16.msra.mxu0 %v5896_v57  ;;  %6125 = vmatpush1.bf16.msra.mxu1 %v5902_v34  ;;  %v10675_v57 = vsub.s32 0, %v10667_v53  ;;  %v10678_v34 = vsub.s32 1, %v10667_v53 }
 0x89a   : > { %6688 = vperm.xlu0 %8979, %v10655_v35  }
 0x89c   : > { %8835 = vmatmul.mubr.msk.bf16.vlgmr.msra.gmra.mrb[56].mxu0 %vm1362_vm5, %v9559_v8  ;;  %8837 = vmatmul.mubr.msk.bf16.vlgmr.msra.gmra.mrb[56].mxu1 %vm1362_vm5, %v9559_v8 }
 0x89d   : > { %6197 = vmatprep.mubr.bf16.mxu0 %v11350_v54  ;;  %6238 = vmatprep.mubr.bf16.mxu1 %v11350_v54 }
 0x89e   : > { %8981 = vset.pattern.permute.xlu0 %v11371_v46 }
 0x8a8   : > { %v5791_v32 = vpop.f32.mrb[44].mxu0  ;;  %v5832_v3 = vpop.f32.mrb[44].mxu1 }
 0x8a9   : > { %v5792_v15 = vadd.f32 %v5791_v32, %v9547_v26  ;;  %v5793_v18 = vpop.f32.mrb[45].mxu0  ;;  %v5833_v56 = vadd.f32 %v5832_v3, %v9547_v26  ;;  %v5834_v5 = vpop.f32.mrb[45].mxu1 }
 0x8aa   : > { %v5794_v30 = vadd.f32 %v5793_v18, %v9547_v26  ;;  %v5795_v7 = vpop.f32.mrb[46].mxu0  ;;  %v5835_v55 = vadd.f32 %v5834_v5, %v9547_v26  ;;  %v5836_v11 = vpop.f32.mrb[46].mxu1  ;;  %v10638_v26 = vld [vmem:[%s11330_s1 + $0x40] sm:$0xff]  ;;  %v10682_v18 = vsub.s32 2, %v10667_v53 }
 0x8ab   : > { %v5851_v6 = vmax.f32 %v5792_v15, 0.0  ;;  %v5796_v48 = vpop.f32.mrb[47].mxu0  ;;  %v5853_v19 = vmax.f32 %v5833_v56, 0.0  ;;  %v5837_v27 = vpop.f32.mrb[47].mxu1  ;;  %6668 = vperm.xlu1 %8978, %v10638_v26  }
 0x8ac   : > { %v5852_v20 = vmax.f32 %v5794_v30, 0.0  ;;  %v5854_v9 = vmax.f32 %v5835_v55, 0.0  ;;  %v10690_v27 = vpop.permute.xlu1 %6366 }
 0x8ad   : > { %v5867_v29 = vpack.c.bf16 %v5851_v6, %v5851_v6  ;;  %v5869_v45 = vpack.c.bf16 %v5853_v19, %v5853_v19 }
 0x8ae   : > { %v5868_v61 = vpack.c.bf16 %v5852_v20, %v5852_v20  ;;  %v5870_v36 = vpack.c.bf16 %v5854_v9, %v5854_v9 }
 0x8af   : > { %v5908_v37 = vsel %vm1366_vm4, %v5867_v29, 0  ;;  %v5914_v41 = vsel %vm1366_vm4, %v5869_v45, 0 }
 0x8b0   : > { %8838 = vmatprep.subr.msk.bf16.mxu0 %vm1366_vm4, %v5868_v61  ;;  %8840 = vmatprep.subr.msk.bf16.mxu1 %vm1366_vm4, %v5870_v36  ;;  %v10700_v36 = vpop.permute.xlu0 %6466 }
 0x8b1   : > { %6166 = vmatpush1.bf16.msra.mxu0 %v5908_v37  ;;  %6207 = vmatpush1.bf16.msra.mxu1 %v5914_v41 }
 0x8b4   : > { %8839 = vmatmul.mubr.msk.bf16.vlgmr.msra.gmra.mrb[60].mxu0 %vm1362_vm5, %v9559_v8  ;;  %8841 = vmatmul.mubr.msk.bf16.vlgmr.msra.gmra.mrb[60].mxu1 %vm1362_vm5, %v9559_v8  ;;  %v10650_v8 = vld [vmem:[%s11330_s1 + $0x50] sm:$0xff] }
 0x8b5   : > { %6781 = vmatprep.mubr.bf16.mxu0 %v11350_v54  ;;  %6842 = vmatprep.mubr.bf16.mxu1 %v11350_v54 }
 0x8b6   : > { %6678 = vperm.xlu1 %8978, %v10650_v8  }
 0x8ba   : > { %6683 = vperm.xlu1 %8978, %v10662_v14  }
 0x8be   : > { %8980 = vset.pattern.permute.xlu1 %v11372_v39  ;;  %v208_v39 = vld [vmem:[%s9222_s7 + $0x88] sm:$0x3] }
 0x93f   : > { %v5953_v31 = vpop.f32.mrb[48].mxu0  ;;  %v5994_v62 = vpop.f32.mrb[48].mxu1 }
 0x940   : > { %v5954_v49 = vadd.f32 %v5953_v31, %v10028_v38  ;;  %v5955_v33 = vpop.f32.mrb[49].mxu0  ;;  %v5995_v23 = vadd.f32 %v5994_v62, %v10028_v38  ;;  %v5996_v58 = vpop.f32.mrb[49].mxu1 }
 0x941   : > { %v5956_v4 = vadd.f32 %v5955_v33, %v10028_v38  ;;  %v5957_v59 = vpop.f32.mrb[50].mxu0  ;;  %v5997_v32 = vadd.f32 %v5996_v58, %v10028_v38  ;;  %v5998_v15 = vpop.f32.mrb[50].mxu1 }
 0x942   : > { %v6247_v52 = vmax.f32 %v5954_v49, 0.0  ;;  %v5958_v3 = vpop.f32.mrb[51].mxu0  ;;  %v6249_v56 = vmax.f32 %v5995_v23, 0.0  ;;  %v5999_v5 = vpop.f32.mrb[51].mxu1  ;;  %v210_v49 = vld [vmem:[%s9222_s7 + $0x98] sm:$0x3] }
 0x943   : > { %v6248_v30 = vmax.f32 %v5956_v4, 0.0  ;;  %v6250_v6 = vmax.f32 %v5997_v32, 0.0  ;;  %v207_v23 = vld [vmem:[%s9222_s7 + $0x80] sm:$0x3]  ;;  %v10716_v32 = vpop.permute.xlu1 %6567  ;;  %v6603_v5 = vrot.slane %v208_v39, 6 }
 0x944   : > { %v6263_v7 = vadd.f32 %v6247_v52, %v10395_v42  ;;  %v6265_v55 = vadd.f32 %v6249_v56, %v10398_v63 }
 0x945   : > { %v6264_v11 = vadd.f32 %v6248_v30, %v10401_v2  ;;  %v6266_v20 = vadd.f32 %v6250_v6, %v10404_v50 }
 0x946   : > { %v6288_v48 = vrot.slane %v6263_v7, %v10675_v57  ;;  %v6372_v19 = vrot.slane %v6263_v7, %v10678_v34  ;;  %v6472_v29 = vrot.slane %v6263_v7, %v10682_v18  ;;  %v6296_v9 = vrot.slane %v6265_v55, %v10675_v57 }
 0x947   : > { %v6380_v42 = vrot.slane %v6265_v55, %v10678_v34  ;;  %v6292_v63 = vrot.slane %v6264_v11, %v10675_v57  ;;  %v6376_v2 = vrot.slane %v6264_v11, %v10678_v34  ;;  %v6476_v45 = vrot.slane %v6264_v11, %v10682_v18  ;;  %v209_v11 = vld [vmem:[%s9222_s7 + $0x90] sm:$0x3] }
 0x948   : > { %v6300_v61 = vrot.slane %v6266_v20, %v10675_v57  ;;  %v6384_v50 = vrot.slane %v6266_v20, %v10678_v34  ;;  %v6484_v37 = vrot.slane %v6266_v20, %v10682_v18  ;;  %v6349_v43 = vmul.f32 %v6288_v48, %v10669_v12 }
 0x949   : > { %v6350_v41 = vmul.f32 %v6292_v63, %v10669_v12  ;;  %v6433_v46 = vmul.f32 %v6372_v19, %v10690_v27  ;;  %v6480_v60 = vrot.slane %v6265_v55, %v10682_v18  ;;  %v6434_v31 = vmul.f32 %v6376_v2, %v10690_v27 }
 0x94a   : > { %v6352_v62 = vmul.f32 %v6300_v61, %v10669_v12  ;;  %v6436_v33 = vmul.f32 %v6384_v50, %v10690_v27  ;;  %v6534_v4 = vmul.f32 %v6476_v45, %v10700_v36  ;;  %v6533_v59 = vmul.f32 %v6472_v29, %v10700_v36 }
 0x94b   : > { %v6449_v58 = vadd.f32 %v6433_v46, %v6349_v43  ;;  %v6351_v52 = vmul.f32 %v6296_v9, %v10669_v12  ;;  %v6450_v15 = vadd.f32 %v6434_v31, %v6350_v41  ;;  %v6536_v56 = vmul.f32 %v6484_v37, %v10700_v36 }
 0x94c   : > { %v6452_v3 = vadd.f32 %v6436_v33, %v6352_v62  ;;  %v6435_v30 = vmul.f32 %v6380_v42, %v10690_v27  ;;  %v6605_v7 = vrot.slane %v210_v49, 6  ;;  %v6602_v55 = vrot.slane %v207_v23, 6 }
 0x94d   : > { %v6549_v6 = vadd.f32 %v6533_v59, %v6449_v58  ;;  %v6550_v48 = vadd.f32 %v6534_v4, %v6450_v15  ;;  %v6535_v29 = vmul.f32 %v6480_v60, %v10700_v36  ;;  %v6604_v61 = vrot.slane %v209_v11, 6 }
 0x94e   : > { %v6552_v19 = vadd.f32 %v6536_v56, %v6452_v3  ;;  %v6451_v20 = vadd.f32 %v6435_v30, %v6351_v52  ;;  %v10735_v62 = vpack.c.bf16 %v10643_v0, %v10638_v26 }
 0x94f   : > { %v6570_v9 = vadd.f32 %v10716_v32, %v6549_v6  ;;  %v6571_v63 = vadd.f32 %v10716_v32, %v6550_v48 }
 0x950   : > { %v6573_v2 = vadd.f32 %v10716_v32, %v6552_v19  ;;  %v6551_v45 = vadd.f32 %v6535_v29, %v6451_v20  ;;  %v10753_v29 = vpack.c.bf16 %v10662_v14, %v10650_v8 }
 0x951   : > { %v6634_v42 = vsel %vm948_vm2, %v6570_v9, %v6602_v55  ;;  %v6635_v50 = vsel %vm948_vm2, %v6571_v63, %v6603_v5  ;;  %v211_v9 = vld [vmem:[%s9222_s7 + $0xa0] sm:$0x3] }
 0x952   : > { %v6637_v37 = vsel %vm948_vm2, %v6573_v2, %v6605_v7  ;;  %v6650_v41 = vpack.c.bf16 %v6634_v42, %v6634_v42  ;;  %v6572_v43 = vadd.f32 %v10716_v32, %v6551_v45  ;;  %v6651_v46 = vpack.c.bf16 %v6635_v50, %v6635_v50 }
 0x953   : > { %v6653_v39 = vpack.c.bf16 %v6637_v37, %v6637_v37  ;;  %v6606_v37 = vrot.slane %v211_v9, 6 }
 0x954   : > { %v6702_v60 = vsel %vm948_vm2, %v6650_v41, 0  ;;  %v6636_v31 = vsel %vm948_vm2, %v6572_v43, %v6604_v61  ;;  %8842 = vmatprep.subr.msk.bf16.mxu0 %vm948_vm2, %v6651_v46 }
 0x955   : > { %8846 = vmatprep.subr.msk.bf16.mxu1 %vm948_vm2, %v6653_v39  ;;  %v6652_v49 = vpack.c.bf16 %v6636_v31, %v6636_v31  ;;  %6750 = vmatpush1.bf16.msra.mxu0 %v6702_v60 }
 0x957   : > { %v6708_v33 = vsel %vm948_vm2, %v6652_v49, 0  ;;  %v6035_v23 = vpop.f32.mrb[52].mxu0  ;;  %v6076_v58 = vpop.f32.mrb[52].mxu1 }
 0x958   : > { %6811 = vmatpush1.bf16.msra.mxu1 %v6708_v33  ;;  %v6036_v4 = vadd.f32 %v6035_v23, %v10028_v38  ;;  %v6037_v59 = vpop.f32.mrb[53].mxu0  ;;  %v6077_v52 = vadd.f32 %v6076_v58, %v10028_v38  ;;  %v6078_v3 = vpop.f32.mrb[53].mxu1  ;;  %8843 = vmatmul.mubr.msk.bf16.vlgmr.msra.gmra.mrb[64].mxu0 %vm6691_vm6, %v10735_v62  ;;  %v213_v33 = vld [vmem:[%s9222_s7 + $0xb0] sm:$0x3] }
 0x959   : > { %v6038_v15 = vadd.f32 %v6037_v59, %v10028_v38  ;;  %v6039_v26 = vpop.f32.mrb[54].mxu0  ;;  %v6079_v56 = vadd.f32 %v6078_v3, %v10028_v38  ;;  %v6080_v30 = vpop.f32.mrb[54].mxu1  ;;  %6791 = vmatprep.mubr.bf16.mxu0 %v11350_v54 }
 0x95a   : > { %v6251_v0 = vmax.f32 %v6036_v4, 0.0  ;;  %v6040_v5 = vpop.f32.mrb[55].mxu0  ;;  %v6253_v7 = vmax.f32 %v6077_v52, 0.0  ;;  %v6081_v55 = vpop.f32.mrb[55].mxu1  ;;  %v212_v52 = vld [vmem:[%s9222_s7 + $0xa8] sm:$0x3] }
 0x95b   : > { %v6252_v6 = vmax.f32 %v6038_v15, 0.0  ;;  %8847 = vmatmul.mubr.msk.bf16.vlgmr.msra.gmra.mrb[64].mxu1 %vm6691_vm6, %v10735_v62  ;;  %v6254_v48 = vmax.f32 %v6079_v56, 0.0  ;;  %v10790_v5 = vpack.c.bf16 %v10655_v35, %v10655_v35  ;;  %v6607_v55 = vrot.slane %v212_v52, 6 }
 0x95c   : > { %v6267_v11 = vadd.f32 %v6251_v0, %v10411_v22  ;;  %6852 = vmatprep.mubr.bf16.mxu1 %v11350_v54  ;;  %v6269_v19 = vadd.f32 %v6253_v7, %v10414_v28  ;;  %v6608_v7 = vrot.slane %v213_v33, 6 }
 0x95d   : > { %v6268_v20 = vadd.f32 %v6252_v6, %v10417_v16  ;;  %v6270_v22 = vadd.f32 %v6254_v48, %v10420_v21 }
 0x95e   : > { %v6304_v63 = vrot.slane %v6267_v11, %v10675_v57  ;;  %v6388_v2 = vrot.slane %v6267_v11, %v10678_v34  ;;  %v6488_v45 = vrot.slane %v6267_v11, %v10682_v18  ;;  %v6312_v61 = vrot.slane %v6269_v19, %v10675_v57  ;;  %v214_v11 = vld [vmem:[%s9222_s7 + $0xb8] sm:$0x3] }
 0x95f   : > { %v6396_v42 = vrot.slane %v6269_v19, %v10678_v34  ;;  %v6496_v28 = vrot.slane %v6269_v19, %v10682_v18  ;;  %v6308_v16 = vrot.slane %v6268_v20, %v10675_v57  ;;  %v6392_v50 = vrot.slane %v6268_v20, %v10678_v34 }
 0x960   : > { %v6353_v8 = vmul.f32 %v6304_v63, %v10669_v12  ;;  %v6437_v14 = vmul.f32 %v6388_v2, %v10690_v27  ;;  %v6537_v41 = vmul.f32 %v6488_v45, %v10700_v36  ;;  %v6355_v21 = vmul.f32 %v6312_v61, %v10669_v12  ;;  %8844 = vmatmul.mubr.msk.bf16.gmra.mrb[68].mxu0 %vm6691_vm6, %v10753_v29 }
 0x961   : > { %v6439_v43 = vmul.f32 %v6396_v42, %v10690_v27  ;;  %v6354_v46 = vmul.f32 %v6308_v16, %v10669_v12  ;;  %v6438_v60 = vmul.f32 %v6392_v50, %v10690_v27  ;;  %v6492_v31 = vrot.slane %v6268_v20, %v10682_v18  ;;  %6801 = vmatprep.mubr.bf16.mxu0 %v11350_v54 }
 0x962   : > { %v6453_v39 = vadd.f32 %v6437_v14, %v6353_v8  ;;  %v6316_v49 = vrot.slane %v6270_v22, %v10675_v57  ;;  %v6539_v4 = vmul.f32 %v6496_v28, %v10700_v36  ;;  %v6400_v58 = vrot.slane %v6270_v22, %v10678_v34 }
 0x963   : > { %v6455_v23 = vadd.f32 %v6439_v43, %v6355_v21  ;;  %v6500_v59 = vrot.slane %v6270_v22, %v10682_v18  ;;  %8848 = vmatmul.mubr.msk.bf16.gmra.mrb[68].mxu1 %vm6691_vm6, %v10753_v29  ;;  %v6454_v3 = vadd.f32 %v6438_v60, %v6354_v46  ;;  %v6538_v26 = vmul.f32 %v6492_v31, %v10700_v36 }
 0x964   : > { %v6553_v15 = vadd.f32 %v6537_v41, %v6453_v39  ;;  %v6356_v0 = vmul.f32 %v6316_v49, %v10669_v12  ;;  %6862 = vmatprep.mubr.bf16.mxu1 %v11350_v54  ;;  %v6440_v30 = vmul.f32 %v6400_v58, %v10690_v27  ;;  %v6609_v35 = vrot.slane %v214_v11, 6 }
 0x965   : > { %v6555_v56 = vadd.f32 %v6539_v4, %v6455_v23  ;;  %v6554_v6 = vadd.f32 %v6538_v26, %v6454_v3  ;;  %v6540_v20 = vmul.f32 %v6500_v59, %v10700_v36 }
 0x966   : > { %v6574_v48 = vadd.f32 %v10716_v32, %v6553_v15  ;;  %v6456_v19 = vadd.f32 %v6440_v30, %v6356_v0 }
 0x967   : > { %v6576_v9 = vadd.f32 %v10716_v32, %v6555_v56  ;;  %v6575_v63 = vadd.f32 %v10716_v32, %v6554_v6 }
 0x968   : > { %v6638_v2 = vsel %vm948_vm2, %v6574_v48, %v6606_v37  ;;  %v6556_v45 = vadd.f32 %v6540_v20, %v6456_v19  ;;  %8845 = vmatmul.mubr.msk.bf16.gmra.mrb[72].mxu0 %vm6691_vm6, %v10790_v5 }
 0x969   : > { %v6654_v22 = vpack.c.bf16 %v6638_v2, %v6638_v2  ;;  %v6640_v61 = vsel %vm948_vm2, %v6576_v9, %v6608_v7  ;;  %v6639_v42 = vsel %vm948_vm2, %v6575_v63, %v6607_v55  ;;  %6903 = vmatprep.mubr.bf16.mxu0 %v11350_v54  ;;  %v215_v7 = vld [vmem:[%s9222_s7 + $0xc0] sm:$0x3] }
 0x96a   : > { %v6656_v28 = vpack.c.bf16 %v6640_v61, %v6640_v61  ;;  %v6655_v16 = vpack.c.bf16 %v6639_v42, %v6639_v42  ;;  %v6577_v8 = vadd.f32 %v10716_v32, %v6556_v45  ;;  %v6610_v2 = vrot.slane %v215_v7, 6 }
 0x96b   : > { %8849 = vmatmul.mubr.msk.bf16.gmra.mrb[72].mxu1 %vm6691_vm6, %v10790_v5  ;;  %v6714_v14 = vsel %vm948_vm2, %v6654_v22, 0 }
 0x96c   : > { %6964 = vmatprep.mubr.bf16.mxu1 %v11350_v54  ;;  %8850 = vmatprep.subr.msk.bf16.mxu0 %vm948_vm2, %v6655_v16  ;;  %v6641_v50 = vsel %vm948_vm2, %v6577_v8, %v6609_v35  ;;  %v6720_v41 = vsel %vm948_vm2, %v6656_v28, 0  ;;  %v217_v8 = vld [vmem:[%s9222_s7 + $0xd0] sm:$0x3] }
 0x96d   : > { %v6657_v37 = vpack.c.bf16 %v6641_v50, %v6641_v50  ;;  %6872 = vmatpush1.bf16.msra.mxu0 %v6714_v14 }
 0x96f   : > { %v6117_v21 = vpop.f32.mrb[56].mxu0  ;;  %8854 = vmatprep.subr.msk.bf16.mxu1 %vm948_vm2, %v6657_v37  ;;  %v6158_v46 = vpop.f32.mrb[56].mxu1 }
 0x970   : > { %v6118_v43 = vadd.f32 %v6117_v21, %v10028_v38  ;;  %v6119_v39 = vpop.f32.mrb[57].mxu0  ;;  %6933 = vmatpush1.bf16.msra.mxu1 %v6720_v41  ;;  %v6159_v60 = vadd.f32 %v6158_v46, %v10028_v38  ;;  %v6160_v49 = vpop.f32.mrb[57].mxu1  ;;  %8851 = vmatmul.mubr.msk.bf16.vlgmr.msra.gmra.mrb[76].mxu0 %vm6691_vm6, %v10735_v62  ;;  %v216_v21 = vld [vmem:[%s9222_s7 + $0xc8] sm:$0x3] }
 0x971   : > { %v6120_v31 = vadd.f32 %v6119_v39, %v10028_v38  ;;  %v6121_v33 = vpop.f32.mrb[58].mxu0  ;;  %v6161_v4 = vadd.f32 %v6160_v49, %v10028_v38  ;;  %v6162_v58 = vpop.f32.mrb[58].mxu1  ;;  %6913 = vmatprep.mubr.bf16.mxu0 %v11350_v54 }
 0x972   : > { %v6255_v23 = vmax.f32 %v6118_v43, 0.0  ;;  %v6122_v59 = vpop.f32.mrb[59].mxu0  ;;  %v6257_v52 = vmax.f32 %v6159_v60, 0.0  ;;  %v6163_v3 = vpop.f32.mrb[59].mxu1  ;;  %v6612_v33 = vrot.slane %v217_v8, 6 }
 0x973   : > { %v6256_v15 = vmax.f32 %v6120_v31, 0.0  ;;  %v6258_v0 = vmax.f32 %v6161_v4, 0.0  ;;  %8855 = vmatmul.mubr.msk.bf16.vlgmr.msra.gmra.mrb[76].mxu1 %vm6691_vm6, %v10735_v62  ;;  %v6611_v4 = vrot.slane %v216_v21, 6  ;;  %v218_v58 = vld [vmem:[%s9222_s7 + $0xd8] sm:$0x3] }
 0x974   : > { %v6271_v26 = vadd.f32 %v6255_v23, %v10427_v47  ;;  %v6273_v56 = vadd.f32 %v6257_v52, %v10430_v51  ;;  %6974 = vmatprep.mubr.bf16.mxu1 %v11350_v54 }
 0x975   : > { %v6272_v30 = vadd.f32 %v6256_v15, %v10433_v13  ;;  %v6274_v48 = vadd.f32 %v6258_v0, %v10436_v17 }
 0x976   : > { %v6320_v6 = vrot.slane %v6271_v26, %v10675_v57  ;;  %v6404_v55 = vrot.slane %v6271_v26, %v10678_v34  ;;  %v6504_v11 = vrot.slane %v6271_v26, %v10682_v18  ;;  %v6328_v47 = vrot.slane %v6273_v56, %v10675_v57 }
 0x977   : > { %v6412_v19 = vrot.slane %v6273_v56, %v10678_v34  ;;  %v6512_v20 = vrot.slane %v6273_v56, %v10682_v18  ;;  %v6324_v51 = vrot.slane %v6272_v30, %v10675_v57  ;;  %v6408_v63 = vrot.slane %v6272_v30, %v10678_v34 }
 0x978   : > { %v6357_v13 = vmul.f32 %v6320_v6, %v10669_v12  ;;  %v6441_v9 = vmul.f32 %v6404_v55, %v10690_v27  ;;  %v6541_v45 = vmul.f32 %v6504_v11, %v10700_v36  ;;  %v6359_v17 = vmul.f32 %v6328_v47, %v10669_v12  ;;  %8852 = vmatmul.mubr.msk.bf16.gmra.mrb[80].mxu0 %vm6691_vm6, %v10753_v29 }
 0x979   : > { %v6443_v35 = vmul.f32 %v6412_v19, %v10690_v27  ;;  %v6358_v22 = vmul.f32 %v6324_v51, %v10669_v12  ;;  %v6442_v42 = vmul.f32 %v6408_v63, %v10690_v27  ;;  %v6508_v28 = vrot.slane %v6272_v30, %v10682_v18  ;;  %6923 = vmatprep.mubr.bf16.mxu0 %v11350_v54 }
 0x97a   : > { %v6457_v61 = vadd.f32 %v6441_v9, %v6357_v13  ;;  %v6332_v16 = vrot.slane %v6274_v48, %v10675_v57  ;;  %v6543_v50 = vmul.f32 %v6512_v20, %v10700_v36  ;;  %v6416_v37 = vrot.slane %v6274_v48, %v10678_v34 }
 0x97b   : > { %v6459_v14 = vadd.f32 %v6443_v35, %v6359_v17  ;;  %v6516_v41 = vrot.slane %v6274_v48, %v10682_v18  ;;  %v6458_v46 = vadd.f32 %v6442_v42, %v6358_v22  ;;  %v6542_v39 = vmul.f32 %v6508_v28, %v10700_v36  ;;  %8856 = vmatmul.mubr.msk.bf16.gmra.mrb[80].mxu1 %vm6691_vm6, %v10753_v29 }
 0x97c   : > { %v6557_v43 = vadd.f32 %v6541_v45, %v6457_v61  ;;  %v6360_v60 = vmul.f32 %v6332_v16, %v10669_v12  ;;  %v6444_v49 = vmul.f32 %v6416_v37, %v10690_v27  ;;  %6984 = vmatprep.mubr.bf16.mxu1 %v11350_v54  ;;  %v6613_v30 = vrot.slane %v218_v58, 6 }
 0x97d   : > { %v6559_v31 = vadd.f32 %v6543_v50, %v6459_v14  ;;  %v6558_v23 = vadd.f32 %v6542_v39, %v6458_v46  ;;  %v6544_v15 = vmul.f32 %v6516_v41, %v10700_v36 }
 0x97e   : > { %v6578_v59 = vadd.f32 %v10716_v32, %v6557_v43  ;;  %v6460_v52 = vadd.f32 %v6444_v49, %v6360_v60 }
 0x97f   : > { %v6580_v3 = vadd.f32 %v10716_v32, %v6559_v31  ;;  %v6579_v26 = vadd.f32 %v10716_v32, %v6558_v23 }
 0x980   : > { %v6642_v0 = vsel %vm948_vm2, %v6578_v59, %v6610_v2  ;;  %v6560_v56 = vadd.f32 %v6544_v15, %v6460_v52  ;;  %8853 = vmatmul.mubr.msk.bf16.gmra.mrb[84].mxu0 %vm6691_vm6, %v10790_v5 }
 0x981   : > { %v6658_v7 = vpack.c.bf16 %v6642_v0, %v6642_v0  ;;  %v6644_v6 = vsel %vm948_vm2, %v6580_v3, %v6612_v33  ;;  %v6643_v55 = vsel %vm948_vm2, %v6579_v26, %v6611_v4  ;;  %7025 = vmatprep.mubr.bf16.mxu0 %v11350_v54 }
 0x982   : > { %v6660_v11 = vpack.c.bf16 %v6644_v6, %v6644_v6  ;;  %v6659_v48 = vpack.c.bf16 %v6643_v55, %v6643_v55  ;;  %v6581_v47 = vadd.f32 %v10716_v32, %v6560_v56 }
 0x983   : > { %v6726_v19 = vsel %vm948_vm2, %v6658_v7, 0  ;;  %8857 = vmatmul.mubr.msk.bf16.gmra.mrb[84].mxu1 %vm6691_vm6, %v10790_v5  ;;  %v221_v7 = vld [vmem:[%s9222_s7 + $0xf0] sm:$0x3] }
 0x984   : > { %8858 = vmatprep.subr.msk.bf16.mxu0 %vm948_vm2, %v6659_v48  ;;  %v6645_v20 = vsel %vm948_vm2, %v6581_v47, %v6613_v30  ;;  %7086 = vmatprep.mubr.bf16.mxu1 %v11350_v54  ;;  %v6732_v13 = vsel %vm948_vm2, %v6660_v11, 0  ;;  %v220_v47 = vld [vmem:[%s9222_s7 + $0xe8] sm:$0x3] }
 0x985   : > { %v6661_v51 = vpack.c.bf16 %v6645_v20, %v6645_v20  ;;  %6994 = vmatpush1.bf16.msra.mxu0 %v6726_v19 }
 0x987   : > { %v6199_v9 = vpop.f32.mrb[60].mxu0  ;;  %8862 = vmatprep.subr.msk.bf16.mxu1 %vm948_vm2, %v6661_v51  ;;  %v6240_v2 = vpop.f32.mrb[60].mxu1 }
 0x988   : > { %v6200_v63 = vadd.f32 %v6199_v9, %v10028_v38  ;;  %v6201_v45 = vpop.f32.mrb[61].mxu0  ;;  %7055 = vmatpush1.bf16.msra.mxu1 %v6732_v13  ;;  %v6241_v17 = vadd.f32 %v6240_v2, %v10028_v38  ;;  %v6242_v22 = vpop.f32.mrb[61].mxu1  ;;  %8859 = vmatmul.mubr.msk.bf16.vlgmr.msra.gmra.mrb[88].mxu0 %vm6691_vm6, %v10735_v62 }
 0x989   : > { %v6202_v35 = vadd.f32 %v6201_v45, %v10028_v38  ;;  %v6203_v61 = vpop.f32.mrb[62].mxu0  ;;  %v6243_v28 = vadd.f32 %v6242_v22, %v10028_v38  ;;  %v6244_v16 = vpop.f32.mrb[62].mxu1  ;;  %7035 = vmatprep.mubr.bf16.mxu0 %v11350_v54  ;;  %v219_v38 = vld [vmem:[%s9222_s7 + $0xe0] sm:$0x3]  ;;  %v222_v45 = vld [vmem:[%s9222_s7 + $0xf8] sm:$0x3] }
 0x98a   : > { %v6259_v42 = vmax.f32 %v6200_v63, 0.0  ;;  %v6204_v8 = vpop.f32.mrb[63].mxu0  ;;  %v6261_v14 = vmax.f32 %v6241_v17, 0.0  ;;  %v6245_v37 = vpop.f32.mrb[63].mxu1  ;;  %v6614_v59 = vrot.slane %v219_v38, 6  ;;  %v6616_v63 = vrot.slane %v221_v7, 6 }
 0x98b   : > { %v6260_v50 = vmax.f32 %v6202_v35, 0.0  ;;  %v6262_v21 = vmax.f32 %v6243_v28, 0.0  ;;  %8863 = vmatmul.mubr.msk.bf16.vlgmr.msra.gmra.mrb[88].mxu1 %vm6691_vm6, %v10735_v62 }
 0x98c   : > { %v6275_v41 = vadd.f32 %v6259_v42, %v10443_v40  ;;  %v6277_v43 = vadd.f32 %v6261_v14, %v10446_v24  ;;  %7096 = vmatprep.mubr.bf16.mxu1 %v11350_v54 }
 0x98d   : > { %v6276_v46 = vadd.f32 %v6260_v50, %v10449_v44  ;;  %v6278_v49 = vadd.f32 %v6262_v21, %v10452_v25 }
 0x98e   : > { %v6336_v39 = vrot.slane %v6275_v41, %v10675_v57  ;;  %v6420_v60 = vrot.slane %v6275_v41, %v10678_v34  ;;  %v6520_v31 = vrot.slane %v6275_v41, %v10682_v18  ;;  %v6344_v40 = vrot.slane %v6277_v43, %v10675_v57 }
 0x98f   : > { %v6428_v33 = vrot.slane %v6277_v43, %v10678_v34  ;;  %v6528_v23 = vrot.slane %v6277_v43, %v10682_v18  ;;  %v6340_v24 = vrot.slane %v6276_v46, %v10675_v57  ;;  %v6424_v58 = vrot.slane %v6276_v46, %v10678_v34 }
 0x990   : > { %v6361_v44 = vmul.f32 %v6336_v39, %v10669_v12  ;;  %v6445_v4 = vmul.f32 %v6420_v60, %v10690_v27  ;;  %v6545_v52 = vmul.f32 %v6520_v31, %v10700_v36  ;;  %v6363_v25 = vmul.f32 %v6344_v40, %v10669_v12  ;;  %8860 = vmatmul.mubr.msk.bf16.gmra.mrb[92].mxu0 %vm6691_vm6, %v10753_v29 }
 0x991   : > { %v6447_v15 = vmul.f32 %v6428_v33, %v10690_v27  ;;  %v6362_v3 = vmul.f32 %v6340_v24, %v10669_v12  ;;  %v6446_v0 = vmul.f32 %v6424_v58, %v10690_v27  ;;  %v6524_v56 = vrot.slane %v6276_v46, %v10682_v18  ;;  %7045 = vmatprep.mubr.bf16.mxu0 %v11350_v54  ;;  %v10971_v46 = vpop.permute.xlu0 %6673 }
 0x992   : > { %v6461_v26 = vadd.f32 %v6445_v4, %v6361_v44  ;;  %v6348_v30 = vrot.slane %v6278_v49, %v10675_v57  ;;  %v6547_v55 = vmul.f32 %v6528_v23, %v10700_v36  ;;  %v6432_v11 = vrot.slane %v6278_v49, %v10678_v34 }
 0x993   : > { %v6463_v6 = vadd.f32 %v6447_v15, %v6363_v25  ;;  %v6532_v48 = vrot.slane %v6278_v49, %v10682_v18  ;;  %v6462_v20 = vadd.f32 %v6446_v0, %v6362_v3  ;;  %v6546_v51 = vmul.f32 %v6524_v56, %v10700_v36  ;;  %8864 = vmatmul.mubr.msk.bf16.gmra.mrb[92].mxu1 %vm6691_vm6, %v10753_v29 }
 0x994   : > { %v6561_v19 = vadd.f32 %v6545_v52, %v6461_v26  ;;  %v6364_v13 = vmul.f32 %v6348_v30, %v10669_v12  ;;  %v6448_v9 = vmul.f32 %v6432_v11, %v10690_v27  ;;  %7106 = vmatprep.mubr.bf16.mxu1 %v11350_v54  ;;  %v6615_v34 = vrot.slane %v220_v47, 6 }
 0x995   : > { %v6563_v57 = vadd.f32 %v6547_v55, %v6463_v6  ;;  %v6562_v2 = vadd.f32 %v6546_v51, %v6462_v20  ;;  %v6548_v35 = vmul.f32 %v6532_v48, %v10700_v36  ;;  %v6617_v27 = vrot.slane %v222_v45, 6 }
 0x996   : > { %v6582_v18 = vadd.f32 %v10716_v32, %v6561_v19  ;;  %v6464_v17 = vadd.f32 %v6448_v9, %v6364_v13 }
 0x997   : > { %v6584_v22 = vadd.f32 %v10716_v32, %v6563_v57  ;;  %v6583_v12 = vadd.f32 %v10716_v32, %v6562_v2 }
 0x998   : > { %v6646_v61 = vsel %vm948_vm2, %v6582_v18, %v6614_v59  ;;  %v6564_v42 = vadd.f32 %v6548_v35, %v6464_v17  ;;  %8861 = vmatmul.mubr.msk.bf16.gmra.mrb[96].mxu0 %vm6691_vm6, %v10790_v5 }
 0x999   : > { %v6662_v28 = vpack.c.bf16 %v6646_v61, %v6646_v61  ;;  %v6648_v16 = vsel %vm948_vm2, %v6584_v22, %v6616_v63  ;;  %v6647_v8 = vsel %vm948_vm2, %v6583_v12, %v6615_v34  ;;  %7147 = vmatprep.mubr.bf16.mxu0 %v11350_v54 }
 0x99a   : > { %v6664_v14 = vpack.c.bf16 %v6648_v16, %v6648_v16  ;;  %v6663_v36 = vpack.c.bf16 %v6647_v8, %v6647_v8  ;;  %v6585_v50 = vadd.f32 %v10716_v32, %v6564_v42  ;;  %v10965_v32 = vld [vmem:[%s11330_s1 + $0x68] sm:$0xff] }
 0x99b   : > { %v6738_v37 = vsel %vm948_vm2, %v6662_v28, 0  ;;  %8865 = vmatmul.mubr.msk.bf16.gmra.mrb[96].mxu1 %vm6691_vm6, %v10790_v5  ;;  %7367 = vperm.xlu1 %8980, %v10965_v32  }
 0x99c   : > { %8866 = vmatprep.subr.msk.bf16.mxu0 %vm948_vm2, %v6663_v36  ;;  %v6649_v41 = vsel %vm948_vm2, %v6585_v50, %v6617_v27  ;;  %7208 = vmatprep.mubr.bf16.mxu1 %v11350_v54  ;;  %v6744_v43 = vsel %vm948_vm2, %v6664_v14, 0  ;;  %v10993_v14 = vpop.permute.xlu0 %6688 }
 0x99d   : > { %v6665_v21 = vpack.c.bf16 %v6649_v41, %v6649_v41  ;;  %7116 = vmatpush1.bf16.msra.mxu0 %v6738_v37 }
 0x99f   : > { %8870 = vmatprep.subr.msk.bf16.mxu1 %vm948_vm2, %v6665_v21  ;;  %8982 = vset.pattern.permute.xlu1 %v11350_v54 }
 0x9a0   : > { %7177 = vmatpush1.bf16.msra.mxu1 %v6744_v43  ;;  %8867 = vmatmul.mubr.msk.bf16.vlgmr.msra.gmra.mrb[100].mxu0 %vm6691_vm6, %v10735_v62 }
 0x9a1   : > { %7157 = vmatprep.mubr.bf16.mxu0 %v11350_v54 }
 0x9a3   : > { %8871 = vmatmul.mubr.msk.bf16.vlgmr.msra.gmra.mrb[100].mxu1 %vm6691_vm6, %v10735_v62  ;;  %v10969_v62 = vpop.permute.xlu1 %6668 }
 0x9a4   : > { %7218 = vmatprep.mubr.bf16.mxu1 %v11350_v54 }
 0x9a7   : > { %v10973_v39 = vpop.permute.xlu1 %6678 }
 0x9a8   : > { %8868 = vmatmul.mubr.msk.bf16.gmra.mrb[104].mxu0 %vm6691_vm6, %v10753_v29 }
 0x9a9   : > { %7167 = vmatprep.mubr.bf16.mxu0 %v11350_v54 }
 0x9ab   : > { %8872 = vmatmul.mubr.msk.bf16.gmra.mrb[104].mxu1 %vm6691_vm6, %v10753_v29  ;;  %v10983_v47 = vpop.permute.xlu1 %6683 }
 0x9ac   : > { %7228 = vmatprep.mubr.bf16.mxu1 %v11350_v54 }
 0x9b0   : > { %8869 = vmatmul.mubr.msk.bf16.gmra.mrb[108].mxu0 %vm6691_vm6, %v10790_v5 }
 0x9b1   : > { %7453 = vmatprep.mubr.bf16.mxu0 %v11350_v54 }
 0x9b3   : > { %8873 = vmatmul.mubr.msk.bf16.gmra.mrb[108].mxu1 %vm6691_vm6, %v10790_v5 }
 0x9b4   : > { %7494 = vmatprep.mubr.bf16.mxu1 %v11350_v54 }
 0xa2b   : > { %v6783_v29 = vpop.f32.mrb[64].mxu0 }
 0xa2c   : > { %v6785_v38 = vpop.f32.mrb[65].mxu0  ;;  %v6784_v5 = vadd.f32 %v6783_v29, %v10969_v62 }
 0xa2d   : > { %v6787_v31 = vpop.f32.mrb[66].mxu0  ;;  %v6786_v49 = vadd.f32 %v6785_v38, %v10969_v62 }
 0xa2e   : > { %v6844_v60 = vpop.f32.mrb[64].mxu1  ;;  %v6789_v33 = vpop.f32.mrb[67].mxu0  ;;  %v6788_v23 = vadd.f32 %v6787_v31, %v10971_v46  ;;  %v7237_v52 = vmax.f32 %v6784_v5, 0.0 }
 0xa2f   : > { %v6846_v40 = vpop.f32.mrb[65].mxu1  ;;  %v6845_v24 = vadd.f32 %v6844_v60, %v10969_v62  ;;  %v6790_v4 = vadd.f32 %v6789_v33, %v10971_v46  ;;  %v7238_v3 = vmax.f32 %v6786_v49, 0.0 }
 0xa30   : > { %v6848_v44 = vpop.f32.mrb[66].mxu1  ;;  %v6847_v58 = vadd.f32 %v6846_v40, %v10969_v62  ;;  %v7253_v25 = vmax.f32 %v6788_v23, 0.0 }
 0xa31   : > { %v6850_v59 = vpop.f32.mrb[67].mxu1  ;;  %v6849_v15 = vadd.f32 %v6848_v44, %v10971_v46  ;;  %v7254_v26 = vmax.f32 %v6790_v4, 0.0  ;;  %v7239_v30 = vmax.f32 %v6845_v24, 0.0 }
 0xa32   : > { %v6851_v0 = vadd.f32 %v6850_v59, %v10971_v46  ;;  %v7317_v56 = vpack.c.bf16 %v7253_v25, %v7237_v52  ;;  %v7240_v55 = vmax.f32 %v6847_v58, 0.0 }
 0xa33   : > { %v7255_v7 = vmax.f32 %v6849_v15, 0.0  ;;  %v7318_v6 = vpack.c.bf16 %v7254_v26, %v7238_v3  ;;  %v6793_v48 = vpop.f32.mrb[68].mxu0 }
 0xa34   : > { %v7256_v11 = vmax.f32 %v6851_v0, 0.0  ;;  %v6794_v19 = vadd.f32 %v6793_v48, %v10973_v39  ;;  %v6795_v20 = vpop.f32.mrb[69].mxu0 }
 0xa35   : > { %v7319_v51 = vpack.c.bf16 %v7255_v7, %v7239_v30  ;;  %v6796_v9 = vadd.f32 %v6795_v20, %v10973_v39  ;;  %v6797_v63 = vpop.f32.mrb[70].mxu0  ;;  %7421 = vmatprep.subr.bf16.mxu0 %v7318_v6 }
 0xa36   : > { %v7320_v13 = vpack.c.bf16 %v7256_v11, %v7240_v55  ;;  %v6854_v57 = vpop.f32.mrb[68].mxu1  ;;  %v6799_v45 = vpop.f32.mrb[71].mxu0  ;;  %7422 = vmatpush1.bf16.msra.mxu0 %v7317_v56  ;;  %v6798_v18 = vadd.f32 %v6797_v63, %v10983_v47  ;;  %v7269_v12 = vmax.f32 %v6794_v19, 0.0  ;;  %v11003_v55 = vpack.c.bf16 %v10965_v32, %v10965_v32 }
 0xa37   : > { %v6855_v2 = vadd.f32 %v6854_v57, %v10973_v39  ;;  %v6856_v34 = vpop.f32.mrb[69].mxu1  ;;  %v6800_v22 = vadd.f32 %v6799_v45, %v10983_v47  ;;  %v7270_v28 = vmax.f32 %v6796_v9, 0.0 }
 0xa38   : > { %v6857_v17 = vadd.f32 %v6856_v34, %v10973_v39  ;;  %v6858_v35 = vpop.f32.mrb[70].mxu1  ;;  %7462 = vmatprep.subr.bf16.mxu1 %v7320_v13  ;;  %v7285_v42 = vmax.f32 %v6798_v18, 0.0 }
 0xa39   : > { %v6860_v61 = vpop.f32.mrb[71].mxu1  ;;  %7463 = vmatpush1.bf16.msra.mxu1 %v7319_v51  ;;  %v6859_v27 = vadd.f32 %v6858_v35, %v10983_v47  ;;  %v7286_v16 = vmax.f32 %v6800_v22, 0.0  ;;  %v7271_v36 = vmax.f32 %v6855_v2, 0.0 }
 0xa3a   : > { %v6861_v8 = vadd.f32 %v6860_v61, %v10983_v47  ;;  %v7333_v50 = vpack.c.bf16 %v7285_v42, %v7269_v12  ;;  %v7272_v41 = vmax.f32 %v6857_v17, 0.0 }
 0xa3b   : > { %v7287_v37 = vmax.f32 %v6859_v27, 0.0  ;;  %v7334_v21 = vpack.c.bf16 %v7286_v16, %v7270_v28  ;;  %v6803_v29 = vpop.f32.mrb[72].mxu0 }
 0xa3c   : > { %v7288_v43 = vmax.f32 %v6861_v8, 0.0  ;;  %v6805_v38 = vpop.f32.mrb[73].mxu0  ;;  %v6804_v60 = vadd.f32 %v6803_v29, %v10993_v14 }
 0xa3d   : > { %v7335_v5 = vpack.c.bf16 %v7287_v37, %v7271_v36  ;;  %7423 = vmatprep.subr.bf16.mxu0 %v7334_v21  ;;  %v6807_v40 = vpop.f32.mrb[74].mxu0  ;;  %v6806_v33 = vadd.f32 %v6805_v38, %v10993_v14 }
 0xa3e   : > { %v7336_v31 = vpack.c.bf16 %v7288_v43, %v7272_v41  ;;  %v6864_v49 = vpop.f32.mrb[72].mxu1  ;;  %7424 = vmatpush1.bf16.msra.mxu0 %v7333_v50  ;;  %v6808_v24 = vpop.f32.mrb[75].mxu0  ;;  %v7301_v44 = vmax.f32 %v6804_v60, 0.0 }
 0xa3f   : > { %v6866_v23 = vpop.f32.mrb[73].mxu1  ;;  %v6865_v4 = vadd.f32 %v6864_v49, %v10993_v14  ;;  %v7302_v59 = vmax.f32 %v6806_v33, 0.0 }
 0xa40   : > { %7464 = vmatprep.subr.bf16.mxu1 %v7336_v31  ;;  %v6868_v58 = vpop.f32.mrb[74].mxu1  ;;  %v6867_v52 = vadd.f32 %v6866_v23, %v10993_v14  ;;  %v7349_v15 = vpack.c.bf16 %v7301_v44, %v7301_v44 }
 0xa41   : > { %7465 = vmatpush1.bf16.msra.mxu1 %v7335_v5  ;;  %v6869_v25 = vpop.f32.mrb[75].mxu1  ;;  %v7303_v3 = vmax.f32 %v6865_v4, 0.0  ;;  %v7350_v26 = vpack.c.bf16 %v7302_v59, %v7302_v59 }
 0xa42   : > { %v7304_v0 = vmax.f32 %v6867_v52, 0.0  ;;  %v7374_v56 = vsel %vm948_vm2, %v7349_v15, 0 }
 0xa43   : > { %v7351_v30 = vpack.c.bf16 %v7303_v3, %v7303_v3  ;;  %v6905_v7 = vpop.f32.mrb[76].mxu0  ;;  %8874 = vmatprep.subr.msk.bf16.mxu0 %vm948_vm2, %v7350_v26 }
 0xa44   : > { %v7352_v6 = vpack.c.bf16 %v7304_v0, %v7304_v0  ;;  %v6906_v11 = vadd.f32 %v6905_v7, %v10969_v62  ;;  %v6907_v48 = vpop.f32.mrb[77].mxu0  ;;  %7426 = vmatpush1.bf16.msra.mxu0 %v7374_v56 }
 0xa45   : > { %v7380_v19 = vsel %vm948_vm2, %v7351_v30, 0  ;;  %v6908_v20 = vadd.f32 %v6907_v48, %v10969_v62  ;;  %v6909_v51 = vpop.f32.mrb[78].mxu0 }
 0xa46   : > { %8876 = vmatprep.subr.msk.bf16.mxu1 %vm948_vm2, %v7352_v6  ;;  %v6966_v13 = vpop.f32.mrb[76].mxu1  ;;  %v6910_v57 = vadd.f32 %v6909_v51, %v10971_v46  ;;  %v6911_v9 = vpop.f32.mrb[79].mxu0  ;;  %v7241_v34 = vmax.f32 %v6906_v11, 0.0 }
 0xa47   : > { %7467 = vmatpush1.bf16.msra.mxu1 %v7380_v19  ;;  %v6967_v63 = vadd.f32 %v6966_v13, %v10969_v62  ;;  %v6968_v32 = vpop.f32.mrb[77].mxu1  ;;  %v6912_v2 = vadd.f32 %v6911_v9, %v10971_v46  ;;  %8875 = vmatmul.mubr.msk.bf16.vlgmr.msra.gmra.mrb[112].mxu0 %vm944_vm3, %v11003_v55  ;;  %v7242_v35 = vmax.f32 %v6908_v20, 0.0 }
 0xa48   : > { %v6969_v45 = vadd.f32 %v6968_v32, %v10969_v62  ;;  %v7257_v18 = vmax.f32 %v6910_v57, 0.0  ;;  %v6970_v17 = vpop.f32.mrb[78].mxu1  ;;  %7535 = vmatprep.mubr.bf16.mxu0 %v11350_v54 }
 0xa49   : > { %v6971_v22 = vadd.f32 %v6970_v17, %v10971_v46  ;;  %v7258_v12 = vmax.f32 %v6912_v2, 0.0  ;;  %v6972_v61 = vpop.f32.mrb[79].mxu1  ;;  %v7243_v28 = vmax.f32 %v6967_v63, 0.0 }
 0xa4a   : > { %8877 = vmatmul.mubr.msk.bf16.vlgmr.msra.gmra.mrb[112].mxu1 %vm944_vm3, %v11003_v55  ;;  %v7321_v42 = vpack.c.bf16 %v7257_v18, %v7241_v34  ;;  %v6973_v27 = vadd.f32 %v6972_v61, %v10971_v46  ;;  %v7244_v50 = vmax.f32 %v6969_v45, 0.0 }
 0xa4b   : > { %7576 = vmatprep.mubr.bf16.mxu1 %v11350_v54  ;;  %v7259_v16 = vmax.f32 %v6971_v22, 0.0  ;;  %v7322_v8 = vpack.c.bf16 %v7258_v12, %v7242_v35  ;;  %v6915_v36 = vpop.f32.mrb[80].mxu0 }
 0xa4c   : > { %v7260_v37 = vmax.f32 %v6973_v27, 0.0  ;;  %v6916_v41 = vadd.f32 %v6915_v36, %v10973_v39  ;;  %v6917_v21 = vpop.f32.mrb[81].mxu0 }
 0xa4d   : > { %v7323_v43 = vpack.c.bf16 %v7259_v16, %v7243_v28  ;;  %v6918_v29 = vadd.f32 %v6917_v21, %v10973_v39  ;;  %v6919_v38 = vpop.f32.mrb[82].mxu0  ;;  %7503 = vmatprep.subr.bf16.mxu0 %v7322_v8 }
 0xa4e   : > { %v7324_v5 = vpack.c.bf16 %v7260_v37, %v7244_v50  ;;  %v6976_v60 = vpop.f32.mrb[80].mxu1  ;;  %v6920_v31 = vadd.f32 %v6919_v38, %v10983_v47  ;;  %v6921_v49 = vpop.f32.mrb[83].mxu0  ;;  %7504 = vmatpush1.bf16.msra.mxu0 %v7321_v42  ;;  %v7273_v24 = vmax.f32 %v6916_v41, 0.0 }
 0xa4f   : > { %v6977_v40 = vadd.f32 %v6976_v60, %v10973_v39  ;;  %v6978_v33 = vpop.f32.mrb[81].mxu1  ;;  %v6922_v23 = vadd.f32 %v6921_v49, %v10983_v47  ;;  %v7274_v59 = vmax.f32 %v6918_v29, 0.0 }
 0xa50   : > { %v6979_v44 = vadd.f32 %v6978_v33, %v10973_v39  ;;  %v7289_v4 = vmax.f32 %v6920_v31, 0.0  ;;  %v6980_v58 = vpop.f32.mrb[82].mxu1  ;;  %7544 = vmatprep.subr.bf16.mxu1 %v7324_v5 }
 0xa51   : > { %v6981_v52 = vadd.f32 %v6980_v58, %v10983_v47  ;;  %v7290_v25 = vmax.f32 %v6922_v23, 0.0  ;;  %v6982_v15 = vpop.f32.mrb[83].mxu1  ;;  %7545 = vmatpush1.bf16.msra.mxu1 %v7323_v43  ;;  %v7275_v0 = vmax.f32 %v6977_v40, 0.0 }
 0xa52   : > { %v7337_v3 = vpack.c.bf16 %v7289_v4, %v7273_v24  ;;  %v6983_v26 = vadd.f32 %v6982_v15, %v10983_v47  ;;  %v7276_v6 = vmax.f32 %v6979_v44, 0.0 }
 0xa53   : > { %v7291_v56 = vmax.f32 %v6981_v52, 0.0  ;;  %v7338_v30 = vpack.c.bf16 %v7290_v25, %v7274_v59  ;;  %v6925_v7 = vpop.f32.mrb[84].mxu0 }
 0xa54   : > { %v7292_v11 = vmax.f32 %v6983_v26, 0.0  ;;  %v6926_v48 = vadd.f32 %v6925_v7, %v10993_v14  ;;  %v6927_v19 = vpop.f32.mrb[85].mxu0 }
 0xa55   : > { %v7339_v20 = vpack.c.bf16 %v7291_v56, %v7275_v0  ;;  %v6928_v51 = vadd.f32 %v6927_v19, %v10993_v14  ;;  %v6929_v13 = vpop.f32.mrb[86].mxu0  ;;  %7505 = vmatprep.subr.bf16.mxu0 %v7338_v30 }
 0xa56   : > { %v7340_v57 = vpack.c.bf16 %v7292_v11, %v7276_v6  ;;  %v7305_v9 = vmax.f32 %v6926_v48, 0.0  ;;  %v6986_v63 = vpop.f32.mrb[84].mxu1  ;;  %v6930_v32 = vpop.f32.mrb[87].mxu0  ;;  %7506 = vmatpush1.bf16.msra.mxu0 %v7337_v3 }
 0xa57   : > { %v6987_v2 = vadd.f32 %v6986_v63, %v10993_v14  ;;  %v7306_v34 = vmax.f32 %v6928_v51, 0.0  ;;  %v6988_v45 = vpop.f32.mrb[85].mxu1 }
 0xa58   : > { %v7353_v18 = vpack.c.bf16 %v7305_v9, %v7305_v9  ;;  %v6989_v17 = vadd.f32 %v6988_v45, %v10993_v14  ;;  %v6990_v35 = vpop.f32.mrb[86].mxu1  ;;  %7546 = vmatprep.subr.bf16.mxu1 %v7340_v57 }
 0xa59   : > { %v7307_v22 = vmax.f32 %v6987_v2, 0.0  ;;  %v7354_v12 = vpack.c.bf16 %v7306_v34, %v7306_v34  ;;  %v6991_v61 = vpop.f32.mrb[87].mxu1  ;;  %7547 = vmatpush1.bf16.msra.mxu1 %v7339_v20 }
 0xa5a   : > { %v7308_v42 = vmax.f32 %v6989_v17, 0.0  ;;  %v7386_v27 = vsel %vm948_vm2, %v7353_v18, 0 }
 0xa5b   : > { %v7355_v28 = vpack.c.bf16 %v7307_v22, %v7307_v22  ;;  %v7027_v16 = vpop.f32.mrb[88].mxu0  ;;  %8878 = vmatprep.subr.msk.bf16.mxu0 %vm948_vm2, %v7354_v12 }
 0xa5c   : > { %v7356_v8 = vpack.c.bf16 %v7308_v42, %v7308_v42  ;;  %v7028_v36 = vadd.f32 %v7027_v16, %v10969_v62  ;;  %v7029_v50 = vpop.f32.mrb[89].mxu0  ;;  %7508 = vmatpush1.bf16.msra.mxu0 %v7386_v27 }
 0xa5d   : > { %v7030_v37 = vadd.f32 %v7029_v50, %v10969_v62  ;;  %v7031_v41 = vpop.f32.mrb[90].mxu0  ;;  %v7392_v21 = vsel %vm948_vm2, %v7355_v28, 0 }
 0xa5e   : > { %v7088_v43 = vpop.f32.mrb[88].mxu1  ;;  %v7032_v29 = vadd.f32 %v7031_v41, %v10971_v46  ;;  %v7033_v38 = vpop.f32.mrb[91].mxu0  ;;  %8880 = vmatprep.subr.msk.bf16.mxu1 %vm948_vm2, %v7356_v8  ;;  %v7245_v49 = vmax.f32 %v7028_v36, 0.0 }
 0xa5f   : > { %v7089_v5 = vadd.f32 %v7088_v43, %v10969_v62  ;;  %v7090_v60 = vpop.f32.mrb[89].mxu1  ;;  %v7034_v31 = vadd.f32 %v7033_v38, %v10971_v46  ;;  %7549 = vmatpush1.bf16.msra.mxu1 %v7392_v21  ;;  %8879 = vmatmul.mubr.msk.bf16.vlgmr.msra.gmra.mrb[116].mxu0 %vm944_vm3, %v11003_v55  ;;  %v7246_v24 = vmax.f32 %v7030_v37, 0.0 }
 0xa60   : > { %v7091_v40 = vadd.f32 %v7090_v60, %v10969_v62  ;;  %v7261_v33 = vmax.f32 %v7032_v29, 0.0  ;;  %v7092_v23 = vpop.f32.mrb[90].mxu1  ;;  %7617 = vmatprep.mubr.bf16.mxu0 %v11350_v54 }
 0xa61   : > { %v7093_v44 = vadd.f32 %v7092_v23, %v10971_v46  ;;  %v7262_v4 = vmax.f32 %v7034_v31, 0.0  ;;  %v7094_v58 = vpop.f32.mrb[91].mxu1  ;;  %v7247_v25 = vmax.f32 %v7089_v5, 0.0 }
 0xa62   : > { %v7325_v59 = vpack.c.bf16 %v7261_v33, %v7245_v49  ;;  %v7095_v52 = vadd.f32 %v7094_v58, %v10971_v46  ;;  %8881 = vmatmul.mubr.msk.bf16.vlgmr.msra.gmra.mrb[116].mxu1 %vm944_vm3, %v11003_v55  ;;  %v7248_v0 = vmax.f32 %v7091_v40, 0.0 }
 0xa63   : > { %v7263_v15 = vmax.f32 %v7093_v44, 0.0  ;;  %v7326_v3 = vpack.c.bf16 %v7262_v4, %v7246_v24  ;;  %v7037_v26 = vpop.f32.mrb[92].mxu0  ;;  %7658 = vmatprep.mubr.bf16.mxu1 %v11350_v54 }
 0xa64   : > { %v7264_v56 = vmax.f32 %v7095_v52, 0.0  ;;  %v7038_v30 = vadd.f32 %v7037_v26, %v10973_v39  ;;  %v7039_v7 = vpop.f32.mrb[93].mxu0 }
 0xa65   : > { %v7327_v6 = vpack.c.bf16 %v7263_v15, %v7247_v25  ;;  %v7040_v11 = vadd.f32 %v7039_v7, %v10973_v39  ;;  %v7041_v48 = vpop.f32.mrb[94].mxu0  ;;  %7585 = vmatprep.subr.bf16.mxu0 %v7326_v3 }
 0xa66   : > { %v7328_v19 = vpack.c.bf16 %v7264_v56, %v7248_v0  ;;  %v7098_v20 = vpop.f32.mrb[92].mxu1  ;;  %v7042_v51 = vadd.f32 %v7041_v48, %v10983_v47  ;;  %v7043_v13 = vpop.f32.mrb[95].mxu0  ;;  %7586 = vmatpush1.bf16.msra.mxu0 %v7325_v59  ;;  %v7277_v32 = vmax.f32 %v7038_v30, 0.0 }
 0xa67   : > { %v7099_v57 = vadd.f32 %v7098_v20, %v10973_v39  ;;  %v7100_v9 = vpop.f32.mrb[93].mxu1  ;;  %v7044_v63 = vadd.f32 %v7043_v13, %v10983_v47  ;;  %v7278_v18 = vmax.f32 %v7040_v11, 0.0 }
 0xa68   : > { %v7101_v2 = vadd.f32 %v7100_v9, %v10973_v39  ;;  %v7293_v34 = vmax.f32 %v7042_v51, 0.0  ;;  %v7102_v45 = vpop.f32.mrb[94].mxu1  ;;  %7626 = vmatprep.subr.bf16.mxu1 %v7328_v19 }
 0xa69   : > { %v7103_v17 = vadd.f32 %v7102_v45, %v10983_v47  ;;  %v7294_v35 = vmax.f32 %v7044_v63, 0.0  ;;  %v7104_v22 = vpop.f32.mrb[95].mxu1  ;;  %7627 = vmatpush1.bf16.msra.mxu1 %v7327_v6  ;;  %v7279_v42 = vmax.f32 %v7099_v57, 0.0 }
 0xa6a   : > { %v7341_v12 = vpack.c.bf16 %v7293_v34, %v7277_v32  ;;  %v7105_v61 = vadd.f32 %v7104_v22, %v10983_v47  ;;  %v7280_v8 = vmax.f32 %v7101_v2, 0.0 }
 0xa6b   : > { %v7295_v27 = vmax.f32 %v7103_v17, 0.0  ;;  %v7342_v28 = vpack.c.bf16 %v7294_v35, %v7278_v18  ;;  %v7047_v16 = vpop.f32.mrb[96].mxu0 }
 0xa6c   : > { %v7296_v36 = vmax.f32 %v7105_v61, 0.0  ;;  %v7048_v50 = vadd.f32 %v7047_v16, %v10993_v14  ;;  %v7049_v37 = vpop.f32.mrb[97].mxu0 }
 0xa6d   : > { %v7343_v41 = vpack.c.bf16 %v7295_v27, %v7279_v42  ;;  %v7050_v21 = vadd.f32 %v7049_v37, %v10993_v14  ;;  %7587 = vmatprep.subr.bf16.mxu0 %v7342_v28  ;;  %v7051_v43 = vpop.f32.mrb[98].mxu0 }
 0xa6e   : > { %v7344_v29 = vpack.c.bf16 %v7296_v36, %v7280_v8  ;;  %v7309_v38 = vmax.f32 %v7048_v50, 0.0  ;;  %v7108_v5 = vpop.f32.mrb[96].mxu1  ;;  %7588 = vmatpush1.bf16.msra.mxu0 %v7341_v12  ;;  %v7052_v60 = vpop.f32.mrb[99].mxu0 }
 0xa6f   : > { %v7109_v31 = vadd.f32 %v7108_v5, %v10993_v14  ;;  %v7310_v49 = vmax.f32 %v7050_v21, 0.0  ;;  %v7110_v40 = vpop.f32.mrb[97].mxu1 }
 0xa70   : > { %v7357_v33 = vpack.c.bf16 %v7309_v38, %v7309_v38  ;;  %v7111_v23 = vadd.f32 %v7110_v40, %v10993_v14  ;;  %7628 = vmatprep.subr.bf16.mxu1 %v7344_v29  ;;  %v7112_v24 = vpop.f32.mrb[98].mxu1 }
 0xa71   : > { %v7311_v44 = vmax.f32 %v7109_v31, 0.0  ;;  %v7358_v4 = vpack.c.bf16 %v7310_v49, %v7310_v49  ;;  %7629 = vmatpush1.bf16.msra.mxu1 %v7343_v41  ;;  %v7113_v58 = vpop.f32.mrb[99].mxu1 }
 0xa72   : > { %v7312_v59 = vmax.f32 %v7111_v23, 0.0  ;;  %v7398_v52 = vsel %vm948_vm2, %v7357_v33, 0 }
 0xa73   : > { %v7359_v25 = vpack.c.bf16 %v7311_v44, %v7311_v44  ;;  %v7149_v15 = vpop.f32.mrb[100].mxu0  ;;  %8882 = vmatprep.subr.msk.bf16.mxu0 %vm948_vm2, %v7358_v4 }
 0xa74   : > { %v7360_v3 = vpack.c.bf16 %v7312_v59, %v7312_v59  ;;  %v7150_v26 = vadd.f32 %v7149_v15, %v10969_v62  ;;  %v7151_v0 = vpop.f32.mrb[101].mxu0  ;;  %7590 = vmatpush1.bf16.msra.mxu0 %v7398_v52 }
 0xa75   : > { %v7152_v56 = vadd.f32 %v7151_v0, %v10969_v62  ;;  %v7404_v30 = vsel %vm948_vm2, %v7359_v25, 0  ;;  %v7153_v7 = vpop.f32.mrb[102].mxu0 }
 0xa76   : > { %v7210_v6 = vpop.f32.mrb[100].mxu1  ;;  %8884 = vmatprep.subr.msk.bf16.mxu1 %vm948_vm2, %v7360_v3  ;;  %v7154_v11 = vadd.f32 %v7153_v7, %v10971_v46  ;;  %v7155_v48 = vpop.f32.mrb[103].mxu0  ;;  %v7249_v13 = vmax.f32 %v7150_v26, 0.0 }
 0xa77   : > { %v7211_v19 = vadd.f32 %v7210_v6, %v10969_v62  ;;  %v7212_v20 = vpop.f32.mrb[101].mxu1  ;;  %7631 = vmatpush1.bf16.msra.mxu1 %v7404_v30  ;;  %v7156_v51 = vadd.f32 %v7155_v48, %v10971_v46  ;;  %8883 = vmatmul.mubr.msk.bf16.vlgmr.msra.gmra.mrb[120].mxu0 %vm944_vm3, %v11003_v55  ;;  %v7250_v32 = vmax.f32 %v7152_v56, 0.0 }
 0xa78   : > { %v7213_v57 = vadd.f32 %v7212_v20, %v10969_v62  ;;  %v7265_v9 = vmax.f32 %v7154_v11, 0.0  ;;  %v7214_v63 = vpop.f32.mrb[102].mxu1  ;;  %7699 = vmatprep.mubr.bf16.mxu0 %v11350_v54 }
 0xa79   : > { %v7215_v2 = vadd.f32 %v7214_v63, %v10971_v46  ;;  %v7266_v34 = vmax.f32 %v7156_v51, 0.0  ;;  %v7216_v45 = vpop.f32.mrb[103].mxu1  ;;  %v7251_v35 = vmax.f32 %v7211_v19, 0.0 }
 0xa7a   : > { %v7329_v18 = vpack.c.bf16 %v7265_v9, %v7249_v13  ;;  %v7217_v17 = vadd.f32 %v7216_v45, %v10971_v46  ;;  %8885 = vmatmul.mubr.msk.bf16.vlgmr.msra.gmra.mrb[120].mxu1 %vm944_vm3, %v11003_v55  ;;  %v7252_v62 = vmax.f32 %v7213_v57, 0.0 }
 0xa7b   : > { %v7267_v22 = vmax.f32 %v7215_v2, 0.0  ;;  %v7330_v12 = vpack.c.bf16 %v7266_v34, %v7250_v32  ;;  %v7159_v61 = vpop.f32.mrb[104].mxu0  ;;  %7740 = vmatprep.mubr.bf16.mxu1 %v11350_v54 }
 0xa7c   : > { %v7268_v42 = vmax.f32 %v7217_v17, 0.0  ;;  %v7160_v27 = vadd.f32 %v7159_v61, %v10973_v39  ;;  %v7161_v28 = vpop.f32.mrb[105].mxu0  ;;  %v11373_v17 = vmov 2  }
 0xa7d   : > { %v7331_v16 = vpack.c.bf16 %v7267_v22, %v7251_v35  ;;  %v7162_v8 = vadd.f32 %v7161_v28, %v10973_v39  ;;  %v7163_v36 = vpop.f32.mrb[106].mxu0  ;;  %7667 = vmatprep.subr.bf16.mxu0 %v7330_v12  ;;  %v180_v35 = vld [vmem:[%s11330_s1 + $0x78] sm:$0x1] }
 0xa7e   : > { %v7332_v46 = vpack.c.bf16 %v7268_v42, %v7252_v62  ;;  %v7220_v50 = vpop.f32.mrb[104].mxu1  ;;  %v7164_v37 = vadd.f32 %v7163_v36, %v10983_v47  ;;  %v7165_v41 = vpop.f32.mrb[107].mxu0  ;;  %7668 = vmatpush1.bf16.msra.mxu0 %v7329_v18  ;;  %v7281_v38 = vmax.f32 %v7160_v27, 0.0  ;;  %8183 = vperm.xlu1 %8982, %v180_v35  }
 0xa7f   : > { %v7221_v21 = vadd.f32 %v7220_v50, %v10973_v39  ;;  %v7222_v43 = vpop.f32.mrb[105].mxu1  ;;  %v7166_v29 = vadd.f32 %v7165_v41, %v10983_v47  ;;  %v7282_v49 = vmax.f32 %v7162_v8, 0.0 }
 0xa80   : > { %v7223_v5 = vadd.f32 %v7222_v43, %v10973_v39  ;;  %v7297_v60 = vmax.f32 %v7164_v37, 0.0  ;;  %v7224_v31 = vpop.f32.mrb[106].mxu1  ;;  %7708 = vmatprep.subr.bf16.mxu1 %v7332_v46 }
 0xa81   : > { %v7225_v40 = vadd.f32 %v7224_v31, %v10983_v47  ;;  %v7298_v33 = vmax.f32 %v7166_v29, 0.0  ;;  %v7226_v23 = vpop.f32.mrb[107].mxu1  ;;  %7709 = vmatpush1.bf16.msra.mxu1 %v7331_v16  ;;  %v7283_v4 = vmax.f32 %v7221_v21, 0.0 }
 0xa82   : > { %v7345_v24 = vpack.c.bf16 %v7297_v60, %v7281_v38  ;;  %v7227_v44 = vadd.f32 %v7226_v23, %v10983_v47  ;;  %v7284_v25 = vmax.f32 %v7223_v5, 0.0  ;;  %8983 = vset.pattern.permute.xlu1 %v9093_v10 }
 0xa83   : > { %v7299_v58 = vmax.f32 %v7225_v40, 0.0  ;;  %v7346_v59 = vpack.c.bf16 %v7298_v33, %v7282_v49  ;;  %v7169_v52 = vpop.f32.mrb[108].mxu0  ;;  %8203 = vperm.xlu1 %8983, %v180_v35  }
 0xa84   : > { %v7300_v15 = vmax.f32 %v7227_v44, 0.0  ;;  %v7170_v39 = vadd.f32 %v7169_v52, %v10993_v14  ;;  %v7171_v3 = vpop.f32.mrb[109].mxu0 }
 0xa85   : > { %v7347_v26 = vpack.c.bf16 %v7299_v58, %v7283_v4  ;;  %v7172_v0 = vadd.f32 %v7171_v3, %v10993_v14  ;;  %7669 = vmatprep.subr.bf16.mxu0 %v7346_v59  ;;  %v7173_v56 = vpop.f32.mrb[110].mxu0 }
 0xa86   : > { %v7348_v30 = vpack.c.bf16 %v7300_v15, %v7284_v25  ;;  %v7313_v7 = vmax.f32 %v7170_v39, 0.0  ;;  %v7230_v6 = vpop.f32.mrb[108].mxu1  ;;  %7670 = vmatpush1.bf16.msra.mxu0 %v7345_v24  ;;  %v7174_v11 = vpop.f32.mrb[111].mxu0 }
 0xa87   : > { %v7231_v47 = vadd.f32 %v7230_v6, %v10993_v14  ;;  %v7314_v48 = vmax.f32 %v7172_v0, 0.0  ;;  %v7232_v19 = vpop.f32.mrb[109].mxu1  ;;  %8985 = vset.pattern.permute.xlu1 %v9094_v1 }
 0xa88   : > { %v7361_v20 = vpack.c.bf16 %v7313_v7, %v7313_v7  ;;  %v7233_v51 = vadd.f32 %v7232_v19, %v10993_v14  ;;  %7710 = vmatprep.subr.bf16.mxu1 %v7348_v30  ;;  %v7234_v13 = vpop.f32.mrb[110].mxu1  ;;  %v179_v14 = vld [vmem:[%s11330_s1 + $0x70] sm:$0x7]  ;;  %8355 = vperm.xlu1 %8985, %v180_v35  }
 0xa89   : > { %v7315_v57 = vmax.f32 %v7231_v47, 0.0  ;;  %v7362_v9 = vpack.c.bf16 %v7314_v48, %v7314_v48  ;;  %7711 = vmatpush1.bf16.msra.mxu1 %v7347_v26  ;;  %v7235_v63 = vpop.f32.mrb[111].mxu1  ;;  %7783 = vperm.xlu0 %8981, %v179_v14   ;;  %v11121_v60 = vpack.c.bf16 %v179_v14, %v179_v14 }
 0xa8a   : > { %v7316_v32 = vmax.f32 %v7233_v51, 0.0  ;;  %v7410_v2 = vsel %vm948_vm2, %v7361_v20, 0 }
 0xa8b   : > { %v7363_v34 = vpack.c.bf16 %v7315_v57, %v7315_v57  ;;  %8886 = vmatprep.subr.msk.bf16.mxu0 %vm948_vm2, %v7362_v9 }
 0xa8c   : > { %v7364_v45 = vpack.c.bf16 %v7316_v32, %v7316_v32  ;;  %7672 = vmatpush1.bf16.msra.mxu0 %v7410_v2 }
 0xa8d   : > { %v7416_v18 = vsel %vm948_vm2, %v7363_v34, 0  ;;  %8984 = vset.pattern.permute.xlu0 %v11373_v17 }
 0xa8e   : > { %8888 = vmatprep.subr.msk.bf16.mxu1 %vm948_vm2, %v7364_v45  ;;  %8287 = vperm.xlu0 %8984, %v180_v35  }
 0xa8f   : > { %7713 = vmatpush1.bf16.msra.mxu1 %v7416_v18  ;;  %8887 = vmatmul.mubr.msk.bf16.vlgmr.msra.gmra.mrb[124].mxu0 %vm944_vm3, %v11003_v55 }
 0xa90   : > { %7869 = vmatprep.mubr.bf16.mxu0 %v11350_v54 }
 0xa92   : > { %8889 = vmatmul.mubr.msk.bf16.vlgmr.msra.gmra.mrb[124].mxu1 %vm944_vm3, %v11003_v55  ;;  %8986 = vset.pattern.permute.xlu0 %v9094_v1  ;;  %v11113_v55 = vpop.permute.xlu1 %7367 }
 0xa93   : > { %7910 = vmatprep.mubr.bf16.mxu1 %v11350_v54 }
 0xb1a   : > { %v7455_v22 = vpop.f32.mrb[112].mxu0 }
 0xb1b   : > { %v7457_v12 = vpop.f32.mrb[113].mxu0  ;;  %v7456_v61 = vadd.f32 %v7455_v22, %v11113_v55 }
 0xb1c   : > { %v7459_v42 = vpop.f32.mrb[114].mxu0  ;;  %v7458_v27 = vadd.f32 %v7457_v12, %v11113_v55 }
 0xb1d   : > { %v7496_v62 = vpop.f32.mrb[112].mxu1  ;;  %v7460_v16 = vpop.f32.mrb[115].mxu0  ;;  %v7749_v8 = vmax.f32 %v7456_v61, 0.0 }
 0xb1e   : > { %v7498_v28 = vpop.f32.mrb[113].mxu1  ;;  %v7497_v10 = vadd.f32 %v7496_v62, %v11113_v55  ;;  %v7750_v46 = vmax.f32 %v7458_v27, 0.0 }
 0xb1f   : > { %v7500_v36 = vpop.f32.mrb[114].mxu1  ;;  %v7499_v1 = vadd.f32 %v7498_v28, %v11113_v55  ;;  %v7765_v37 = vpack.c.bf16 %v7749_v8, %v7749_v8 }
 0xb20   : > { %v7501_v50 = vpop.f32.mrb[115].mxu1  ;;  %v7751_v41 = vmax.f32 %v7497_v10, 0.0  ;;  %v7766_v21 = vpack.c.bf16 %v7750_v46, %v7750_v46 }
 0xb21   : > { %v7752_v43 = vmax.f32 %v7499_v1, 0.0  ;;  %v7790_v29 = vsel %vm1366_vm4, %v7765_v37, 0 }
 0xb22   : > { %v7767_v38 = vpack.c.bf16 %v7751_v41, %v7751_v41  ;;  %8890 = vmatprep.subr.msk.bf16.mxu0 %vm1366_vm4, %v7766_v21 }
 0xb23   : > { %v7768_v5 = vpack.c.bf16 %v7752_v43, %v7752_v43  ;;  %7838 = vmatpush1.bf16.msra.mxu0 %v7790_v29 }
 0xb24   : > { %v7796_v31 = vsel %vm1366_vm4, %v7767_v38, 0 }
 0xb25   : > { %8892 = vmatprep.subr.msk.bf16.mxu1 %vm1366_vm4, %v7768_v5 }
 0xb26   : > { %7879 = vmatpush1.bf16.msra.mxu1 %v7796_v31  ;;  %8891 = vmatmul.mubr.msk.bf16.vlgmr.msra.gmra.mrb[128].mxu0 %vm1362_vm5, %v11121_v60 }
 0xb27   : > { %7951 = vmatprep.mubr.bf16.mxu0 %v11350_v54 }
 0xb29   : > { %8893 = vmatmul.mubr.msk.bf16.vlgmr.msra.gmra.mrb[128].mxu1 %vm1362_vm5, %v11121_v60 }
 0xb2a   : > { %7992 = vmatprep.mubr.bf16.mxu1 %v11350_v54 }
 0xb32   : > { %v7537_v49 = vpop.f32.mrb[116].mxu0 }
 0xb33   : > { %v7538_v40 = vadd.f32 %v7537_v49, %v11113_v55  ;;  %v7539_v33 = vpop.f32.mrb[117].mxu0 }
 0xb34   : > { %v7540_v23 = vadd.f32 %v7539_v33, %v11113_v55  ;;  %v7541_v24 = vpop.f32.mrb[118].mxu0 }
 0xb35   : > { %v7753_v44 = vmax.f32 %v7538_v40, 0.0  ;;  %v7578_v4 = vpop.f32.mrb[116].mxu1  ;;  %v7542_v58 = vpop.f32.mrb[119].mxu0 }
 0xb36   : > { %v7579_v59 = vadd.f32 %v7578_v4, %v11113_v55  ;;  %v7754_v52 = vmax.f32 %v7540_v23, 0.0  ;;  %v7580_v25 = vpop.f32.mrb[117].mxu1  ;;  %v9096_v58 = vmov 1966171168  }
 0xb37   : > { %v7769_v15 = vpack.c.bf16 %v7753_v44, %v7753_v44  ;;  %v7581_v39 = vadd.f32 %v7580_v25, %v11113_v55  ;;  %v7582_v3 = vpop.f32.mrb[118].mxu1  ;;  %v11173_v44 = vpop.permute.xlu1 %8183 }
 0xb38   : > { %v7755_v26 = vmax.f32 %v7579_v59, 0.0  ;;  %v7770_v0 = vpack.c.bf16 %v7754_v52, %v7754_v52  ;;  %v7583_v56 = vpop.f32.mrb[119].mxu1  ;;  %v8395_v59 = vunpack.c.l.s4 %v9096_v58 }
 0xb39   : > { %v7756_v30 = vmax.f32 %v7581_v39, 0.0  ;;  %v7802_v7 = vsel %vm1366_vm4, %v7769_v15, 0 }
 0xb3a   : > { %v7771_v6 = vpack.c.bf16 %v7755_v26, %v7755_v26  ;;  %8894 = vmatprep.subr.msk.bf16.mxu0 %vm1366_vm4, %v7770_v0 }
 0xb3b   : > { %v7772_v11 = vpack.c.bf16 %v7756_v30, %v7756_v30  ;;  %7920 = vmatpush1.bf16.msra.mxu0 %v7802_v7  ;;  %v11178_v7 = vpop.permute.xlu1 %8203 }
 0xb3c   : > { %v7808_v47 = vsel %vm1366_vm4, %v7771_v6, 0  ;;  %v8396_v6 = vunpack.c.0.s8 %v8395_v59 }
 0xb3d   : > { %8896 = vmatprep.subr.msk.bf16.mxu1 %vm1366_vm4, %v7772_v11 }
 0xb3e   : > { %7961 = vmatpush1.bf16.msra.mxu1 %v7808_v47  ;;  %8895 = vmatmul.mubr.msk.bf16.vlgmr.msra.gmra.mrb[132].mxu0 %vm1362_vm5, %v11121_v60 }
 0xb3f   : > { %8033 = vmatprep.mubr.bf16.mxu0 %v11350_v54 }
 0xb41   : > { %8897 = vmatmul.mubr.msk.bf16.vlgmr.msra.gmra.mrb[132].mxu1 %vm1362_vm5, %v11121_v60 }
 0xb42   : > { %8074 = vmatprep.mubr.bf16.mxu1 %v11350_v54 }
 0xb4a   : > { %v7619_v48 = vpop.f32.mrb[120].mxu0 }
 0xb4b   : > { %v7620_v19 = vadd.f32 %v7619_v48, %v11113_v55  ;;  %v7621_v20 = vpop.f32.mrb[121].mxu0 }
 0xb4c   : > { %v7622_v51 = vadd.f32 %v7621_v20, %v11113_v55  ;;  %v7623_v13 = vpop.f32.mrb[122].mxu0 }
 0xb4d   : > { %v7757_v57 = vmax.f32 %v7620_v19, 0.0  ;;  %v7660_v9 = vpop.f32.mrb[120].mxu1  ;;  %v7624_v63 = vpop.f32.mrb[123].mxu0 }
 0xb4e   : > { %v7661_v32 = vadd.f32 %v7660_v9, %v11113_v55  ;;  %v7758_v2 = vmax.f32 %v7622_v51, 0.0  ;;  %v7662_v34 = vpop.f32.mrb[121].mxu1 }
 0xb4f   : > { %v7773_v45 = vpack.c.bf16 %v7757_v57, %v7757_v57  ;;  %v7663_v18 = vadd.f32 %v7662_v34, %v11113_v55  ;;  %v7664_v14 = vpop.f32.mrb[122].mxu1 }
 0xb50   : > { %v7759_v17 = vmax.f32 %v7661_v32, 0.0  ;;  %v7774_v35 = vpack.c.bf16 %v7758_v2, %v7758_v2  ;;  %v7665_v22 = vpop.f32.mrb[123].mxu1 }
 0xb51   : > { %v7760_v12 = vmax.f32 %v7663_v18, 0.0  ;;  %v7814_v61 = vsel %vm1366_vm4, %v7773_v45, 0 }
 0xb52   : > { %v7775_v62 = vpack.c.bf16 %v7759_v17, %v7759_v17  ;;  %8898 = vmatprep.subr.msk.bf16.mxu0 %vm1366_vm4, %v7774_v35 }
 0xb53   : > { %v7776_v42 = vpack.c.bf16 %v7760_v12, %v7760_v12  ;;  %8002 = vmatpush1.bf16.msra.mxu0 %v7814_v61 }
 0xb54   : > { %v7820_v27 = vsel %vm1366_vm4, %v7775_v62, 0 }
 0xb55   : > { %8900 = vmatprep.subr.msk.bf16.mxu1 %vm1366_vm4, %v7776_v42 }
 0xb56   : > { %8043 = vmatpush1.bf16.msra.mxu1 %v7820_v27  ;;  %8899 = vmatmul.mubr.msk.bf16.vlgmr.msra.gmra.mrb[136].mxu0 %vm1362_vm5, %v11121_v60 }
 0xb57   : > { %8115 = vmatprep.mubr.bf16.mxu0 %v11350_v54 }
 0xb59   : > { %8901 = vmatmul.mubr.msk.bf16.vlgmr.msra.gmra.mrb[136].mxu1 %vm1362_vm5, %v11121_v60 }
 0xb5a   : > { %8156 = vmatprep.mubr.bf16.mxu1 %v11350_v54 }
 0xb62   : > { %v7701_v28 = vpop.f32.mrb[124].mxu0 }
 0xb63   : > { %v7702_v16 = vadd.f32 %v7701_v28, %v11113_v55  ;;  %v7703_v8 = vpop.f32.mrb[125].mxu0  ;;  %v11192_v28 = vpop.permute.xlu1 %8355 }
 0xb64   : > { %v7704_v10 = vadd.f32 %v7703_v8, %v11113_v55  ;;  %v7705_v36 = vpop.f32.mrb[126].mxu0 }
 0xb65   : > { %v7761_v46 = vmax.f32 %v7702_v16, 0.0  ;;  %v7742_v1 = vpop.f32.mrb[124].mxu1  ;;  %v7706_v50 = vpop.f32.mrb[127].mxu0 }
 0xb66   : > { %v7743_v37 = vadd.f32 %v7742_v1, %v11113_v55  ;;  %v7762_v41 = vmax.f32 %v7704_v10, 0.0  ;;  %v7744_v21 = vpop.f32.mrb[125].mxu1 }
 0xb67   : > { %v7777_v43 = vpack.c.bf16 %v7761_v46, %v7761_v46  ;;  %v7745_v29 = vadd.f32 %v7744_v21, %v11113_v55  ;;  %v7746_v38 = vpop.f32.mrb[126].mxu1  ;;  %v11171_v55 = vpop.permute.xlu0 %7783 }
 0xb68   : > { %v7763_v5 = vmax.f32 %v7743_v37, 0.0  ;;  %v7778_v54 = vpack.c.bf16 %v7762_v41, %v7762_v41  ;;  %v7747_v31 = vpop.f32.mrb[127].mxu1 }
 0xb69   : > { %v7764_v49 = vmax.f32 %v7745_v29, 0.0  ;;  %v7826_v40 = vsel %vm1366_vm4, %v7777_v43, 0  ;;  %v11199_v43 = vsub.s32 %v8396_v6, %v10667_v53 }
 0xb6a   : > { %v7779_v33 = vpack.c.bf16 %v7763_v5, %v7763_v5  ;;  %8902 = vmatprep.subr.msk.bf16.mxu0 %vm1366_vm4, %v7778_v54 }
 0xb6b   : > { %v7780_v23 = vpack.c.bf16 %v7764_v49, %v7764_v49  ;;  %8084 = vmatpush1.bf16.msra.mxu0 %v7826_v40  ;;  %v11182_v57 = vpop.permute.xlu0 %8287 }
 0xb6c   : > { %v7832_v24 = vsel %vm1366_vm4, %v7779_v33, 0 }
 0xb6d   : > { %8904 = vmatprep.subr.msk.bf16.mxu1 %vm1366_vm4, %v7780_v23 }
 0xb6e   : > { %8125 = vmatpush1.bf16.msra.mxu1 %v7832_v24  ;;  %8903 = vmatmul.mubr.msk.bf16.vlgmr.msra.gmra.mrb[140].mxu0 %vm1362_vm5, %v11121_v60 }
 0xb71   : > { %8905 = vmatmul.mubr.msk.bf16.vlgmr.msra.gmra.mrb[140].mxu1 %vm1362_vm5, %v11121_v60 }
 0xbf9   : > { %v7871_v4 = vpop.f32.mrb[128].mxu0 }
 0xbfa   : > { %v7873_v52 = vpop.f32.mrb[129].mxu0  ;;  %v7872_v25 = vadd.f32 %v7871_v4, %v11171_v55 }
 0xbfb   : > { %v7875_v39 = vpop.f32.mrb[130].mxu0  ;;  %v7874_v3 = vadd.f32 %v7873_v52, %v11171_v55 }
 0xbfc   : > { %v7912_v15 = vpop.f32.mrb[128].mxu1  ;;  %v7876_v0 = vpop.f32.mrb[131].mxu0  ;;  %v8165_v30 = vmax.f32 %v7872_v25, 0.0 }
 0xbfd   : > { %v7914_v26 = vpop.f32.mrb[129].mxu1  ;;  %v7913_v56 = vadd.f32 %v7912_v15, %v11171_v55  ;;  %v8166_v47 = vmax.f32 %v7874_v3, 0.0 }
 0xbfe   : > { %v7916_v60 = vpop.f32.mrb[130].mxu1  ;;  %v7915_v11 = vadd.f32 %v7914_v26, %v11171_v55  ;;  %v8186_v20 = vmul.f32 %v11173_v44, %v8165_v30  ;;  %v8222_v51 = vrot.slane %v8165_v30, 1  ;;  %v8290_v13 = vrot.slane %v8165_v30, 2 }
 0xbff   : > { %v7917_v48 = vpop.f32.mrb[131].mxu1  ;;  %v8167_v19 = vmax.f32 %v7913_v56, 0.0  ;;  %v8187_v63 = vmul.f32 %v11173_v44, %v8166_v47  ;;  %v8223_v32 = vrot.slane %v8166_v47, 1  ;;  %v8291_v2 = vrot.slane %v8166_v47, 2 }
 0xc00   : > { %v8168_v9 = vmax.f32 %v7915_v11, 0.0  ;;  %v8254_v18 = vmul.f32 %v8222_v51, %v11178_v7  ;;  %v8322_v42 = vmul.f32 %v8290_v13, %v11182_v57 }
 0xc01   : > { %v8188_v34 = vmul.f32 %v11173_v44, %v8167_v19  ;;  %v8224_v45 = vrot.slane %v8167_v19, 1  ;;  %v8292_v14 = vrot.slane %v8167_v19, 2  ;;  %v8255_v22 = vmul.f32 %v8223_v32, %v11178_v7 }
 0xc02   : > { %v8189_v17 = vmul.f32 %v11173_v44, %v8168_v9  ;;  %v8225_v35 = vrot.slane %v8168_v9, 1  ;;  %v8293_v12 = vrot.slane %v8168_v9, 2  ;;  %v8270_v62 = vadd.f32 %v8254_v18, %v8186_v20 }
 0xc03   : > { %v8256_v61 = vmul.f32 %v8224_v45, %v11178_v7  ;;  %v8323_v27 = vmul.f32 %v8291_v2, %v11182_v57  ;;  %v8271_v8 = vadd.f32 %v8255_v22, %v8187_v63  ;;  %v8324_v10 = vmul.f32 %v8292_v14, %v11182_v57 }
 0xc04   : > { %v8257_v16 = vmul.f32 %v8225_v35, %v11178_v7  ;;  %v8325_v36 = vmul.f32 %v8293_v12, %v11182_v57  ;;  %v8338_v1 = vadd.f32 %v8322_v42, %v8270_v62 }
 0xc05   : > { %v8272_v46 = vadd.f32 %v8256_v61, %v8188_v34  ;;  %v8339_v37 = vadd.f32 %v8323_v27, %v8271_v8 }
 0xc06   : > { %v8273_v50 = vadd.f32 %v8257_v16, %v8189_v17  ;;  %v8358_v21 = vadd.f32 %v11192_v28, %v8338_v1 }
 0xc07   : > { %v8340_v41 = vadd.f32 %v8324_v10, %v8272_v46  ;;  %v8359_v38 = vadd.f32 %v11192_v28, %v8339_v37 }
 0xc08   : > { %v8341_v29 = vadd.f32 %v8325_v36, %v8273_v50 }
 0xc09   : > { %v8360_v5 = vadd.f32 %v11192_v28, %v8340_v41  ;;  %v8390_v31 = vcombine.low %v8358_v21, %v8359_v38 }
 0xc0a   : > { %v8361_v54 = vadd.f32 %v11192_v28, %v8341_v29 }
 0xc0b   : > { %v8400_v40 = vrot.slane %v8390_v31, %v11199_v43 }
 0xc0c   : > { %v8391_v49 = vcombine.low %v8360_v5, %v8361_v54 }
 0xc0e   : > { %v8407_v33 = vrot.slane %v8391_v49, %v11199_v43 }
 0xc10   : > { %v8422_v23 = vcombine.low %v8400_v40, %v8407_v33 }
 0xc11   : > { %v7953_v24 = vpop.f32.mrb[132].mxu0 }
 0xc12   : > { %v7955_v4 = vpop.f32.mrb[133].mxu0  ;;  %v7954_v58 = vadd.f32 %v7953_v24, %v11171_v55  ;;  %v8430_v31 = vrot.slane %v8422_v23, %v11199_v43 }
 0xc13   : > { %v7956_v53 = vadd.f32 %v7955_v4, %v11171_v55  ;;  %v7957_v59 = vpop.f32.mrb[134].mxu0 }
 0xc14   : > { %v7994_v52 = vpop.f32.mrb[132].mxu1  ;;  %v7958_v25 = vpop.f32.mrb[135].mxu0  ;;  %v8169_v15 = vmax.f32 %v7954_v58, 0.0 }
 0xc15   : > { %v8170_v39 = vmax.f32 %v7956_v53, 0.0  ;;  %v7996_v3 = vpop.f32.mrb[133].mxu1  ;;  %v7995_v26 = vadd.f32 %v7994_v52, %v11171_v55 }
 0xc16   : > { %v7997_v0 = vadd.f32 %v7996_v3, %v11171_v55  ;;  %v7998_v56 = vpop.f32.mrb[134].mxu1  ;;  %v8190_v30 = vmul.f32 %v11173_v44, %v8169_v15  ;;  %v8226_v60 = vrot.slane %v8169_v15, 1  ;;  %v8294_v6 = vrot.slane %v8169_v15, 2 }
 0xc17   : > { %v8227_v11 = vrot.slane %v8170_v39, 1  ;;  %v8295_v47 = vrot.slane %v8170_v39, 2  ;;  %v7999_v48 = vpop.f32.mrb[135].mxu1  ;;  %v8171_v19 = vmax.f32 %v7995_v26, 0.0  ;;  %v8191_v20 = vmul.f32 %v11173_v44, %v8170_v39 }
 0xc18   : > { %v8172_v51 = vmax.f32 %v7997_v0, 0.0  ;;  %v8258_v13 = vmul.f32 %v8226_v60, %v11178_v7  ;;  %v8326_v9 = vmul.f32 %v8294_v6, %v11182_v57 }
 0xc19   : > { %v8192_v63 = vmul.f32 %v11173_v44, %v8171_v19  ;;  %v8228_v32 = vrot.slane %v8171_v19, 1  ;;  %v8259_v2 = vmul.f32 %v8227_v11, %v11178_v7  ;;  %v8296_v34 = vrot.slane %v8171_v19, 2 }
 0xc1a   : > { %v8229_v45 = vrot.slane %v8172_v51, 1  ;;  %v8297_v18 = vrot.slane %v8172_v51, 2  ;;  %v8193_v14 = vmul.f32 %v11173_v44, %v8172_v51  ;;  %v8274_v17 = vadd.f32 %v8258_v13, %v8190_v30 }
 0xc1b   : > { %v8260_v35 = vmul.f32 %v8228_v32, %v11178_v7  ;;  %v8275_v22 = vadd.f32 %v8259_v2, %v8191_v20  ;;  %v8327_v12 = vmul.f32 %v8295_v47, %v11182_v57  ;;  %v8328_v61 = vmul.f32 %v8296_v34, %v11182_v57 }
 0xc1c   : > { %v8261_v62 = vmul.f32 %v8229_v45, %v11178_v7  ;;  %v8329_v42 = vmul.f32 %v8297_v18, %v11182_v57  ;;  %v8342_v27 = vadd.f32 %v8326_v9, %v8274_v17 }
 0xc1d   : > { %v8276_v16 = vadd.f32 %v8260_v35, %v8192_v63  ;;  %v8343_v8 = vadd.f32 %v8327_v12, %v8275_v22 }
 0xc1e   : > { %v8277_v10 = vadd.f32 %v8261_v62, %v8193_v14  ;;  %v8362_v36 = vadd.f32 %v11192_v28, %v8342_v27 }
 0xc1f   : > { %v8344_v46 = vadd.f32 %v8328_v61, %v8276_v16  ;;  %v8363_v1 = vadd.f32 %v11192_v28, %v8343_v8 }
 0xc20   : > { %v8345_v50 = vadd.f32 %v8329_v42, %v8277_v10 }
 0xc21   : > { %v8364_v37 = vadd.f32 %v11192_v28, %v8344_v46  ;;  %v8392_v41 = vcombine.low %v8362_v36, %v8363_v1 }
 0xc22   : > { %v8365_v21 = vadd.f32 %v11192_v28, %v8345_v50 }
 0xc23   : > { %v8414_v38 = vrot.slane %v8392_v41, %v11199_v43 }
 0xc24   : > { %v8393_v29 = vcombine.low %v8364_v37, %v8365_v21 }
 0xc26   : > { %v8421_v5 = vrot.slane %v8393_v29, %v11199_v43 }
 0xc28   : > { %v8423_v54 = vcombine.low %v8414_v38, %v8421_v5 }
 0xc29   : > { %v8035_v49 = vpop.f32.mrb[136].mxu0 }
 0xc2a   : > { %v8036_v40 = vadd.f32 %v8035_v49, %v11171_v55  ;;  %v8037_v33 = vpop.f32.mrb[137].mxu0  ;;  %v8437_v24 = vrot.slane %v8423_v54, %v11199_v43 }
 0xc2b   : > { %v8038_v4 = vadd.f32 %v8037_v33, %v11171_v55  ;;  %v8039_v58 = vpop.f32.mrb[138].mxu0 }
 0xc2c   : > { %v8173_v53 = vmax.f32 %v8036_v40, 0.0  ;;  %v8076_v59 = vpop.f32.mrb[136].mxu1  ;;  %v8040_v52 = vpop.f32.mrb[139].mxu0  ;;  %v8438_v25 = vcombine.low %v8430_v31, %v8437_v24 }
 0xc2d   : > { %v8077_v15 = vadd.f32 %v8076_v59, %v11171_v55  ;;  %v8174_v39 = vmax.f32 %v8038_v4, 0.0  ;;  %v8078_v3 = vpop.f32.mrb[137].mxu1 }
 0xc2e   : > { %v8194_v26 = vmul.f32 %v11173_v44, %v8173_v53  ;;  %v8230_v23 = vrot.slane %v8173_v53, 1  ;;  %v8298_v0 = vrot.slane %v8173_v53, 2  ;;  %v8079_v56 = vadd.f32 %v8078_v3, %v11171_v55  ;;  %v8080_v30 = vpop.f32.mrb[138].mxu1  ;;  %8490 = vst [vmem:[%s11236_s5] sm:$0xff] %v8438_v25 }
 0xc2f   : > { %v8175_v60 = vmax.f32 %v8077_v15, 0.0  ;;  %v8195_v6 = vmul.f32 %v11173_v44, %v8174_v39  ;;  %v8231_v11 = vrot.slane %v8174_v39, 1  ;;  %v8299_v47 = vrot.slane %v8174_v39, 2  ;;  %v8081_v48 = vpop.f32.mrb[139].mxu1 }
 0xc30   : > { %v8262_v19 = vmul.f32 %v8230_v23, %v11178_v7  ;;  %v8330_v20 = vmul.f32 %v8298_v0, %v11182_v57  ;;  %v8176_v51 = vmax.f32 %v8079_v56, 0.0 }
 0xc31   : > { %v8196_v13 = vmul.f32 %v11173_v44, %v8175_v60  ;;  %v8232_v9 = vrot.slane %v8175_v60, 1  ;;  %v8300_v63 = vrot.slane %v8175_v60, 2  ;;  %v8263_v32 = vmul.f32 %v8231_v11, %v11178_v7 }
 0xc32   : > { %v8278_v2 = vadd.f32 %v8262_v19, %v8194_v26  ;;  %v8331_v34 = vmul.f32 %v8299_v47, %v11182_v57  ;;  %v8197_v45 = vmul.f32 %v11173_v44, %v8176_v51  ;;  %v8233_v18 = vrot.slane %v8176_v51, 1 }
 0xc33   : > { %v8264_v14 = vmul.f32 %v8232_v9, %v11178_v7  ;;  %v8332_v17 = vmul.f32 %v8300_v63, %v11182_v57  ;;  %v8279_v35 = vadd.f32 %v8263_v32, %v8195_v6  ;;  %v8301_v22 = vrot.slane %v8176_v51, 2 }
 0xc34   : > { %v8346_v12 = vadd.f32 %v8330_v20, %v8278_v2  ;;  %v8265_v61 = vmul.f32 %v8233_v18, %v11178_v7 }
 0xc35   : > { %v8280_v62 = vadd.f32 %v8264_v14, %v8196_v13  ;;  %v8347_v42 = vadd.f32 %v8331_v34, %v8279_v35  ;;  %v8333_v27 = vmul.f32 %v8301_v22, %v11182_v57 }
 0xc36   : > { %v8366_v16 = vadd.f32 %v11192_v28, %v8346_v12  ;;  %v8281_v8 = vadd.f32 %v8265_v61, %v8197_v45 }
 0xc37   : > { %v8348_v10 = vadd.f32 %v8332_v17, %v8280_v62  ;;  %v8367_v36 = vadd.f32 %v11192_v28, %v8347_v42 }
 0xc38   : > { %v8349_v46 = vadd.f32 %v8333_v27, %v8281_v8 }
 0xc39   : > { %v8439_v1 = vcombine.low %v8366_v16, %v8367_v36  ;;  %v8368_v50 = vadd.f32 %v11192_v28, %v8348_v10 }
 0xc3a   : > { %v8369_v37 = vadd.f32 %v11192_v28, %v8349_v46 }
 0xc3b   : > { %v8449_v41 = vrot.slane %v8439_v1, %v11199_v43 }
 0xc3c   : > { %v8440_v21 = vcombine.low %v8368_v50, %v8369_v37 }
 0xc3e   : > { %v8456_v29 = vrot.slane %v8440_v21, %v11199_v43 }
 0xc40   : > { %v8471_v38 = vcombine.low %v8449_v41, %v8456_v29 }
 0xc41   : > { %v8117_v5 = vpop.f32.mrb[140].mxu0 }
 0xc42   : > { %v8118_v54 = vadd.f32 %v8117_v5, %v11171_v55  ;;  %v8119_v31 = vpop.f32.mrb[141].mxu0 }
 0xc43   : > { %v8120_v49 = vadd.f32 %v8119_v31, %v11171_v55  ;;  %v8121_v40 = vpop.f32.mrb[142].mxu0 }
 0xc44   : > { %v8177_v33 = vmax.f32 %v8118_v54, 0.0  ;;  %v8158_v24 = vpop.f32.mrb[140].mxu1  ;;  %v8122_v4 = vpop.f32.mrb[143].mxu0 }
 0xc45   : > { %v8159_v58 = vadd.f32 %v8158_v24, %v11171_v55  ;;  %v8178_v53 = vmax.f32 %v8120_v49, 0.0  ;;  %v8160_v59 = vpop.f32.mrb[141].mxu1 }
 0xc46   : > { %v8234_v52 = vrot.slane %v8177_v33, 1  ;;  %v8302_v25 = vrot.slane %v8177_v33, 2  ;;  %v8161_v15 = vadd.f32 %v8160_v59, %v11171_v55  ;;  %v8162_v39 = vpop.f32.mrb[142].mxu1  ;;  %v8198_v56 = vmul.f32 %v11173_v44, %v8177_v33 }
 0xc47   : > { %v8179_v3 = vmax.f32 %v8159_v58, 0.0  ;;  %v8235_v26 = vrot.slane %v8178_v53, 1  ;;  %v8303_v23 = vrot.slane %v8178_v53, 2  ;;  %v8163_v0 = vpop.f32.mrb[143].mxu1  ;;  %v8199_v47 = vmul.f32 %v11173_v44, %v8178_v53 }
 0xc48   : > { %v8266_v30 = vmul.f32 %v8234_v52, %v11178_v7  ;;  %v8180_v60 = vmax.f32 %v8161_v15, 0.0  ;;  %v8334_v20 = vmul.f32 %v8302_v25, %v11182_v57 }
 0xc49   : > { %v8236_v6 = vrot.slane %v8179_v3, 1  ;;  %v8304_v11 = vrot.slane %v8179_v3, 2  ;;  %v8267_v48 = vmul.f32 %v8235_v26, %v11178_v7  ;;  %v8200_v55 = vmul.f32 %v11173_v44, %v8179_v3 }
 0xc4a   : > { %v8282_v19 = vadd.f32 %v8266_v30, %v8198_v56  ;;  %v8237_v51 = vrot.slane %v8180_v60, 1  ;;  %v8335_v63 = vmul.f32 %v8303_v23, %v11182_v57  ;;  %v8305_v32 = vrot.slane %v8180_v60, 2 }
 0xc4b   : > { %v8268_v13 = vmul.f32 %v8236_v6, %v11178_v7  ;;  %v8283_v9 = vadd.f32 %v8267_v48, %v8199_v47  ;;  %v8201_v34 = vmul.f32 %v11173_v44, %v8180_v60  ;;  %v8336_v14 = vmul.f32 %v8304_v11, %v11182_v57 }
 0xc4c   : > { %v8350_v2 = vadd.f32 %v8334_v20, %v8282_v19  ;;  %v8269_v45 = vmul.f32 %v8237_v51, %v11178_v7  ;;  %v8337_v12 = vmul.f32 %v8305_v32, %v11182_v57  ;;  %v8479_v57 = vrot.slane %v8471_v38, %v11199_v43 }
 0xc4d   : > { %v8284_v18 = vadd.f32 %v8268_v13, %v8200_v55  ;;  %v8351_v17 = vadd.f32 %v8335_v63, %v8283_v9 }
 0xc4e   : > { %v8370_v35 = vadd.f32 %v11192_v28, %v8350_v2  ;;  %v8285_v22 = vadd.f32 %v8269_v45, %v8201_v34 }
 0xc4f   : > { %v8352_v61 = vadd.f32 %v8336_v14, %v8284_v18  ;;  %v8371_v62 = vadd.f32 %v11192_v28, %v8351_v17 }
 0xc50   : > { %v8353_v42 = vadd.f32 %v8337_v12, %v8285_v22 }
 0xc51   : > { %v8372_v44 = vadd.f32 %v11192_v28, %v8352_v61  ;;  %v8441_v7 = vcombine.low %v8370_v35, %v8371_v62 }
 0xc52   : > { %v8373_v27 = vadd.f32 %v11192_v28, %v8353_v42 }
 0xc53   : > { %v8463_v16 = vrot.slane %v8441_v7, %v11199_v43 }
 0xc54   : > { %v8442_v8 = vcombine.low %v8372_v44, %v8373_v27 }
 0xc56   : > { %v8470_v10 = vrot.slane %v8442_v8, %v11199_v43 }
 0xc58   : > { %v8472_v36 = vcombine.low %v8463_v16, %v8470_v10 }
 0xc5a   : > { %v8486_v46 = vrot.slane %v8472_v36, %v11199_v43 }
 0xc5c   : > { %v8487_v1 = vcombine.low %v8479_v57, %v8486_v46 }
 0xc5e   : > { %8491 = vst [vmem:[%s11236_s5 + $0x8] sm:$0xff] %v8487_v1 }
 0xc5f   : > { %9030 = shalt.err (!%p9027_p2)
}
 0xc60   : > { %s9031_s29 = scalar_lea.hbm %s11285_s3, 256  ;;  %s9035_s19 = scalar_lea.hbm %s11331_s2, 1024 }
 0xc61   : > { %p9032_p4 = scmp.ne.s32.totalorder %s11285_s3, %s9031_s29  ;;  %p9036_p13 = scmp.lt.u32.totalorder %s11285_s3, %s11331_s2 }
 0xc62   : > { %p9037_p1 = scmp.lt.u32.totalorder %s9035_s19, %s9031_s29  ;;  %p9039_p6 = scmp.lt.u32.totalorder %s9031_s29, %s11285_s3 }
 0xc63   : > { %p9033_p5 = pnand %p9032_p4, %p11374_p10 }
 0xc64   : > { %p9038_p3 = por %p9037_p1, %p9036_p13 }
 0xc65   : > { %p9034_p7 = pneg %p9033_p5 }
 0xc66   : > { %p9040_p11 = por %p9039_p6, %p9038_p3 }
 0xc68   : > { %p9041_p12 = pnand %p9040_p11, %p9034_p7 }
 0xc6a   : > { %9044 = shalt.err (!%p9041_p12)
}
 0xc6b   : > { %8915 = dma.vmem_to_hbm [thread:$0]  (%p11374_p10), %s11287_s20, 256, %s11285_s3, %s8493_s4  }
 0xc6c PF: > { %p8926_p8 = scmp.ge.s32.totalorder %s9083_s12, 2  ;;  %s8519_s25 = sand.u32 1, %s9071_s9  }
 0xc6d   : > { %p11375_p9 = scmp.ne.s32.totalorder %s11341_s22, 0  ;;  %s8520_s26 = scalar_lea.sflag [#allocation4], %s8519_s25 }
 0xc6f   : > { %p8922_p0 = pnand %p8926_p8, %p11375_p9 }
 0xc71   : > { %9066 = dma.done.wait (!%p8922_p0), %s8520_s26, 256  }
 0xc72   : > { %9068 = vsyncadd (!%p8922_p0), %s8520_s26, 4294967040  ;;  %p15_p2 = scmp.ge.s32.totalorder %s9138_s15, 6   ;;  %s11376_s9 = smov %s9075_s10 }
 0xc73   : > { %s11377_s10 = smov %s9079_s11  ;;  %s11378_s11 = smov %s9150_s18 }
 0xc74   : > { %s11379_s12 = smov %s9138_s15  ;;  %17 = sbr.rel (!%p15_p2) target bundleno = 5 (0x5), region = 73 }
 0xc7b   :  { %8525 = vsyncpa [#allocation3], 1 }
 0xc7c   :  { %8527 = vsyncpa [#allocation3 + $0x1], 1 }
 0xc7d   :  { %8528 = vsyncpa [#allocation4], 1 }
 0xc7e   :  { %8530 = vsyncpa [#allocation4 + $0x1], 1 }

</bundles_post_ra>
